<compile_context>
chip_gen: v5e
topology: v5e:2x2
jax: 0.10.0
libtpu: 0.0.40
codegen_flags: <defaults>
</compile_context>

<pallas_src>
import functools

import numpy as np
import jax
import jax.numpy as jnp
from jax.experimental import pallas as pl
from jax.experimental.pallas import tpu as pltpu

EPS = 1e-5


def _round_up(x, m):
    return (x + m - 1) // m * m


def _pick_b_tile(n):
    # Pack up to 4 images into the matmul M dimension per grid step, but keep
    # >= 2 grid steps so v7x's two TensorCores both get work.
    # (On v5e a cap of 2 may be preferable to limit f32 accumulator pressure.)
    for bt in (4, 2):
        if n >= 2 * bt:
            return bt
    return 1


# ----------------------------------------------------------------------------
# Fused kernel: stem -> maxpool -> ResBlock(32->64) -> ResBlock(64->128)
#               -> global avg-pool -> Linear(128, 2), for B images per step.
# ----------------------------------------------------------------------------
def _lite_resnet_kernel(xcol_ref, ws_ref, bs_ref,
                        w1a_ref, b1a_ref, w1b_ref, w1s_ref, b1_ref,
                        w2a_ref, b2a_ref, w2b_ref, w2s_ref, b2_ref,
                        fcw_ref, fcb_ref,
                        o_ref,
                        conv_s, act1_s, mid1_s, act2_s, mid2_s,
                        *, B, HS, WS, HP, WP, T, inv_count):
    """Per grid step (B images):

    xcol_ref : (B, HS*WS, 9*Cin) bf16  stem im2col input
    ws_ref   : (9*Cin, 32)       bf16  stem conv weight (BN scale folded)
    bs_ref   : (1, 32)           f32   stem folded bias
    w?a/w?b  : (9, Cin, Cout)    bf16  ResBlock 3x3 convs (BN folded)
    w?s      : (Cin, Cout)       bf16  ResBlock 1x1 shortcut conv (BN folded)
    b?a/b?   : (1, C)            f32   folded biases (b? = conv2-BN + shortcut-BN)
    fcw/fcb  : (128, 2) / (1, 2) f32   classifier
    o_ref    : (B, 2)            f32   logits
    conv_s   : (B*HS*WS, 32)     f32   stem conv output (pre-pool) scratch
    act?/mid?: (B, L, C)         f32   zero-padded flat activation slabs,
                                       value(h,w) at row T + h*(WP+2) + (w+1)
    """
    WQ = WP + 2
    M = HP * WQ
    HW = HS * WS

    # ---- stem: 3x3 conv as ONE K=27 matmul + folded BN + ReLU --------------
    xc = xcol_ref[...].reshape(B * HW, xcol_ref.shape[-1])
    sacc = jnp.dot(xc, ws_ref[...], preferred_element_type=jnp.float32)
    conv_s[...] = jnp.maximum(sacc + bs_ref[...], 0.0)

    # ---- 2x2 max-pool, written straight into the padded flat slab ---------
    act1_s[...] = jnp.zeros_like(act1_s)          # halos + pad columns
    for b in range(B):
        base = b * HW
        for i in range(HP):
            r0 = base + (2 * i) * WS
            r1 = base + (2 * i + 1) * WS
            c00 = conv_s[pl.ds(r0, WP, stride=2), :]
            c01 = conv_s[pl.ds(r0 + 1, WP, stride=2), :]
            c10 = conv_s[pl.ds(r1, WP, stride=2), :]
            c11 = conv_s[pl.ds(r1 + 1, WP, stride=2), :]
            pooled = jnp.maximum(jnp.maximum(c00, c01), jnp.maximum(c10, c11))
            act1_s[b, pl.ds(T + i * WQ + 1, WP), :] = pooled

    # ---- helpers -----------------------------------------------------------
    def col_mask(cols):
        # In-kernel pad-column mask (True on valid pixels).  M is a multiple
        # of WQ, so the flat row index mod WQ is the column index; computed
        # with f32 floor/div to stay on plain, always-supported VPU ops.
        r = jax.lax.broadcasted_iota(jnp.int32, (B * M, cols), 0)
        r = r.astype(jnp.float32)
        c = r - jnp.floor(r / WQ) * WQ
        return (c > 0.5) & (c < WP + 0.5)

    def tap(slab, off):
        # One shifted 3x3 tap window for all B images -> (B*M, C).
        if B == 1:
            return slab[0, pl.ds(off, M), :]
        c = slab.shape[-1]
        return slab[:, pl.ds(off, M), :].reshape(B * M, c)

    def put_interior(slab, val):
        # Store the (B*M, C) interior block; zero only the top/bottom halo
        # rows (pad columns inside the interior are already zeroed on `val`).
        c = slab.shape[-1]
        if B == 1:
            zh = jnp.zeros((T, c), slab.dtype)
            slab[0, pl.ds(0, T), :] = zh
            slab[0, pl.ds(T + M, T), :] = zh
            slab[0, pl.ds(T, M), :] = val
        else:
            zh = jnp.zeros((B, T, c), slab.dtype)
            slab[:, pl.ds(0, T), :] = zh
            slab[:, pl.ds(T + M, T), :] = zh
            slab[:, pl.ds(T, M), :] = val.reshape(B, M, c)

    def res_block(src_s, mid_s, w1_ref, b1, w2_ref, wsc, b2):
        c1 = w1_ref.shape[-1]
        c2 = w2_ref.shape[-1]
        # conv1 + BN + ReLU: 9 shifted bf16 matmuls, f32 accumulation.
        acc = jnp.zeros((B * M, c1), jnp.float32)
        for t in range(9):
            dh, dw = t // 3, t % 3
            off = T + (dh - 1) * WQ + (dw - 1)
            patch = tap(src_s, off).astype(jnp.bfloat16)
            acc = acc + jnp.dot(patch, w1_ref[t],
                                preferred_element_type=jnp.float32)
        h1 = jnp.where(col_mask(c1), jnp.maximum(acc + b1, 0.0), 0.0)
        put_interior(mid_s, h1)

        # conv2 + BN plus the 1x1 shortcut conv + BN, one shared accumulator.
        xin = tap(src_s, T).astype(jnp.bfloat16)
        acc2 = jnp.dot(xin, wsc, preferred_element_type=jnp.float32)
        for t in range(9):
            dh, dw = t // 3, t % 3
            off = T + (dh - 1) * WQ + (dw - 1)
            patch = tap(mid_s, off).astype(jnp.bfloat16)
            acc2 = acc2 + jnp.dot(patch, w2_ref[t],
                                  preferred_element_type=jnp.float32)
        return jnp.where(col_mask(c2), jnp.maximum(acc2 + b2, 0.0), 0.0)

    # ---- ResBlock(32 -> 64) -------------------------------------------------
    h_rb1 = res_block(act1_s, mid1_s, w1a_ref, b1a_ref[...],
                      w1b_ref, w1s_ref[...], b1_ref[...])
    put_interior(act2_s, h_rb1)

    # ---- ResBlock(64 -> 128) ------------------------------------------------
    h_rb2 = res_block(act2_s, mid2_s, w2a_ref, b2a_ref[...],
                      w2b_ref, w2s_ref[...], b2_ref[...])     # (B*M, 128) f32

    # ---- global average pool + Linear(128, 2) -------------------------------
    # TODO(synk): Dropout(0.7) is identity at inference; training-mode RNG
    # masking is not implemented.
    pooled = jnp.concatenate(
        [jnp.sum(h_rb2[b * M:(b + 1) * M, :], axis=0, keepdims=True)
         for b in range(B)], axis=0) * inv_count               # (B, 128)
    o_ref[...] = (jnp.dot(pooled, fcw_ref[...],
                          preferred_element_type=jnp.float32) + fcb_ref[...])


# ----------------------------------------------------------------------------
# Plain-JAX glue: BN folding, im2col, wrapper, parameter init
# ----------------------------------------------------------------------------
def fold_conv_bn(p, *, stem=False):
    """Fold eval-mode BatchNorm into the conv: bf16 scaled weights, f32 bias."""
    w, b, gamma, beta, mean, var = p
    scale = gamma / jnp.sqrt(var + EPS)
    wf = (w * scale).astype(jnp.bfloat16)
    bias = (beta + (b - mean) * scale).reshape(1, -1).astype(jnp.float32)
    kh, kw, cin, cout = w.shape
    if kh == 1:
        wf = wf.reshape(cin, cout)
    elif stem:
        wf = wf.reshape(kh * kw * cin, cout)     # im2col layout: (dh, dw, ci)
    else:
        wf = wf.reshape(kh * kw, cin, cout)      # tap-major layout
    return wf, bias


def _im2col_3x3(x_nhwc):
    """(N,H,W,C) -> (N, H*W, 9*C): 'SAME' 3x3 patches, tap-major then channel."""
    n, h, w, c = x_nhwc.shape
    xp = jnp.pad(x_nhwc, ((0, 0), (1, 1), (1, 1), (0, 0)))
    cols = [xp[:, dh:dh + h, dw:dw + w, :]
            for dh in range(3) for dw in range(3)]
    return jnp.concatenate(cols, axis=-1).reshape(n, h * w, 9 * c)


def lite_resnet_forward(params, x_nchw):
    x = jnp.transpose(x_nchw, (0, 2, 3, 1)).astype(jnp.float32)  # NCHW -> NHWC
    n, h_in, w_in, _ = x.shape
    assert h_in % 2 == 0 and w_in % 2 == 0, "2x2 max-pool needs even dims"
    hp, wp = h_in // 2, w_in // 2
    wq = wp + 2
    T = _round_up(wp + 3, 8)
    L = 2 * T + hp * wq

    # Stem im2col (the only per-image HBM input of the fused kernel).
    xcol = _im2col_3x3(x).astype(jnp.bfloat16)

    # Fold every eval-mode BatchNorm into its conv.
    w_stem, b_stem = fold_conv_bn(params['stem'], stem=True)
    w1a, b1a = fold_conv_bn(params['rb1_c1'])
    w1b, b1b = fold_conv_bn(params['rb1_c2'])
    w1s, b1s = fold_conv_bn(params['rb1_sc'])
    w2a, b2a = fold_conv_bn(params['rb2_c1'])
    w2b, b2b = fold_conv_bn(params['rb2_c2'])
    w2s, b2s = fold_conv_bn(params['rb2_sc'])
    b1 = b1b + b1s                     # conv2-BN bias + shortcut-BN bias
    b2 = b2b + b2s
    fc_w = params['fc_w'].astype(jnp.float32)
    fc_b = params['fc_b'].reshape(1, -1).astype(jnp.float32)

    bt = _pick_b_tile(n)
    g = pl.cdiv(n, bt)
    if g * bt != n:
        xcol = jnp.pad(xcol, ((0, g * bt - n), (0, 0), (0, 0)))

    c_stem = w_stem.shape[-1]          # 32
    c1 = w1b.shape[-1]                 # 64
    c2 = w2b.shape[-1]                 # 128

    kernel = functools.partial(
        _lite_resnet_kernel, B=bt, HS=h_in, WS=w_in, HP=hp, WP=wp, T=T,
        inv_count=1.0 / float(hp * wp))

    def bcast(a):
        nd = a.ndim
        return pl.BlockSpec(a.shape, lambda i, nd=nd: (0,) * nd)

    out = pl.pallas_call(
        kernel,
        out_shape=jax.ShapeDtypeStruct((g, bt, 2), jnp.float32),
        grid=(g,),
        in_specs=[
            pl.BlockSpec((bt, h_in * w_in, xcol.shape[-1]),
                         lambda i: (i, 0, 0)),
            bcast(w_stem), bcast(b_stem),
            bcast(w1a), bcast(b1a), bcast(w1b), bcast(w1s), bcast(b1),
            bcast(w2a), bcast(b2a), bcast(w2b), bcast(w2s), bcast(b2),
            bcast(fc_w), bcast(fc_b),
        ],
        out_specs=pl.BlockSpec((None, bt, 2), lambda i: (i, 0, 0)),
        scratch_shapes=[
            pltpu.VMEM((bt * h_in * w_in, c_stem), jnp.float32),  # stem conv
            pltpu.VMEM((bt, L, c_stem), jnp.float32),             # pooled stem
            pltpu.VMEM((bt, L, c1), jnp.float32),                 # rb1 mid
            pltpu.VMEM((bt, L, c1), jnp.float32),                 # rb1 out
            pltpu.VMEM((bt, L, c2), jnp.float32),                 # rb2 mid
        ],
        compiler_params=pltpu.CompilerParams(
            dimension_semantics=("parallel",)),
    )(xcol, w_stem, b_stem,
      w1a, b1a, w1b, w1s, b1,
      w2a, b2a, w2b, w2s, b2,
      fc_w, fc_b)

    return out.reshape(g * bt, 2)[:n]


def init_conv_bn(key, kh, kw, cin, cout):
    k1, k2, k3, k4, k5, k6 = jax.random.split(key, 6)
    w = 0.1 * jax.random.normal(k1, (kh, kw, cin, cout), jnp.float32)
    b = 0.1 * jax.random.normal(k2, (cout,), jnp.float32)
    gamma = 1.0 + 0.1 * jax.random.normal(k3, (cout,), jnp.float32)
    beta = 0.1 * jax.random.normal(k4, (cout,), jnp.float32)
    mean = 0.1 * jax.random.normal(k5, (cout,), jnp.float32)
    var = 1.0 + 0.1 * jnp.abs(jax.random.normal(k6, (cout,), jnp.float32))
    return (w, b, gamma, beta, mean, var)


def init_params(key):
    keys = jax.random.split(key, 9)
    return {
        'stem':   init_conv_bn(keys[0], 3, 3, 3, 32),
        'rb1_c1': init_conv_bn(keys[1], 3, 3, 32, 64),
        'rb1_c2': init_conv_bn(keys[2], 3, 3, 64, 64),
        'rb1_sc': init_conv_bn(keys[3], 1, 1, 32, 64),
        'rb2_c1': init_conv_bn(keys[4], 3, 3, 64, 128),
        'rb2_c2': init_conv_bn(keys[5], 3, 3, 128, 128),
        'rb2_sc': init_conv_bn(keys[6], 1, 1, 64, 128),
        'fc_w':   0.1 * jax.random.normal(keys[7], (128, 2), jnp.float32),
        'fc_b':   0.1 * jax.random.normal(keys[8], (2,), jnp.float32),
    }


# ----------------------------------------------------------------------------
# Pure-JAX reference (eval-mode semantics of the PyTorch module)
# ----------------------------------------------------------------------------
def reference_forward(params, x_nchw):
    def conv_bn(x, p):
        w, b, gamma, beta, mean, var = p
        y = jax.lax.conv_general_dilated(
            x, w, window_strides=(1, 1), padding='SAME',
            dimension_numbers=('NHWC', 'HWIO', 'NHWC')) + b
        return (y - mean) / jnp.sqrt(var + EPS) * gamma + beta

    x = jnp.transpose(x_nchw, (0, 2, 3, 1))
    y = jax.nn.relu(conv_bn(x, params['stem']))
    n, h, w, c = y.shape
    y = y.reshape(n, h // 2, 2, w // 2, 2, c).max(axis=(2, 4))

    def block(z, p1, p2, psc):
        o = jax.nn.relu(conv_bn(z, p1))
        o = conv_bn(o, p2) + conv_bn(z, psc)
        return jax.nn.relu(o)

    y = block(y, params['rb1_c1'], params['rb1_c2'], params['rb1_sc'])
    y = block(y, params['rb2_c1'], params['rb2_c2'], params['rb2_sc'])
    pooled = y.mean(axis=(1, 2))
    return pooled @ params['fc_w'] + params['fc_b']


if __name__ == "__main__":
    key = jax.random.PRNGKey(0)
    pkey, xkey = jax.random.split(key)
    params = init_params(pkey)
    x = jax.random.normal(xkey, (2, 3, 16, 16), jnp.float32)  # NCHW like PyTorch

    logits = jax.block_until_ready(jax.jit(lite_resnet_forward)(params, x))
    assert logits.shape == (2, 2) and logits.dtype == jnp.float32

    ref = jax.block_until_ready(reference_forward(params, x))
    # bf16 MXU operands (BN scale folded into bf16 weights) intentionally
    # deviate from the f32 reference at the ~1e-2 level.
    np.testing.assert_allclose(np.asarray(logits), np.asarray(ref),
                               rtol=5e-2, atol=5e-2)
    print("KERNEL_OK")
</pallas_src>

<mosaic_0001>
module attributes {stable_mosaic.version = 11 : i64} {
  func.func @_lite_resnet_kernel(%arg0: i32, %arg1: memref<1x256x27xbf16, #tpu.memory_space<vmem>>, %arg2: memref<27x32xbf16, #tpu.memory_space<vmem>>, %arg3: memref<1x32xf32, #tpu.memory_space<vmem>>, %arg4: memref<9x32x64xbf16, #tpu.memory_space<vmem>>, %arg5: memref<1x64xf32, #tpu.memory_space<vmem>>, %arg6: memref<9x64x64xbf16, #tpu.memory_space<vmem>>, %arg7: memref<32x64xbf16, #tpu.memory_space<vmem>>, %arg8: memref<1x64xf32, #tpu.memory_space<vmem>>, %arg9: memref<9x64x128xbf16, #tpu.memory_space<vmem>>, %arg10: memref<1x128xf32, #tpu.memory_space<vmem>>, %arg11: memref<9x128x128xbf16, #tpu.memory_space<vmem>>, %arg12: memref<64x128xbf16, #tpu.memory_space<vmem>>, %arg13: memref<1x128xf32, #tpu.memory_space<vmem>>, %arg14: memref<128x2xf32, #tpu.memory_space<vmem>>, %arg15: memref<1x2xf32, #tpu.memory_space<vmem>>, %arg16: memref<1x1x2xf32, #tpu.memory_space<vmem>>, %arg17: memref<256x32xf32, #tpu.memory_space<vmem>>, %arg18: memref<1x112x32xf32, #tpu.memory_space<vmem>>, %arg19: memref<1x112x64xf32, #tpu.memory_space<vmem>>, %arg20: memref<1x112x64xf32, #tpu.memory_space<vmem>>, %arg21: memref<1x112x128xf32, #tpu.memory_space<vmem>>) attributes {dimension_semantics = [#tpu.dimension_semantics<parallel>], iteration_bounds = array<i64: 2>, scalar_prefetch = 0 : i64, scratch_operands = 5 : i64, tpu.core_type = #tpu.core_type<tc>, window_params = [{transform_indices = @transform_0, window_bounds = array<i64: 1, 256, 27>}, {pipeline_mode = #tpu.pipeline_mode<synchronous>, transform_indices = @transform_1, window_bounds = array<i64: 27, 32>}, {pipeline_mode = #tpu.pipeline_mode<synchronous>, transform_indices = @transform_2, window_bounds = array<i64: 1, 32>}, {pipeline_mode = #tpu.pipeline_mode<synchronous>, transform_indices = @transform_3, window_bounds = array<i64: 9, 32, 64>}, {pipeline_mode = #tpu.pipeline_mode<synchronous>, transform_indices = @transform_4, window_bounds = array<i64: 1, 64>}, {pipeline_mode = #tpu.pipeline_mode<synchronous>, transform_indices = @transform_5, window_bounds = array<i64: 9, 64, 64>}, {pipeline_mode = #tpu.pipeline_mode<synchronous>, transform_indices = @transform_6, window_bounds = array<i64: 32, 64>}, {pipeline_mode = #tpu.pipeline_mode<synchronous>, transform_indices = @transform_7, window_bounds = array<i64: 1, 64>}, {pipeline_mode = #tpu.pipeline_mode<synchronous>, transform_indices = @transform_8, window_bounds = array<i64: 9, 64, 128>}, {pipeline_mode = #tpu.pipeline_mode<synchronous>, transform_indices = @transform_9, window_bounds = array<i64: 1, 128>}, {pipeline_mode = #tpu.pipeline_mode<synchronous>, transform_indices = @transform_10, window_bounds = array<i64: 9, 128, 128>}, {pipeline_mode = #tpu.pipeline_mode<synchronous>, transform_indices = @transform_11, window_bounds = array<i64: 64, 128>}, {pipeline_mode = #tpu.pipeline_mode<synchronous>, transform_indices = @transform_12, window_bounds = array<i64: 1, 128>}, {pipeline_mode = #tpu.pipeline_mode<synchronous>, transform_indices = @transform_13, window_bounds = array<i64: 128, 2>}, {pipeline_mode = #tpu.pipeline_mode<synchronous>, transform_indices = @transform_14, window_bounds = array<i64: 1, 2>}, {transform_indices = @transform_15, window_bounds = array<i64: 1, 1, 2>}]} {
    %c0 = arith.constant 0 : index
    %c0_0 = arith.constant 0 : index
    %c0_1 = arith.constant 0 : index
    %0 = vector.load %arg1[%c0, %c0_0, %c0_1] : memref<1x256x27xbf16, #tpu.memory_space<vmem>>, vector<1x256x27xbf16>
    %1 = vector.shape_cast %0 : vector<1x256x27xbf16> to vector<256x27xbf16>
    %c0_2 = arith.constant 0 : index
    %c0_3 = arith.constant 0 : index
    %2 = vector.load %arg2[%c0_2, %c0_3] : memref<27x32xbf16, #tpu.memory_space<vmem>>, vector<27x32xbf16>
    %cst = arith.constant dense<0.000000e+00> : vector<256x32xf32>
    %3 = tpu.matmul %1, %2, %cst {dimension_numbers = #tpu.dot_dimension_numbers<[1], [0], [0], [1], [0, 0, 1, 1], [], []>} : vector<256x27xbf16>, vector<27x32xbf16>, vector<256x32xf32> -> vector<256x32xf32>
    %c0_4 = arith.constant 0 : index
    %c0_5 = arith.constant 0 : index
    %4 = vector.load %arg3[%c0_4, %c0_5] : memref<1x32xf32, #tpu.memory_space<vmem>>, vector<1x32xf32>
    %5 = vector.broadcast %4 : vector<1x32xf32> to vector<256x32xf32>
    %6 = arith.addf %3, %5 : vector<256x32xf32>
    %cst_6 = arith.constant 0.000000e+00 : f32
    %7 = vector.broadcast %cst_6 : f32 to vector<256x32xf32>
    %8 = arith.maximumf %6, %7 : vector<256x32xf32>
    %c0_7 = arith.constant 0 : index
    %c0_8 = arith.constant 0 : index
    %9 = vector.load %arg17[%c0_7, %c0_8] : memref<256x32xf32, #tpu.memory_space<vmem>>, vector<256x32xf32>
    tpu.vector_store %arg17[%c0_7, %c0_8], %8 {strides = array<i32>} : memref<256x32xf32, #tpu.memory_space<vmem>>, vector<256x32xf32>,
    %cst_9 = arith.constant 0.000000e+00 : f32
    %10 = vector.broadcast %cst_9 : f32 to vector<1x112x32xf32>
    %c0_10 = arith.constant 0 : index
    %c0_11 = arith.constant 0 : index
    %c0_12 = arith.constant 0 : index
    %11 = vector.load %arg18[%c0_10, %c0_11, %c0_12] : memref<1x112x32xf32, #tpu.memory_space<vmem>>, vector<1x112x32xf32>
    tpu.vector_store %arg18[%c0_10, %c0_11, %c0_12], %10 {strides = array<i32>} : memref<1x112x32xf32, #tpu.memory_space<vmem>>, vector<1x112x32xf32>,
    %c0_13 = arith.constant 0 : index
    %c0_14 = arith.constant 0 : index
    %12 = tpu.strided_load %arg17[%c0_13, %c0_14] {strides = array<i32: 2, 1>} : memref<256x32xf32, #tpu.memory_space<vmem>>, vector<8x32xf32>
    %c1 = arith.constant 1 : index
    %c0_15 = arith.constant 0 : index
    %13 = tpu.strided_load %arg17[%c1, %c0_15] {strides = array<i32: 2, 1>} : memref<256x32xf32, #tpu.memory_space<vmem>>, vector<8x32xf32>
    %c16 = arith.constant 16 : index
    %c0_16 = arith.constant 0 : index
    %14 = tpu.strided_load %arg17[%c16, %c0_16] {strides = array<i32: 2, 1>} : memref<256x32xf32, #tpu.memory_space<vmem>>, vector<8x32xf32>
    %c17 = arith.constant 17 : index
    %c0_17 = arith.constant 0 : index
    %15 = tpu.strided_load %arg17[%c17, %c0_17] {strides = array<i32: 2, 1>} : memref<256x32xf32, #tpu.memory_space<vmem>>, vector<8x32xf32>
    %16 = arith.maximumf %12, %13 : vector<8x32xf32>
    %17 = arith.maximumf %14, %15 : vector<8x32xf32>
    %18 = arith.maximumf %16, %17 : vector<8x32xf32>
    %c0_18 = arith.constant 0 : index
    %c17_19 = arith.constant 17 : index
    %c0_20 = arith.constant 0 : index
    %19 = vector.load %arg18[%c0_18, %c17_19, %c0_20] : memref<1x112x32xf32, #tpu.memory_space<vmem>>, vector<1x8x32xf32>
    %20 = vector.shape_cast %19 : vector<1x8x32xf32> to vector<8x32xf32>
    %21 = vector.shape_cast %18 : vector<8x32xf32> to vector<1x8x32xf32>
    tpu.vector_store %arg18[%c0_18, %c17_19, %c0_20], %21 {strides = array<i32>} : memref<1x112x32xf32, #tpu.memory_space<vmem>>, vector<1x8x32xf32>,
    %c32 = arith.constant 32 : index
    %c0_21 = arith.constant 0 : index
    %22 = tpu.strided_load %arg17[%c32, %c0_21] {strides = array<i32: 2, 1>} : memref<256x32xf32, #tpu.memory_space<vmem>>, vector<8x32xf32>
    %c33 = arith.constant 33 : index
    %c0_22 = arith.constant 0 : index
    %23 = tpu.strided_load %arg17[%c33, %c0_22] {strides = array<i32: 2, 1>} : memref<256x32xf32, #tpu.memory_space<vmem>>, vector<8x32xf32>
    %c48 = arith.constant 48 : index
    %c0_23 = arith.constant 0 : index
    %24 = tpu.strided_load %arg17[%c48, %c0_23] {strides = array<i32: 2, 1>} : memref<256x32xf32, #tpu.memory_space<vmem>>, vector<8x32xf32>
    %c49 = arith.constant 49 : index
    %c0_24 = arith.constant 0 : index
    %25 = tpu.strided_load %arg17[%c49, %c0_24] {strides = array<i32: 2, 1>} : memref<256x32xf32, #tpu.memory_space<vmem>>, vector<8x32xf32>
    %26 = arith.maximumf %22, %23 : vector<8x32xf32>
    %27 = arith.maximumf %24, %25 : vector<8x32xf32>
    %28 = arith.maximumf %26, %27 : vector<8x32xf32>
    %c0_25 = arith.constant 0 : index
    %c27 = arith.constant 27 : index
    %c0_26 = arith.constant 0 : index
    %29 = vector.load %arg18[%c0_25, %c27, %c0_26] : memref<1x112x32xf32, #tpu.memory_space<vmem>>, vector<1x8x32xf32>
    %30 = vector.shape_cast %29 : vector<1x8x32xf32> to vector<8x32xf32>
    %31 = vector.shape_cast %28 : vector<8x32xf32> to vector<1x8x32xf32>
    tpu.vector_store %arg18[%c0_25, %c27, %c0_26], %31 {strides = array<i32>} : memref<1x112x32xf32, #tpu.memory_space<vmem>>, vector<1x8x32xf32>,
    %c64 = arith.constant 64 : index
    %c0_27 = arith.constant 0 : index
    %32 = tpu.strided_load %arg17[%c64, %c0_27] {strides = array<i32: 2, 1>} : memref<256x32xf32, #tpu.memory_space<vmem>>, vector<8x32xf32>
    %c65 = arith.constant 65 : index
    %c0_28 = arith.constant 0 : index
    %33 = tpu.strided_load %arg17[%c65, %c0_28] {strides = array<i32: 2, 1>} : memref<256x32xf32, #tpu.memory_space<vmem>>, vector<8x32xf32>
    %c80 = arith.constant 80 : index
    %c0_29 = arith.constant 0 : index
    %34 = tpu.strided_load %arg17[%c80, %c0_29] {strides = array<i32: 2, 1>} : memref<256x32xf32, #tpu.memory_space<vmem>>, vector<8x32xf32>
    %c81 = arith.constant 81 : index
    %c0_30 = arith.constant 0 : index
    %35 = tpu.strided_load %arg17[%c81, %c0_30] {strides = array<i32: 2, 1>} : memref<256x32xf32, #tpu.memory_space<vmem>>, vector<8x32xf32>
    %36 = arith.maximumf %32, %33 : vector<8x32xf32>
    %37 = arith.maximumf %34, %35 : vector<8x32xf32>
    %38 = arith.maximumf %36, %37 : vector<8x32xf32>
    %c0_31 = arith.constant 0 : index
    %c37 = arith.constant 37 : index
    %c0_32 = arith.constant 0 : index
    %39 = vector.load %arg18[%c0_31, %c37, %c0_32] : memref<1x112x32xf32, #tpu.memory_space<vmem>>, vector<1x8x32xf32>
    %40 = vector.shape_cast %39 : vector<1x8x32xf32> to vector<8x32xf32>
    %41 = vector.shape_cast %38 : vector<8x32xf32> to vector<1x8x32xf32>
    tpu.vector_store %arg18[%c0_31, %c37, %c0_32], %41 {strides = array<i32>} : memref<1x112x32xf32, #tpu.memory_space<vmem>>, vector<1x8x32xf32>,
    %c96 = arith.constant 96 : index
    %c0_33 = arith.constant 0 : index
    %42 = tpu.strided_load %arg17[%c96, %c0_33] {strides = array<i32: 2, 1>} : memref<256x32xf32, #tpu.memory_space<vmem>>, vector<8x32xf32>
    %c97 = arith.constant 97 : index
    %c0_34 = arith.constant 0 : index
    %43 = tpu.strided_load %arg17[%c97, %c0_34] {strides = array<i32: 2, 1>} : memref<256x32xf32, #tpu.memory_space<vmem>>, vector<8x32xf32>
    %c112 = arith.constant 112 : index
    %c0_35 = arith.constant 0 : index
    %44 = tpu.strided_load %arg17[%c112, %c0_35] {strides = array<i32: 2, 1>} : memref<256x32xf32, #tpu.memory_space<vmem>>, vector<8x32xf32>
    %c113 = arith.constant 113 : index
    %c0_36 = arith.constant 0 : index
    %45 = tpu.strided_load %arg17[%c113, %c0_36] {strides = array<i32: 2, 1>} : memref<256x32xf32, #tpu.memory_space<vmem>>, vector<8x32xf32>
    %46 = arith.maximumf %42, %43 : vector<8x32xf32>
    %47 = arith.maximumf %44, %45 : vector<8x32xf32>
    %48 = arith.maximumf %46, %47 : vector<8x32xf32>
    %c0_37 = arith.constant 0 : index
    %c47 = arith.constant 47 : index
    %c0_38 = arith.constant 0 : index
    %49 = vector.load %arg18[%c0_37, %c47, %c0_38] : memref<1x112x32xf32, #tpu.memory_space<vmem>>, vector<1x8x32xf32>
    %50 = vector.shape_cast %49 : vector<1x8x32xf32> to vector<8x32xf32>
    %51 = vector.shape_cast %48 : vector<8x32xf32> to vector<1x8x32xf32>
    tpu.vector_store %arg18[%c0_37, %c47, %c0_38], %51 {strides = array<i32>} : memref<1x112x32xf32, #tpu.memory_space<vmem>>, vector<1x8x32xf32>,
    %c128 = arith.constant 128 : index
    %c0_39 = arith.constant 0 : index
    %52 = tpu.strided_load %arg17[%c128, %c0_39] {strides = array<i32: 2, 1>} : memref<256x32xf32, #tpu.memory_space<vmem>>, vector<8x32xf32>
    %c129 = arith.constant 129 : index
    %c0_40 = arith.constant 0 : index
    %53 = tpu.strided_load %arg17[%c129, %c0_40] {strides = array<i32: 2, 1>} : memref<256x32xf32, #tpu.memory_space<vmem>>, vector<8x32xf32>
    %c144 = arith.constant 144 : index
    %c0_41 = arith.constant 0 : index
    %54 = tpu.strided_load %arg17[%c144, %c0_41] {strides = array<i32: 2, 1>} : memref<256x32xf32, #tpu.memory_space<vmem>>, vector<8x32xf32>
    %c145 = arith.constant 145 : index
    %c0_42 = arith.constant 0 : index
    %55 = tpu.strided_load %arg17[%c145, %c0_42] {strides = array<i32: 2, 1>} : memref<256x32xf32, #tpu.memory_space<vmem>>, vector<8x32xf32>
    %56 = arith.maximumf %52, %53 : vector<8x32xf32>
    %57 = arith.maximumf %54, %55 : vector<8x32xf32>
    %58 = arith.maximumf %56, %57 : vector<8x32xf32>
    %c0_43 = arith.constant 0 : index
    %c57 = arith.constant 57 : index
    %c0_44 = arith.constant 0 : index
    %59 = vector.load %arg18[%c0_43, %c57, %c0_44] : memref<1x112x32xf32, #tpu.memory_space<vmem>>, vector<1x8x32xf32>
    %60 = vector.shape_cast %59 : vector<1x8x32xf32> to vector<8x32xf32>
    %61 = vector.shape_cast %58 : vector<8x32xf32> to vector<1x8x32xf32>
    tpu.vector_store %arg18[%c0_43, %c57, %c0_44], %61 {strides = array<i32>} : memref<1x112x32xf32, #tpu.memory_space<vmem>>, vector<1x8x32xf32>,
    %c160 = arith.constant 160 : index
    %c0_45 = arith.constant 0 : index
    %62 = tpu.strided_load %arg17[%c160, %c0_45] {strides = array<i32: 2, 1>} : memref<256x32xf32, #tpu.memory_space<vmem>>, vector<8x32xf32>
    %c161 = arith.constant 161 : index
    %c0_46 = arith.constant 0 : index
    %63 = tpu.strided_load %arg17[%c161, %c0_46] {strides = array<i32: 2, 1>} : memref<256x32xf32, #tpu.memory_space<vmem>>, vector<8x32xf32>
    %c176 = arith.constant 176 : index
    %c0_47 = arith.constant 0 : index
    %64 = tpu.strided_load %arg17[%c176, %c0_47] {strides = array<i32: 2, 1>} : memref<256x32xf32, #tpu.memory_space<vmem>>, vector<8x32xf32>
    %c177 = arith.constant 177 : index
    %c0_48 = arith.constant 0 : index
    %65 = tpu.strided_load %arg17[%c177, %c0_48] {strides = array<i32: 2, 1>} : memref<256x32xf32, #tpu.memory_space<vmem>>, vector<8x32xf32>
    %66 = arith.maximumf %62, %63 : vector<8x32xf32>
    %67 = arith.maximumf %64, %65 : vector<8x32xf32>
    %68 = arith.maximumf %66, %67 : vector<8x32xf32>
    %c0_49 = arith.constant 0 : index
    %c67 = arith.constant 67 : index
    %c0_50 = arith.constant 0 : index
    %69 = vector.load %arg18[%c0_49, %c67, %c0_50] : memref<1x112x32xf32, #tpu.memory_space<vmem>>, vector<1x8x32xf32>
    %70 = vector.shape_cast %69 : vector<1x8x32xf32> to vector<8x32xf32>
    %71 = vector.shape_cast %68 : vector<8x32xf32> to vector<1x8x32xf32>
    tpu.vector_store %arg18[%c0_49, %c67, %c0_50], %71 {strides = array<i32>} : memref<1x112x32xf32, #tpu.memory_space<vmem>>, vector<1x8x32xf32>,
    %c192 = arith.constant 192 : index
    %c0_51 = arith.constant 0 : index
    %72 = tpu.strided_load %arg17[%c192, %c0_51] {strides = array<i32: 2, 1>} : memref<256x32xf32, #tpu.memory_space<vmem>>, vector<8x32xf32>
    %c193 = arith.constant 193 : index
    %c0_52 = arith.constant 0 : index
    %73 = tpu.strided_load %arg17[%c193, %c0_52] {strides = array<i32: 2, 1>} : memref<256x32xf32, #tpu.memory_space<vmem>>, vector<8x32xf32>
    %c208 = arith.constant 208 : index
    %c0_53 = arith.constant 0 : index
    %74 = tpu.strided_load %arg17[%c208, %c0_53] {strides = array<i32: 2, 1>} : memref<256x32xf32, #tpu.memory_space<vmem>>, vector<8x32xf32>
    %c209 = arith.constant 209 : index
    %c0_54 = arith.constant 0 : index
    %75 = tpu.strided_load %arg17[%c209, %c0_54] {strides = array<i32: 2, 1>} : memref<256x32xf32, #tpu.memory_space<vmem>>, vector<8x32xf32>
    %76 = arith.maximumf %72, %73 : vector<8x32xf32>
    %77 = arith.maximumf %74, %75 : vector<8x32xf32>
    %78 = arith.maximumf %76, %77 : vector<8x32xf32>
    %c0_55 = arith.constant 0 : index
    %c77 = arith.constant 77 : index
    %c0_56 = arith.constant 0 : index
    %79 = vector.load %arg18[%c0_55, %c77, %c0_56] : memref<1x112x32xf32, #tpu.memory_space<vmem>>, vector<1x8x32xf32>
    %80 = vector.shape_cast %79 : vector<1x8x32xf32> to vector<8x32xf32>
    %81 = vector.shape_cast %78 : vector<8x32xf32> to vector<1x8x32xf32>
    tpu.vector_store %arg18[%c0_55, %c77, %c0_56], %81 {strides = array<i32>} : memref<1x112x32xf32, #tpu.memory_space<vmem>>, vector<1x8x32xf32>,
    %c224 = arith.constant 224 : index
    %c0_57 = arith.constant 0 : index
    %82 = tpu.strided_load %arg17[%c224, %c0_57] {strides = array<i32: 2, 1>} : memref<256x32xf32, #tpu.memory_space<vmem>>, vector<8x32xf32>
    %c225 = arith.constant 225 : index
    %c0_58 = arith.constant 0 : index
    %83 = tpu.strided_load %arg17[%c225, %c0_58] {strides = array<i32: 2, 1>} : memref<256x32xf32, #tpu.memory_space<vmem>>, vector<8x32xf32>
    %c240 = arith.constant 240 : index
    %c0_59 = arith.constant 0 : index
    %84 = tpu.strided_load %arg17[%c240, %c0_59] {strides = array<i32: 2, 1>} : memref<256x32xf32, #tpu.memory_space<vmem>>, vector<8x32xf32>
    %c241 = arith.constant 241 : index
    %c0_60 = arith.constant 0 : index
    %85 = tpu.strided_load %arg17[%c241, %c0_60] {strides = array<i32: 2, 1>} : memref<256x32xf32, #tpu.memory_space<vmem>>, vector<8x32xf32>
    %86 = arith.maximumf %82, %83 : vector<8x32xf32>
    %87 = arith.maximumf %84, %85 : vector<8x32xf32>
    %88 = arith.maximumf %86, %87 : vector<8x32xf32>
    %c0_61 = arith.constant 0 : index
    %c87 = arith.constant 87 : index
    %c0_62 = arith.constant 0 : index
    %89 = vector.load %arg18[%c0_61, %c87, %c0_62] : memref<1x112x32xf32, #tpu.memory_space<vmem>>, vector<1x8x32xf32>
    %90 = vector.shape_cast %89 : vector<1x8x32xf32> to vector<8x32xf32>
    %91 = vector.shape_cast %88 : vector<8x32xf32> to vector<1x8x32xf32>
    tpu.vector_store %arg18[%c0_61, %c87, %c0_62], %91 {strides = array<i32>} : memref<1x112x32xf32, #tpu.memory_space<vmem>>, vector<1x8x32xf32>,
    %c0_63 = arith.constant 0 : index
    %c0_64 = arith.constant 0 : index
    %92 = vector.load %arg5[%c0_63, %c0_64] : memref<1x64xf32, #tpu.memory_space<vmem>>, vector<1x64xf32>
    %c0_65 = arith.constant 0 : index
    %c0_66 = arith.constant 0 : index
    %93 = vector.load %arg7[%c0_65, %c0_66] : memref<32x64xbf16, #tpu.memory_space<vmem>>, vector<32x64xbf16>
    %c0_67 = arith.constant 0 : index
    %c0_68 = arith.constant 0 : index
    %94 = vector.load %arg8[%c0_67, %c0_68] : memref<1x64xf32, #tpu.memory_space<vmem>>, vector<1x64xf32>
    %cst_69 = arith.constant 0.000000e+00 : f32
    %95 = vector.broadcast %cst_69 : f32 to vector<80x64xf32>
    %c0_70 = arith.constant 0 : index
    %c5 = arith.constant 5 : index
    %c0_71 = arith.constant 0 : index
    %96 = vector.load %arg18[%c0_70, %c5, %c0_71] : memref<1x112x32xf32, #tpu.memory_space<vmem>>, vector<1x80x32xf32>
    %97 = vector.shape_cast %96 : vector<1x80x32xf32> to vector<80x32xf32>
    %98 = arith.truncf %97 : vector<80x32xf32> to vector<80x32xbf16>
    %c0_72 = arith.constant 0 : index
    %c0_73 = arith.constant 0 : index
    %c0_74 = arith.constant 0 : index
    %99 = vector.load %arg4[%c0_72, %c0_73, %c0_74] : memref<9x32x64xbf16, #tpu.memory_space<vmem>>, vector<1x32x64xbf16>
    %100 = vector.shape_cast %99 : vector<1x32x64xbf16> to vector<32x64xbf16>
    %cst_75 = arith.constant dense<0.000000e+00> : vector<80x64xf32>
    %101 = tpu.matmul %98, %100, %cst_75 {dimension_numbers = #tpu.dot_dimension_numbers<[1], [0], [0], [1], [0, 0, 1, 1], [], []>} : vector<80x32xbf16>, vector<32x64xbf16>, vector<80x64xf32> -> vector<80x64xf32>
    %102 = arith.addf %95, %101 : vector<80x64xf32>
    %c0_76 = arith.constant 0 : index
    %c6 = arith.constant 6 : index
    %c0_77 = arith.constant 0 : index
    %103 = vector.load %arg18[%c0_76, %c6, %c0_77] : memref<1x112x32xf32, #tpu.memory_space<vmem>>, vector<1x80x32xf32>
    %104 = vector.shape_cast %103 : vector<1x80x32xf32> to vector<80x32xf32>
    %105 = arith.truncf %104 : vector<80x32xf32> to vector<80x32xbf16>
    %c1_78 = arith.constant 1 : index
    %c0_79 = arith.constant 0 : index
    %c0_80 = arith.constant 0 : index
    %106 = vector.load %arg4[%c1_78, %c0_79, %c0_80] : memref<9x32x64xbf16, #tpu.memory_space<vmem>>, vector<1x32x64xbf16>
    %107 = vector.shape_cast %106 : vector<1x32x64xbf16> to vector<32x64xbf16>
    %cst_81 = arith.constant dense<0.000000e+00> : vector<80x64xf32>
    %108 = tpu.matmul %105, %107, %cst_81 {dimension_numbers = #tpu.dot_dimension_numbers<[1], [0], [0], [1], [0, 0, 1, 1], [], []>} : vector<80x32xbf16>, vector<32x64xbf16>, vector<80x64xf32> -> vector<80x64xf32>
    %109 = arith.addf %102, %108 : vector<80x64xf32>
    %c0_82 = arith.constant 0 : index
    %c7 = arith.constant 7 : index
    %c0_83 = arith.constant 0 : index
    %110 = vector.load %arg18[%c0_82, %c7, %c0_83] : memref<1x112x32xf32, #tpu.memory_space<vmem>>, vector<1x80x32xf32>
    %111 = vector.shape_cast %110 : vector<1x80x32xf32> to vector<80x32xf32>
    %112 = arith.truncf %111 : vector<80x32xf32> to vector<80x32xbf16>
    %c2 = arith.constant 2 : index
    %c0_84 = arith.constant 0 : index
    %c0_85 = arith.constant 0 : index
    %113 = vector.load %arg4[%c2, %c0_84, %c0_85] : memref<9x32x64xbf16, #tpu.memory_space<vmem>>, vector<1x32x64xbf16>
    %114 = vector.shape_cast %113 : vector<1x32x64xbf16> to vector<32x64xbf16>
    %cst_86 = arith.constant dense<0.000000e+00> : vector<80x64xf32>
    %115 = tpu.matmul %112, %114, %cst_86 {dimension_numbers = #tpu.dot_dimension_numbers<[1], [0], [0], [1], [0, 0, 1, 1], [], []>} : vector<80x32xbf16>, vector<32x64xbf16>, vector<80x64xf32> -> vector<80x64xf32>
    %116 = arith.addf %109, %115 : vector<80x64xf32>
    %c0_87 = arith.constant 0 : index
    %c15 = arith.constant 15 : index
    %c0_88 = arith.constant 0 : index
    %117 = vector.load %arg18[%c0_87, %c15, %c0_88] : memref<1x112x32xf32, #tpu.memory_space<vmem>>, vector<1x80x32xf32>
    %118 = vector.shape_cast %117 : vector<1x80x32xf32> to vector<80x32xf32>
    %119 = arith.truncf %118 : vector<80x32xf32> to vector<80x32xbf16>
    %c3 = arith.constant 3 : index
    %c0_89 = arith.constant 0 : index
    %c0_90 = arith.constant 0 : index
    %120 = vector.load %arg4[%c3, %c0_89, %c0_90] : memref<9x32x64xbf16, #tpu.memory_space<vmem>>, vector<1x32x64xbf16>
    %121 = vector.shape_cast %120 : vector<1x32x64xbf16> to vector<32x64xbf16>
    %cst_91 = arith.constant dense<0.000000e+00> : vector<80x64xf32>
    %122 = tpu.matmul %119, %121, %cst_91 {dimension_numbers = #tpu.dot_dimension_numbers<[1], [0], [0], [1], [0, 0, 1, 1], [], []>} : vector<80x32xbf16>, vector<32x64xbf16>, vector<80x64xf32> -> vector<80x64xf32>
    %123 = arith.addf %116, %122 : vector<80x64xf32>
    %c0_92 = arith.constant 0 : index
    %c16_93 = arith.constant 16 : index
    %c0_94 = arith.constant 0 : index
    %124 = vector.load %arg18[%c0_92, %c16_93, %c0_94] : memref<1x112x32xf32, #tpu.memory_space<vmem>>, vector<1x80x32xf32>
    %125 = vector.shape_cast %124 : vector<1x80x32xf32> to vector<80x32xf32>
    %126 = arith.truncf %125 : vector<80x32xf32> to vector<80x32xbf16>
    %c4 = arith.constant 4 : index
    %c0_95 = arith.constant 0 : index
    %c0_96 = arith.constant 0 : index
    %127 = vector.load %arg4[%c4, %c0_95, %c0_96] : memref<9x32x64xbf16, #tpu.memory_space<vmem>>, vector<1x32x64xbf16>
    %128 = vector.shape_cast %127 : vector<1x32x64xbf16> to vector<32x64xbf16>
    %cst_97 = arith.constant dense<0.000000e+00> : vector<80x64xf32>
    %129 = tpu.matmul %126, %128, %cst_97 {dimension_numbers = #tpu.dot_dimension_numbers<[1], [0], [0], [1], [0, 0, 1, 1], [], []>} : vector<80x32xbf16>, vector<32x64xbf16>, vector<80x64xf32> -> vector<80x64xf32>
    %130 = arith.addf %123, %129 : vector<80x64xf32>
    %c0_98 = arith.constant 0 : index
    %c17_99 = arith.constant 17 : index
    %c0_100 = arith.constant 0 : index
    %131 = vector.load %arg18[%c0_98, %c17_99, %c0_100] : memref<1x112x32xf32, #tpu.memory_space<vmem>>, vector<1x80x32xf32>
    %132 = vector.shape_cast %131 : vector<1x80x32xf32> to vector<80x32xf32>
    %133 = arith.truncf %132 : vector<80x32xf32> to vector<80x32xbf16>
    %c5_101 = arith.constant 5 : index
    %c0_102 = arith.constant 0 : index
    %c0_103 = arith.constant 0 : index
    %134 = vector.load %arg4[%c5_101, %c0_102, %c0_103] : memref<9x32x64xbf16, #tpu.memory_space<vmem>>, vector<1x32x64xbf16>
    %135 = vector.shape_cast %134 : vector<1x32x64xbf16> to vector<32x64xbf16>
    %cst_104 = arith.constant dense<0.000000e+00> : vector<80x64xf32>
    %136 = tpu.matmul %133, %135, %cst_104 {dimension_numbers = #tpu.dot_dimension_numbers<[1], [0], [0], [1], [0, 0, 1, 1], [], []>} : vector<80x32xbf16>, vector<32x64xbf16>, vector<80x64xf32> -> vector<80x64xf32>
    %137 = arith.addf %130, %136 : vector<80x64xf32>
    %c0_105 = arith.constant 0 : index
    %c25 = arith.constant 25 : index
    %c0_106 = arith.constant 0 : index
    %138 = vector.load %arg18[%c0_105, %c25, %c0_106] : memref<1x112x32xf32, #tpu.memory_space<vmem>>, vector<1x80x32xf32>
    %139 = vector.shape_cast %138 : vector<1x80x32xf32> to vector<80x32xf32>
    %140 = arith.truncf %139 : vector<80x32xf32> to vector<80x32xbf16>
    %c6_107 = arith.constant 6 : index
    %c0_108 = arith.constant 0 : index
    %c0_109 = arith.constant 0 : index
    %141 = vector.load %arg4[%c6_107, %c0_108, %c0_109] : memref<9x32x64xbf16, #tpu.memory_space<vmem>>, vector<1x32x64xbf16>
    %142 = vector.shape_cast %141 : vector<1x32x64xbf16> to vector<32x64xbf16>
    %cst_110 = arith.constant dense<0.000000e+00> : vector<80x64xf32>
    %143 = tpu.matmul %140, %142, %cst_110 {dimension_numbers = #tpu.dot_dimension_numbers<[1], [0], [0], [1], [0, 0, 1, 1], [], []>} : vector<80x32xbf16>, vector<32x64xbf16>, vector<80x64xf32> -> vector<80x64xf32>
    %144 = arith.addf %137, %143 : vector<80x64xf32>
    %c0_111 = arith.constant 0 : index
    %c26 = arith.constant 26 : index
    %c0_112 = arith.constant 0 : index
    %145 = vector.load %arg18[%c0_111, %c26, %c0_112] : memref<1x112x32xf32, #tpu.memory_space<vmem>>, vector<1x80x32xf32>
    %146 = vector.shape_cast %145 : vector<1x80x32xf32> to vector<80x32xf32>
    %147 = arith.truncf %146 : vector<80x32xf32> to vector<80x32xbf16>
    %c7_113 = arith.constant 7 : index
    %c0_114 = arith.constant 0 : index
    %c0_115 = arith.constant 0 : index
    %148 = vector.load %arg4[%c7_113, %c0_114, %c0_115] : memref<9x32x64xbf16, #tpu.memory_space<vmem>>, vector<1x32x64xbf16>
    %149 = vector.shape_cast %148 : vector<1x32x64xbf16> to vector<32x64xbf16>
    %cst_116 = arith.constant dense<0.000000e+00> : vector<80x64xf32>
    %150 = tpu.matmul %147, %149, %cst_116 {dimension_numbers = #tpu.dot_dimension_numbers<[1], [0], [0], [1], [0, 0, 1, 1], [], []>} : vector<80x32xbf16>, vector<32x64xbf16>, vector<80x64xf32> -> vector<80x64xf32>
    %151 = arith.addf %144, %150 : vector<80x64xf32>
    %c0_117 = arith.constant 0 : index
    %c27_118 = arith.constant 27 : index
    %c0_119 = arith.constant 0 : index
    %152 = vector.load %arg18[%c0_117, %c27_118, %c0_119] : memref<1x112x32xf32, #tpu.memory_space<vmem>>, vector<1x80x32xf32>
    %153 = vector.shape_cast %152 : vector<1x80x32xf32> to vector<80x32xf32>
    %154 = arith.truncf %153 : vector<80x32xf32> to vector<80x32xbf16>
    %c8 = arith.constant 8 : index
    %c0_120 = arith.constant 0 : index
    %c0_121 = arith.constant 0 : index
    %155 = vector.load %arg4[%c8, %c0_120, %c0_121] : memref<9x32x64xbf16, #tpu.memory_space<vmem>>, vector<1x32x64xbf16>
    %156 = vector.shape_cast %155 : vector<1x32x64xbf16> to vector<32x64xbf16>
    %cst_122 = arith.constant dense<0.000000e+00> : vector<80x64xf32>
    %157 = tpu.matmul %154, %156, %cst_122 {dimension_numbers = #tpu.dot_dimension_numbers<[1], [0], [0], [1], [0, 0, 1, 1], [], []>} : vector<80x32xbf16>, vector<32x64xbf16>, vector<80x64xf32> -> vector<80x64xf32>
    %158 = arith.addf %151, %157 : vector<80x64xf32>
    %159 = tpu.iota {dimensions = array<i32: 0>} : vector<80x64xi32>
    %160 = arith.sitofp %159 : vector<80x64xi32> to vector<80x64xf32>
    %cst_123 = arith.constant 1.000000e+01 : f32
    %161 = vector.broadcast %cst_123 : f32 to vector<80x64xf32>
    %162 = arith.divf %160, %161 : vector<80x64xf32>
    %163 = math.floor %162 : vector<80x64xf32>
    %cst_124 = arith.constant 1.000000e+01 : f32
    %164 = vector.broadcast %cst_124 : f32 to vector<80x64xf32>
    %165 = arith.mulf %163, %164 : vector<80x64xf32>
    %166 = arith.subf %160, %165 : vector<80x64xf32>
    %cst_125 = arith.constant 5.000000e-01 : f32
    %167 = vector.broadcast %cst_125 : f32 to vector<80x64xf32>
    %168 = arith.cmpf ogt, %166, %167 : vector<80x64xf32>
    %cst_126 = arith.constant 8.500000e+00 : f32
    %169 = vector.broadcast %cst_126 : f32 to vector<80x64xf32>
    %170 = arith.cmpf olt, %166, %169 : vector<80x64xf32>
    %171 = arith.andi %168, %170 : vector<80x64xi1>
    %172 = vector.broadcast %92 : vector<1x64xf32> to vector<80x64xf32>
    %173 = arith.addf %158, %172 : vector<80x64xf32>
    %cst_127 = arith.constant 0.000000e+00 : f32
    %174 = vector.broadcast %cst_127 : f32 to vector<80x64xf32>
    %175 = arith.maximumf %173, %174 : vector<80x64xf32>
    %cst_128 = arith.constant 0.000000e+00 : f32
    %176 = vector.broadcast %cst_128 : f32 to vector<80x64xf32>
    %177 = arith.select %171, %175, %176 : vector<80x64xi1>, vector<80x64xf32>
    %cst_129 = arith.constant 0.000000e+00 : f32
    %178 = vector.broadcast %cst_129 : f32 to vector<16x64xf32>
    %c0_130 = arith.constant 0 : index
    %c0_131 = arith.constant 0 : index
    %c0_132 = arith.constant 0 : index
    %179 = vector.load %arg19[%c0_130, %c0_131, %c0_132] : memref<1x112x64xf32, #tpu.memory_space<vmem>>, vector<1x16x64xf32>
    %180 = vector.shape_cast %179 : vector<1x16x64xf32> to vector<16x64xf32>
    %181 = vector.shape_cast %178 : vector<16x64xf32> to vector<1x16x64xf32>
    tpu.vector_store %arg19[%c0_130, %c0_131, %c0_132], %181 {strides = array<i32>} : memref<1x112x64xf32, #tpu.memory_space<vmem>>, vector<1x16x64xf32>,
    %c0_133 = arith.constant 0 : index
    %c96_134 = arith.constant 96 : index
    %c0_135 = arith.constant 0 : index
    %182 = vector.load %arg19[%c0_133, %c96_134, %c0_135] : memref<1x112x64xf32, #tpu.memory_space<vmem>>, vector<1x16x64xf32>
    %183 = vector.shape_cast %182 : vector<1x16x64xf32> to vector<16x64xf32>
    %184 = vector.shape_cast %178 : vector<16x64xf32> to vector<1x16x64xf32>
    tpu.vector_store %arg19[%c0_133, %c96_134, %c0_135], %184 {strides = array<i32>} : memref<1x112x64xf32, #tpu.memory_space<vmem>>, vector<1x16x64xf32>,
    %c0_136 = arith.constant 0 : index
    %c16_137 = arith.constant 16 : index
    %c0_138 = arith.constant 0 : index
    %185 = vector.load %arg19[%c0_136, %c16_137, %c0_138] : memref<1x112x64xf32, #tpu.memory_space<vmem>>, vector<1x80x64xf32>
    %186 = vector.shape_cast %185 : vector<1x80x64xf32> to vector<80x64xf32>
    %187 = vector.shape_cast %177 : vector<80x64xf32> to vector<1x80x64xf32>
    tpu.vector_store %arg19[%c0_136, %c16_137, %c0_138], %187 {strides = array<i32>} : memref<1x112x64xf32, #tpu.memory_space<vmem>>, vector<1x80x64xf32>,
    %c0_139 = arith.constant 0 : index
    %c16_140 = arith.constant 16 : index
    %c0_141 = arith.constant 0 : index
    %188 = vector.load %arg18[%c0_139, %c16_140, %c0_141] : memref<1x112x32xf32, #tpu.memory_space<vmem>>, vector<1x80x32xf32>
    %189 = vector.shape_cast %188 : vector<1x80x32xf32> to vector<80x32xf32>
    %190 = arith.truncf %189 : vector<80x32xf32> to vector<80x32xbf16>
    %cst_142 = arith.constant dense<0.000000e+00> : vector<80x64xf32>
    %191 = tpu.matmul %190, %93, %cst_142 {dimension_numbers = #tpu.dot_dimension_numbers<[1], [0], [0], [1], [0, 0, 1, 1], [], []>} : vector<80x32xbf16>, vector<32x64xbf16>, vector<80x64xf32> -> vector<80x64xf32>
    %c0_143 = arith.constant 0 : index
    %c5_144 = arith.constant 5 : index
    %c0_145 = arith.constant 0 : index
    %192 = vector.load %arg19[%c0_143, %c5_144, %c0_145] : memref<1x112x64xf32, #tpu.memory_space<vmem>>, vector<1x80x64xf32>
    %193 = vector.shape_cast %192 : vector<1x80x64xf32> to vector<80x64xf32>
    %194 = arith.truncf %193 : vector<80x64xf32> to vector<80x64xbf16>
    %c0_146 = arith.constant 0 : index
    %c0_147 = arith.constant 0 : index
    %c0_148 = arith.constant 0 : index
    %195 = vector.load %arg6[%c0_146, %c0_147, %c0_148] : memref<9x64x64xbf16, #tpu.memory_space<vmem>>, vector<1x64x64xbf16>
    %196 = vector.shape_cast %195 : vector<1x64x64xbf16> to vector<64x64xbf16>
    %cst_149 = arith.constant dense<0.000000e+00> : vector<80x64xf32>
    %197 = tpu.matmul %194, %196, %cst_149 {dimension_numbers = #tpu.dot_dimension_numbers<[1], [0], [0], [1], [0, 0, 1, 1], [], []>} : vector<80x64xbf16>, vector<64x64xbf16>, vector<80x64xf32> -> vector<80x64xf32>
    %198 = arith.addf %191, %197 : vector<80x64xf32>
    %c0_150 = arith.constant 0 : index
    %c6_151 = arith.constant 6 : index
    %c0_152 = arith.constant 0 : index
    %199 = vector.load %arg19[%c0_150, %c6_151, %c0_152] : memref<1x112x64xf32, #tpu.memory_space<vmem>>, vector<1x80x64xf32>
    %200 = vector.shape_cast %199 : vector<1x80x64xf32> to vector<80x64xf32>
    %201 = arith.truncf %200 : vector<80x64xf32> to vector<80x64xbf16>
    %c1_153 = arith.constant 1 : index
    %c0_154 = arith.constant 0 : index
    %c0_155 = arith.constant 0 : index
    %202 = vector.load %arg6[%c1_153, %c0_154, %c0_155] : memref<9x64x64xbf16, #tpu.memory_space<vmem>>, vector<1x64x64xbf16>
    %203 = vector.shape_cast %202 : vector<1x64x64xbf16> to vector<64x64xbf16>
    %cst_156 = arith.constant dense<0.000000e+00> : vector<80x64xf32>
    %204 = tpu.matmul %201, %203, %cst_156 {dimension_numbers = #tpu.dot_dimension_numbers<[1], [0], [0], [1], [0, 0, 1, 1], [], []>} : vector<80x64xbf16>, vector<64x64xbf16>, vector<80x64xf32> -> vector<80x64xf32>
    %205 = arith.addf %198, %204 : vector<80x64xf32>
    %c0_157 = arith.constant 0 : index
    %c7_158 = arith.constant 7 : index
    %c0_159 = arith.constant 0 : index
    %206 = vector.load %arg19[%c0_157, %c7_158, %c0_159] : memref<1x112x64xf32, #tpu.memory_space<vmem>>, vector<1x80x64xf32>
    %207 = vector.shape_cast %206 : vector<1x80x64xf32> to vector<80x64xf32>
    %208 = arith.truncf %207 : vector<80x64xf32> to vector<80x64xbf16>
    %c2_160 = arith.constant 2 : index
    %c0_161 = arith.constant 0 : index
    %c0_162 = arith.constant 0 : index
    %209 = vector.load %arg6[%c2_160, %c0_161, %c0_162] : memref<9x64x64xbf16, #tpu.memory_space<vmem>>, vector<1x64x64xbf16>
    %210 = vector.shape_cast %209 : vector<1x64x64xbf16> to vector<64x64xbf16>
    %cst_163 = arith.constant dense<0.000000e+00> : vector<80x64xf32>
    %211 = tpu.matmul %208, %210, %cst_163 {dimension_numbers = #tpu.dot_dimension_numbers<[1], [0], [0], [1], [0, 0, 1, 1], [], []>} : vector<80x64xbf16>, vector<64x64xbf16>, vector<80x64xf32> -> vector<80x64xf32>
    %212 = arith.addf %205, %211 : vector<80x64xf32>
    %c0_164 = arith.constant 0 : index
    %c15_165 = arith.constant 15 : index
    %c0_166 = arith.constant 0 : index
    %213 = vector.load %arg19[%c0_164, %c15_165, %c0_166] : memref<1x112x64xf32, #tpu.memory_space<vmem>>, vector<1x80x64xf32>
    %214 = vector.shape_cast %213 : vector<1x80x64xf32> to vector<80x64xf32>
    %215 = arith.truncf %214 : vector<80x64xf32> to vector<80x64xbf16>
    %c3_167 = arith.constant 3 : index
    %c0_168 = arith.constant 0 : index
    %c0_169 = arith.constant 0 : index
    %216 = vector.load %arg6[%c3_167, %c0_168, %c0_169] : memref<9x64x64xbf16, #tpu.memory_space<vmem>>, vector<1x64x64xbf16>
    %217 = vector.shape_cast %216 : vector<1x64x64xbf16> to vector<64x64xbf16>
    %cst_170 = arith.constant dense<0.000000e+00> : vector<80x64xf32>
    %218 = tpu.matmul %215, %217, %cst_170 {dimension_numbers = #tpu.dot_dimension_numbers<[1], [0], [0], [1], [0, 0, 1, 1], [], []>} : vector<80x64xbf16>, vector<64x64xbf16>, vector<80x64xf32> -> vector<80x64xf32>
    %219 = arith.addf %212, %218 : vector<80x64xf32>
    %c0_171 = arith.constant 0 : index
    %c16_172 = arith.constant 16 : index
    %c0_173 = arith.constant 0 : index
    %220 = vector.load %arg19[%c0_171, %c16_172, %c0_173] : memref<1x112x64xf32, #tpu.memory_space<vmem>>, vector<1x80x64xf32>
    %221 = vector.shape_cast %220 : vector<1x80x64xf32> to vector<80x64xf32>
    %222 = arith.truncf %221 : vector<80x64xf32> to vector<80x64xbf16>
    %c4_174 = arith.constant 4 : index
    %c0_175 = arith.constant 0 : index
    %c0_176 = arith.constant 0 : index
    %223 = vector.load %arg6[%c4_174, %c0_175, %c0_176] : memref<9x64x64xbf16, #tpu.memory_space<vmem>>, vector<1x64x64xbf16>
    %224 = vector.shape_cast %223 : vector<1x64x64xbf16> to vector<64x64xbf16>
    %cst_177 = arith.constant dense<0.000000e+00> : vector<80x64xf32>
    %225 = tpu.matmul %222, %224, %cst_177 {dimension_numbers = #tpu.dot_dimension_numbers<[1], [0], [0], [1], [0, 0, 1, 1], [], []>} : vector<80x64xbf16>, vector<64x64xbf16>, vector<80x64xf32> -> vector<80x64xf32>
    %226 = arith.addf %219, %225 : vector<80x64xf32>
    %c0_178 = arith.constant 0 : index
    %c17_179 = arith.constant 17 : index
    %c0_180 = arith.constant 0 : index
    %227 = vector.load %arg19[%c0_178, %c17_179, %c0_180] : memref<1x112x64xf32, #tpu.memory_space<vmem>>, vector<1x80x64xf32>
    %228 = vector.shape_cast %227 : vector<1x80x64xf32> to vector<80x64xf32>
    %229 = arith.truncf %228 : vector<80x64xf32> to vector<80x64xbf16>
    %c5_181 = arith.constant 5 : index
    %c0_182 = arith.constant 0 : index
    %c0_183 = arith.constant 0 : index
    %230 = vector.load %arg6[%c5_181, %c0_182, %c0_183] : memref<9x64x64xbf16, #tpu.memory_space<vmem>>, vector<1x64x64xbf16>
    %231 = vector.shape_cast %230 : vector<1x64x64xbf16> to vector<64x64xbf16>
    %cst_184 = arith.constant dense<0.000000e+00> : vector<80x64xf32>
    %232 = tpu.matmul %229, %231, %cst_184 {dimension_numbers = #tpu.dot_dimension_numbers<[1], [0], [0], [1], [0, 0, 1, 1], [], []>} : vector<80x64xbf16>, vector<64x64xbf16>, vector<80x64xf32> -> vector<80x64xf32>
    %233 = arith.addf %226, %232 : vector<80x64xf32>
    %c0_185 = arith.constant 0 : index
    %c25_186 = arith.constant 25 : index
    %c0_187 = arith.constant 0 : index
    %234 = vector.load %arg19[%c0_185, %c25_186, %c0_187] : memref<1x112x64xf32, #tpu.memory_space<vmem>>, vector<1x80x64xf32>
    %235 = vector.shape_cast %234 : vector<1x80x64xf32> to vector<80x64xf32>
    %236 = arith.truncf %235 : vector<80x64xf32> to vector<80x64xbf16>
    %c6_188 = arith.constant 6 : index
    %c0_189 = arith.constant 0 : index
    %c0_190 = arith.constant 0 : index
    %237 = vector.load %arg6[%c6_188, %c0_189, %c0_190] : memref<9x64x64xbf16, #tpu.memory_space<vmem>>, vector<1x64x64xbf16>
    %238 = vector.shape_cast %237 : vector<1x64x64xbf16> to vector<64x64xbf16>
    %cst_191 = arith.constant dense<0.000000e+00> : vector<80x64xf32>
    %239 = tpu.matmul %236, %238, %cst_191 {dimension_numbers = #tpu.dot_dimension_numbers<[1], [0], [0], [1], [0, 0, 1, 1], [], []>} : vector<80x64xbf16>, vector<64x64xbf16>, vector<80x64xf32> -> vector<80x64xf32>
    %240 = arith.addf %233, %239 : vector<80x64xf32>
    %c0_192 = arith.constant 0 : index
    %c26_193 = arith.constant 26 : index
    %c0_194 = arith.constant 0 : index
    %241 = vector.load %arg19[%c0_192, %c26_193, %c0_194] : memref<1x112x64xf32, #tpu.memory_space<vmem>>, vector<1x80x64xf32>
    %242 = vector.shape_cast %241 : vector<1x80x64xf32> to vector<80x64xf32>
    %243 = arith.truncf %242 : vector<80x64xf32> to vector<80x64xbf16>
    %c7_195 = arith.constant 7 : index
    %c0_196 = arith.constant 0 : index
    %c0_197 = arith.constant 0 : index
    %244 = vector.load %arg6[%c7_195, %c0_196, %c0_197] : memref<9x64x64xbf16, #tpu.memory_space<vmem>>, vector<1x64x64xbf16>
    %245 = vector.shape_cast %244 : vector<1x64x64xbf16> to vector<64x64xbf16>
    %cst_198 = arith.constant dense<0.000000e+00> : vector<80x64xf32>
    %246 = tpu.matmul %243, %245, %cst_198 {dimension_numbers = #tpu.dot_dimension_numbers<[1], [0], [0], [1], [0, 0, 1, 1], [], []>} : vector<80x64xbf16>, vector<64x64xbf16>, vector<80x64xf32> -> vector<80x64xf32>
    %247 = arith.addf %240, %246 : vector<80x64xf32>
    %c0_199 = arith.constant 0 : index
    %c27_200 = arith.constant 27 : index
    %c0_201 = arith.constant 0 : index
    %248 = vector.load %arg19[%c0_199, %c27_200, %c0_201] : memref<1x112x64xf32, #tpu.memory_space<vmem>>, vector<1x80x64xf32>
    %249 = vector.shape_cast %248 : vector<1x80x64xf32> to vector<80x64xf32>
    %250 = arith.truncf %249 : vector<80x64xf32> to vector<80x64xbf16>
    %c8_202 = arith.constant 8 : index
    %c0_203 = arith.constant 0 : index
    %c0_204 = arith.constant 0 : index
    %251 = vector.load %arg6[%c8_202, %c0_203, %c0_204] : memref<9x64x64xbf16, #tpu.memory_space<vmem>>, vector<1x64x64xbf16>
    %252 = vector.shape_cast %251 : vector<1x64x64xbf16> to vector<64x64xbf16>
    %cst_205 = arith.constant dense<0.000000e+00> : vector<80x64xf32>
    %253 = tpu.matmul %250, %252, %cst_205 {dimension_numbers = #tpu.dot_dimension_numbers<[1], [0], [0], [1], [0, 0, 1, 1], [], []>} : vector<80x64xbf16>, vector<64x64xbf16>, vector<80x64xf32> -> vector<80x64xf32>
    %254 = arith.addf %247, %253 : vector<80x64xf32>
    %255 = tpu.iota {dimensions = array<i32: 0>} : vector<80x64xi32>
    %256 = arith.sitofp %255 : vector<80x64xi32> to vector<80x64xf32>
    %cst_206 = arith.constant 1.000000e+01 : f32
    %257 = vector.broadcast %cst_206 : f32 to vector<80x64xf32>
    %258 = arith.divf %256, %257 : vector<80x64xf32>
    %259 = math.floor %258 : vector<80x64xf32>
    %cst_207 = arith.constant 1.000000e+01 : f32
    %260 = vector.broadcast %cst_207 : f32 to vector<80x64xf32>
    %261 = arith.mulf %259, %260 : vector<80x64xf32>
    %262 = arith.subf %256, %261 : vector<80x64xf32>
    %cst_208 = arith.constant 5.000000e-01 : f32
    %263 = vector.broadcast %cst_208 : f32 to vector<80x64xf32>
    %264 = arith.cmpf ogt, %262, %263 : vector<80x64xf32>
    %cst_209 = arith.constant 8.500000e+00 : f32
    %265 = vector.broadcast %cst_209 : f32 to vector<80x64xf32>
    %266 = arith.cmpf olt, %262, %265 : vector<80x64xf32>
    %267 = arith.andi %264, %266 : vector<80x64xi1>
    %268 = vector.broadcast %94 : vector<1x64xf32> to vector<80x64xf32>
    %269 = arith.addf %254, %268 : vector<80x64xf32>
    %cst_210 = arith.constant 0.000000e+00 : f32
    %270 = vector.broadcast %cst_210 : f32 to vector<80x64xf32>
    %271 = arith.maximumf %269, %270 : vector<80x64xf32>
    %cst_211 = arith.constant 0.000000e+00 : f32
    %272 = vector.broadcast %cst_211 : f32 to vector<80x64xf32>
    %273 = arith.select %267, %271, %272 : vector<80x64xi1>, vector<80x64xf32>
    %cst_212 = arith.constant 0.000000e+00 : f32
    %274 = vector.broadcast %cst_212 : f32 to vector<16x64xf32>
    %c0_213 = arith.constant 0 : index
    %c0_214 = arith.constant 0 : index
    %c0_215 = arith.constant 0 : index
    %275 = vector.load %arg20[%c0_213, %c0_214, %c0_215] : memref<1x112x64xf32, #tpu.memory_space<vmem>>, vector<1x16x64xf32>
    %276 = vector.shape_cast %275 : vector<1x16x64xf32> to vector<16x64xf32>
    %277 = vector.shape_cast %274 : vector<16x64xf32> to vector<1x16x64xf32>
    tpu.vector_store %arg20[%c0_213, %c0_214, %c0_215], %277 {strides = array<i32>} : memref<1x112x64xf32, #tpu.memory_space<vmem>>, vector<1x16x64xf32>,
    %c0_216 = arith.constant 0 : index
    %c96_217 = arith.constant 96 : index
    %c0_218 = arith.constant 0 : index
    %278 = vector.load %arg20[%c0_216, %c96_217, %c0_218] : memref<1x112x64xf32, #tpu.memory_space<vmem>>, vector<1x16x64xf32>
    %279 = vector.shape_cast %278 : vector<1x16x64xf32> to vector<16x64xf32>
    %280 = vector.shape_cast %274 : vector<16x64xf32> to vector<1x16x64xf32>
    tpu.vector_store %arg20[%c0_216, %c96_217, %c0_218], %280 {strides = array<i32>} : memref<1x112x64xf32, #tpu.memory_space<vmem>>, vector<1x16x64xf32>,
    %c0_219 = arith.constant 0 : index
    %c16_220 = arith.constant 16 : index
    %c0_221 = arith.constant 0 : index
    %281 = vector.load %arg20[%c0_219, %c16_220, %c0_221] : memref<1x112x64xf32, #tpu.memory_space<vmem>>, vector<1x80x64xf32>
    %282 = vector.shape_cast %281 : vector<1x80x64xf32> to vector<80x64xf32>
    %283 = vector.shape_cast %273 : vector<80x64xf32> to vector<1x80x64xf32>
    tpu.vector_store %arg20[%c0_219, %c16_220, %c0_221], %283 {strides = array<i32>} : memref<1x112x64xf32, #tpu.memory_space<vmem>>, vector<1x80x64xf32>,
    %c0_222 = arith.constant 0 : index
    %c0_223 = arith.constant 0 : index
    %284 = vector.load %arg10[%c0_222, %c0_223] : memref<1x128xf32, #tpu.memory_space<vmem>>, vector<1x128xf32>
    %c0_224 = arith.constant 0 : index
    %c0_225 = arith.constant 0 : index
    %285 = vector.load %arg12[%c0_224, %c0_225] : memref<64x128xbf16, #tpu.memory_space<vmem>>, vector<64x128xbf16>
    %c0_226 = arith.constant 0 : index
    %c0_227 = arith.constant 0 : index
    %286 = vector.load %arg13[%c0_226, %c0_227] : memref<1x128xf32, #tpu.memory_space<vmem>>, vector<1x128xf32>
    %cst_228 = arith.constant 0.000000e+00 : f32
    %287 = vector.broadcast %cst_228 : f32 to vector<80x128xf32>
    %c0_229 = arith.constant 0 : index
    %c5_230 = arith.constant 5 : index
    %c0_231 = arith.constant 0 : index
    %288 = vector.load %arg20[%c0_229, %c5_230, %c0_231] : memref<1x112x64xf32, #tpu.memory_space<vmem>>, vector<1x80x64xf32>
    %289 = vector.shape_cast %288 : vector<1x80x64xf32> to vector<80x64xf32>
    %290 = arith.truncf %289 : vector<80x64xf32> to vector<80x64xbf16>
    %c0_232 = arith.constant 0 : index
    %c0_233 = arith.constant 0 : index
    %c0_234 = arith.constant 0 : index
    %291 = vector.load %arg9[%c0_232, %c0_233, %c0_234] : memref<9x64x128xbf16, #tpu.memory_space<vmem>>, vector<1x64x128xbf16>
    %292 = vector.shape_cast %291 : vector<1x64x128xbf16> to vector<64x128xbf16>
    %cst_235 = arith.constant dense<0.000000e+00> : vector<80x128xf32>
    %293 = tpu.matmul %290, %292, %cst_235 {dimension_numbers = #tpu.dot_dimension_numbers<[1], [0], [0], [1], [0, 0, 1, 1], [], []>} : vector<80x64xbf16>, vector<64x128xbf16>, vector<80x128xf32> -> vector<80x128xf32>
    %294 = arith.addf %287, %293 : vector<80x128xf32>
    %c0_236 = arith.constant 0 : index
    %c6_237 = arith.constant 6 : index
    %c0_238 = arith.constant 0 : index
    %295 = vector.load %arg20[%c0_236, %c6_237, %c0_238] : memref<1x112x64xf32, #tpu.memory_space<vmem>>, vector<1x80x64xf32>
    %296 = vector.shape_cast %295 : vector<1x80x64xf32> to vector<80x64xf32>
    %297 = arith.truncf %296 : vector<80x64xf32> to vector<80x64xbf16>
    %c1_239 = arith.constant 1 : index
    %c0_240 = arith.constant 0 : index
    %c0_241 = arith.constant 0 : index
    %298 = vector.load %arg9[%c1_239, %c0_240, %c0_241] : memref<9x64x128xbf16, #tpu.memory_space<vmem>>, vector<1x64x128xbf16>
    %299 = vector.shape_cast %298 : vector<1x64x128xbf16> to vector<64x128xbf16>
    %cst_242 = arith.constant dense<0.000000e+00> : vector<80x128xf32>
    %300 = tpu.matmul %297, %299, %cst_242 {dimension_numbers = #tpu.dot_dimension_numbers<[1], [0], [0], [1], [0, 0, 1, 1], [], []>} : vector<80x64xbf16>, vector<64x128xbf16>, vector<80x128xf32> -> vector<80x128xf32>
    %301 = arith.addf %294, %300 : vector<80x128xf32>
    %c0_243 = arith.constant 0 : index
    %c7_244 = arith.constant 7 : index
    %c0_245 = arith.constant 0 : index
    %302 = vector.load %arg20[%c0_243, %c7_244, %c0_245] : memref<1x112x64xf32, #tpu.memory_space<vmem>>, vector<1x80x64xf32>
    %303 = vector.shape_cast %302 : vector<1x80x64xf32> to vector<80x64xf32>
    %304 = arith.truncf %303 : vector<80x64xf32> to vector<80x64xbf16>
    %c2_246 = arith.constant 2 : index
    %c0_247 = arith.constant 0 : index
    %c0_248 = arith.constant 0 : index
    %305 = vector.load %arg9[%c2_246, %c0_247, %c0_248] : memref<9x64x128xbf16, #tpu.memory_space<vmem>>, vector<1x64x128xbf16>
    %306 = vector.shape_cast %305 : vector<1x64x128xbf16> to vector<64x128xbf16>
    %cst_249 = arith.constant dense<0.000000e+00> : vector<80x128xf32>
    %307 = tpu.matmul %304, %306, %cst_249 {dimension_numbers = #tpu.dot_dimension_numbers<[1], [0], [0], [1], [0, 0, 1, 1], [], []>} : vector<80x64xbf16>, vector<64x128xbf16>, vector<80x128xf32> -> vector<80x128xf32>
    %308 = arith.addf %301, %307 : vector<80x128xf32>
    %c0_250 = arith.constant 0 : index
    %c15_251 = arith.constant 15 : index
    %c0_252 = arith.constant 0 : index
    %309 = vector.load %arg20[%c0_250, %c15_251, %c0_252] : memref<1x112x64xf32, #tpu.memory_space<vmem>>, vector<1x80x64xf32>
    %310 = vector.shape_cast %309 : vector<1x80x64xf32> to vector<80x64xf32>
    %311 = arith.truncf %310 : vector<80x64xf32> to vector<80x64xbf16>
    %c3_253 = arith.constant 3 : index
    %c0_254 = arith.constant 0 : index
    %c0_255 = arith.constant 0 : index
    %312 = vector.load %arg9[%c3_253, %c0_254, %c0_255] : memref<9x64x128xbf16, #tpu.memory_space<vmem>>, vector<1x64x128xbf16>
    %313 = vector.shape_cast %312 : vector<1x64x128xbf16> to vector<64x128xbf16>
    %cst_256 = arith.constant dense<0.000000e+00> : vector<80x128xf32>
    %314 = tpu.matmul %311, %313, %cst_256 {dimension_numbers = #tpu.dot_dimension_numbers<[1], [0], [0], [1], [0, 0, 1, 1], [], []>} : vector<80x64xbf16>, vector<64x128xbf16>, vector<80x128xf32> -> vector<80x128xf32>
    %315 = arith.addf %308, %314 : vector<80x128xf32>
    %c0_257 = arith.constant 0 : index
    %c16_258 = arith.constant 16 : index
    %c0_259 = arith.constant 0 : index
    %316 = vector.load %arg20[%c0_257, %c16_258, %c0_259] : memref<1x112x64xf32, #tpu.memory_space<vmem>>, vector<1x80x64xf32>
    %317 = vector.shape_cast %316 : vector<1x80x64xf32> to vector<80x64xf32>
    %318 = arith.truncf %317 : vector<80x64xf32> to vector<80x64xbf16>
    %c4_260 = arith.constant 4 : index
    %c0_261 = arith.constant 0 : index
    %c0_262 = arith.constant 0 : index
    %319 = vector.load %arg9[%c4_260, %c0_261, %c0_262] : memref<9x64x128xbf16, #tpu.memory_space<vmem>>, vector<1x64x128xbf16>
    %320 = vector.shape_cast %319 : vector<1x64x128xbf16> to vector<64x128xbf16>
    %cst_263 = arith.constant dense<0.000000e+00> : vector<80x128xf32>
    %321 = tpu.matmul %318, %320, %cst_263 {dimension_numbers = #tpu.dot_dimension_numbers<[1], [0], [0], [1], [0, 0, 1, 1], [], []>} : vector<80x64xbf16>, vector<64x128xbf16>, vector<80x128xf32> -> vector<80x128xf32>
    %322 = arith.addf %315, %321 : vector<80x128xf32>
    %c0_264 = arith.constant 0 : index
    %c17_265 = arith.constant 17 : index
    %c0_266 = arith.constant 0 : index
    %323 = vector.load %arg20[%c0_264, %c17_265, %c0_266] : memref<1x112x64xf32, #tpu.memory_space<vmem>>, vector<1x80x64xf32>
    %324 = vector.shape_cast %323 : vector<1x80x64xf32> to vector<80x64xf32>
    %325 = arith.truncf %324 : vector<80x64xf32> to vector<80x64xbf16>
    %c5_267 = arith.constant 5 : index
    %c0_268 = arith.constant 0 : index
    %c0_269 = arith.constant 0 : index
    %326 = vector.load %arg9[%c5_267, %c0_268, %c0_269] : memref<9x64x128xbf16, #tpu.memory_space<vmem>>, vector<1x64x128xbf16>
    %327 = vector.shape_cast %326 : vector<1x64x128xbf16> to vector<64x128xbf16>
    %cst_270 = arith.constant dense<0.000000e+00> : vector<80x128xf32>
    %328 = tpu.matmul %325, %327, %cst_270 {dimension_numbers = #tpu.dot_dimension_numbers<[1], [0], [0], [1], [0, 0, 1, 1], [], []>} : vector<80x64xbf16>, vector<64x128xbf16>, vector<80x128xf32> -> vector<80x128xf32>
    %329 = arith.addf %322, %328 : vector<80x128xf32>
    %c0_271 = arith.constant 0 : index
    %c25_272 = arith.constant 25 : index
    %c0_273 = arith.constant 0 : index
    %330 = vector.load %arg20[%c0_271, %c25_272, %c0_273] : memref<1x112x64xf32, #tpu.memory_space<vmem>>, vector<1x80x64xf32>
    %331 = vector.shape_cast %330 : vector<1x80x64xf32> to vector<80x64xf32>
    %332 = arith.truncf %331 : vector<80x64xf32> to vector<80x64xbf16>
    %c6_274 = arith.constant 6 : index
    %c0_275 = arith.constant 0 : index
    %c0_276 = arith.constant 0 : index
    %333 = vector.load %arg9[%c6_274, %c0_275, %c0_276] : memref<9x64x128xbf16, #tpu.memory_space<vmem>>, vector<1x64x128xbf16>
    %334 = vector.shape_cast %333 : vector<1x64x128xbf16> to vector<64x128xbf16>
    %cst_277 = arith.constant dense<0.000000e+00> : vector<80x128xf32>
    %335 = tpu.matmul %332, %334, %cst_277 {dimension_numbers = #tpu.dot_dimension_numbers<[1], [0], [0], [1], [0, 0, 1, 1], [], []>} : vector<80x64xbf16>, vector<64x128xbf16>, vector<80x128xf32> -> vector<80x128xf32>
    %336 = arith.addf %329, %335 : vector<80x128xf32>
    %c0_278 = arith.constant 0 : index
    %c26_279 = arith.constant 26 : index
    %c0_280 = arith.constant 0 : index
    %337 = vector.load %arg20[%c0_278, %c26_279, %c0_280] : memref<1x112x64xf32, #tpu.memory_space<vmem>>, vector<1x80x64xf32>
    %338 = vector.shape_cast %337 : vector<1x80x64xf32> to vector<80x64xf32>
    %339 = arith.truncf %338 : vector<80x64xf32> to vector<80x64xbf16>
    %c7_281 = arith.constant 7 : index
    %c0_282 = arith.constant 0 : index
    %c0_283 = arith.constant 0 : index
    %340 = vector.load %arg9[%c7_281, %c0_282, %c0_283] : memref<9x64x128xbf16, #tpu.memory_space<vmem>>, vector<1x64x128xbf16>
    %341 = vector.shape_cast %340 : vector<1x64x128xbf16> to vector<64x128xbf16>
    %cst_284 = arith.constant dense<0.000000e+00> : vector<80x128xf32>
    %342 = tpu.matmul %339, %341, %cst_284 {dimension_numbers = #tpu.dot_dimension_numbers<[1], [0], [0], [1], [0, 0, 1, 1], [], []>} : vector<80x64xbf16>, vector<64x128xbf16>, vector<80x128xf32> -> vector<80x128xf32>
    %343 = arith.addf %336, %342 : vector<80x128xf32>
    %c0_285 = arith.constant 0 : index
    %c27_286 = arith.constant 27 : index
    %c0_287 = arith.constant 0 : index
    %344 = vector.load %arg20[%c0_285, %c27_286, %c0_287] : memref<1x112x64xf32, #tpu.memory_space<vmem>>, vector<1x80x64xf32>
    %345 = vector.shape_cast %344 : vector<1x80x64xf32> to vector<80x64xf32>
    %346 = arith.truncf %345 : vector<80x64xf32> to vector<80x64xbf16>
    %c8_288 = arith.constant 8 : index
    %c0_289 = arith.constant 0 : index
    %c0_290 = arith.constant 0 : index
    %347 = vector.load %arg9[%c8_288, %c0_289, %c0_290] : memref<9x64x128xbf16, #tpu.memory_space<vmem>>, vector<1x64x128xbf16>
    %348 = vector.shape_cast %347 : vector<1x64x128xbf16> to vector<64x128xbf16>
    %cst_291 = arith.constant dense<0.000000e+00> : vector<80x128xf32>
    %349 = tpu.matmul %346, %348, %cst_291 {dimension_numbers = #tpu.dot_dimension_numbers<[1], [0], [0], [1], [0, 0, 1, 1], [], []>} : vector<80x64xbf16>, vector<64x128xbf16>, vector<80x128xf32> -> vector<80x128xf32>
    %350 = arith.addf %343, %349 : vector<80x128xf32>
    %351 = tpu.iota {dimensions = array<i32: 0>} : vector<80x128xi32>
    %352 = arith.sitofp %351 : vector<80x128xi32> to vector<80x128xf32>
    %cst_292 = arith.constant 1.000000e+01 : f32
    %353 = vector.broadcast %cst_292 : f32 to vector<80x128xf32>
    %354 = arith.divf %352, %353 : vector<80x128xf32>
    %355 = math.floor %354 : vector<80x128xf32>
    %cst_293 = arith.constant 1.000000e+01 : f32
    %356 = vector.broadcast %cst_293 : f32 to vector<80x128xf32>
    %357 = arith.mulf %355, %356 : vector<80x128xf32>
    %358 = arith.subf %352, %357 : vector<80x128xf32>
    %cst_294 = arith.constant 5.000000e-01 : f32
    %359 = vector.broadcast %cst_294 : f32 to vector<80x128xf32>
    %360 = arith.cmpf ogt, %358, %359 : vector<80x128xf32>
    %cst_295 = arith.constant 8.500000e+00 : f32
    %361 = vector.broadcast %cst_295 : f32 to vector<80x128xf32>
    %362 = arith.cmpf olt, %358, %361 : vector<80x128xf32>
    %363 = arith.andi %360, %362 : vector<80x128xi1>
    %364 = vector.broadcast %284 : vector<1x128xf32> to vector<80x128xf32>
    %365 = arith.addf %350, %364 : vector<80x128xf32>
    %cst_296 = arith.constant 0.000000e+00 : f32
    %366 = vector.broadcast %cst_296 : f32 to vector<80x128xf32>
    %367 = arith.maximumf %365, %366 : vector<80x128xf32>
    %cst_297 = arith.constant 0.000000e+00 : f32
    %368 = vector.broadcast %cst_297 : f32 to vector<80x128xf32>
    %369 = arith.select %363, %367, %368 : vector<80x128xi1>, vector<80x128xf32>
    %cst_298 = arith.constant 0.000000e+00 : f32
    %370 = vector.broadcast %cst_298 : f32 to vector<16x128xf32>
    %c0_299 = arith.constant 0 : index
    %c0_300 = arith.constant 0 : index
    %c0_301 = arith.constant 0 : index
    %371 = vector.load %arg21[%c0_299, %c0_300, %c0_301] : memref<1x112x128xf32, #tpu.memory_space<vmem>>, vector<1x16x128xf32>
    %372 = vector.shape_cast %371 : vector<1x16x128xf32> to vector<16x128xf32>
    %373 = vector.shape_cast %370 : vector<16x128xf32> to vector<1x16x128xf32>
    tpu.vector_store %arg21[%c0_299, %c0_300, %c0_301], %373 {strides = array<i32>} : memref<1x112x128xf32, #tpu.memory_space<vmem>>, vector<1x16x128xf32>,
    %c0_302 = arith.constant 0 : index
    %c96_303 = arith.constant 96 : index
    %c0_304 = arith.constant 0 : index
    %374 = vector.load %arg21[%c0_302, %c96_303, %c0_304] : memref<1x112x128xf32, #tpu.memory_space<vmem>>, vector<1x16x128xf32>
    %375 = vector.shape_cast %374 : vector<1x16x128xf32> to vector<16x128xf32>
    %376 = vector.shape_cast %370 : vector<16x128xf32> to vector<1x16x128xf32>
    tpu.vector_store %arg21[%c0_302, %c96_303, %c0_304], %376 {strides = array<i32>} : memref<1x112x128xf32, #tpu.memory_space<vmem>>, vector<1x16x128xf32>,
    %c0_305 = arith.constant 0 : index
    %c16_306 = arith.constant 16 : index
    %c0_307 = arith.constant 0 : index
    %377 = vector.load %arg21[%c0_305, %c16_306, %c0_307] : memref<1x112x128xf32, #tpu.memory_space<vmem>>, vector<1x80x128xf32>
    %378 = vector.shape_cast %377 : vector<1x80x128xf32> to vector<80x128xf32>
    %379 = vector.shape_cast %369 : vector<80x128xf32> to vector<1x80x128xf32>
    tpu.vector_store %arg21[%c0_305, %c16_306, %c0_307], %379 {strides = array<i32>} : memref<1x112x128xf32, #tpu.memory_space<vmem>>, vector<1x80x128xf32>,
    %c0_308 = arith.constant 0 : index
    %c16_309 = arith.constant 16 : index
    %c0_310 = arith.constant 0 : index
    %380 = vector.load %arg20[%c0_308, %c16_309, %c0_310] : memref<1x112x64xf32, #tpu.memory_space<vmem>>, vector<1x80x64xf32>
    %381 = vector.shape_cast %380 : vector<1x80x64xf32> to vector<80x64xf32>
    %382 = arith.truncf %381 : vector<80x64xf32> to vector<80x64xbf16>
    %cst_311 = arith.constant dense<0.000000e+00> : vector<80x128xf32>
    %383 = tpu.matmul %382, %285, %cst_311 {dimension_numbers = #tpu.dot_dimension_numbers<[1], [0], [0], [1], [0, 0, 1, 1], [], []>} : vector<80x64xbf16>, vector<64x128xbf16>, vector<80x128xf32> -> vector<80x128xf32>
    %c0_312 = arith.constant 0 : index
    %c5_313 = arith.constant 5 : index
    %c0_314 = arith.constant 0 : index
    %384 = vector.load %arg21[%c0_312, %c5_313, %c0_314] : memref<1x112x128xf32, #tpu.memory_space<vmem>>, vector<1x80x128xf32>
    %385 = vector.shape_cast %384 : vector<1x80x128xf32> to vector<80x128xf32>
    %386 = arith.truncf %385 : vector<80x128xf32> to vector<80x128xbf16>
    %c0_315 = arith.constant 0 : index
    %c0_316 = arith.constant 0 : index
    %c0_317 = arith.constant 0 : index
    %387 = vector.load %arg11[%c0_315, %c0_316, %c0_317] : memref<9x128x128xbf16, #tpu.memory_space<vmem>>, vector<1x128x128xbf16>
    %388 = vector.shape_cast %387 : vector<1x128x128xbf16> to vector<128x128xbf16>
    %cst_318 = arith.constant dense<0.000000e+00> : vector<80x128xf32>
    %389 = tpu.matmul %386, %388, %cst_318 {dimension_numbers = #tpu.dot_dimension_numbers<[1], [0], [0], [1], [0, 0, 1, 1], [], []>} : vector<80x128xbf16>, vector<128x128xbf16>, vector<80x128xf32> -> vector<80x128xf32>
    %390 = arith.addf %383, %389 : vector<80x128xf32>
    %c0_319 = arith.constant 0 : index
    %c6_320 = arith.constant 6 : index
    %c0_321 = arith.constant 0 : index
    %391 = vector.load %arg21[%c0_319, %c6_320, %c0_321] : memref<1x112x128xf32, #tpu.memory_space<vmem>>, vector<1x80x128xf32>
    %392 = vector.shape_cast %391 : vector<1x80x128xf32> to vector<80x128xf32>
    %393 = arith.truncf %392 : vector<80x128xf32> to vector<80x128xbf16>
    %c1_322 = arith.constant 1 : index
    %c0_323 = arith.constant 0 : index
    %c0_324 = arith.constant 0 : index
    %394 = vector.load %arg11[%c1_322, %c0_323, %c0_324] : memref<9x128x128xbf16, #tpu.memory_space<vmem>>, vector<1x128x128xbf16>
    %395 = vector.shape_cast %394 : vector<1x128x128xbf16> to vector<128x128xbf16>
    %cst_325 = arith.constant dense<0.000000e+00> : vector<80x128xf32>
    %396 = tpu.matmul %393, %395, %cst_325 {dimension_numbers = #tpu.dot_dimension_numbers<[1], [0], [0], [1], [0, 0, 1, 1], [], []>} : vector<80x128xbf16>, vector<128x128xbf16>, vector<80x128xf32> -> vector<80x128xf32>
    %397 = arith.addf %390, %396 : vector<80x128xf32>
    %c0_326 = arith.constant 0 : index
    %c7_327 = arith.constant 7 : index
    %c0_328 = arith.constant 0 : index
    %398 = vector.load %arg21[%c0_326, %c7_327, %c0_328] : memref<1x112x128xf32, #tpu.memory_space<vmem>>, vector<1x80x128xf32>
    %399 = vector.shape_cast %398 : vector<1x80x128xf32> to vector<80x128xf32>
    %400 = arith.truncf %399 : vector<80x128xf32> to vector<80x128xbf16>
    %c2_329 = arith.constant 2 : index
    %c0_330 = arith.constant 0 : index
    %c0_331 = arith.constant 0 : index
    %401 = vector.load %arg11[%c2_329, %c0_330, %c0_331] : memref<9x128x128xbf16, #tpu.memory_space<vmem>>, vector<1x128x128xbf16>
    %402 = vector.shape_cast %401 : vector<1x128x128xbf16> to vector<128x128xbf16>
    %cst_332 = arith.constant dense<0.000000e+00> : vector<80x128xf32>
    %403 = tpu.matmul %400, %402, %cst_332 {dimension_numbers = #tpu.dot_dimension_numbers<[1], [0], [0], [1], [0, 0, 1, 1], [], []>} : vector<80x128xbf16>, vector<128x128xbf16>, vector<80x128xf32> -> vector<80x128xf32>
    %404 = arith.addf %397, %403 : vector<80x128xf32>
    %c0_333 = arith.constant 0 : index
    %c15_334 = arith.constant 15 : index
    %c0_335 = arith.constant 0 : index
    %405 = vector.load %arg21[%c0_333, %c15_334, %c0_335] : memref<1x112x128xf32, #tpu.memory_space<vmem>>, vector<1x80x128xf32>
    %406 = vector.shape_cast %405 : vector<1x80x128xf32> to vector<80x128xf32>
    %407 = arith.truncf %406 : vector<80x128xf32> to vector<80x128xbf16>
    %c3_336 = arith.constant 3 : index
    %c0_337 = arith.constant 0 : index
    %c0_338 = arith.constant 0 : index
    %408 = vector.load %arg11[%c3_336, %c0_337, %c0_338] : memref<9x128x128xbf16, #tpu.memory_space<vmem>>, vector<1x128x128xbf16>
    %409 = vector.shape_cast %408 : vector<1x128x128xbf16> to vector<128x128xbf16>
    %cst_339 = arith.constant dense<0.000000e+00> : vector<80x128xf32>
    %410 = tpu.matmul %407, %409, %cst_339 {dimension_numbers = #tpu.dot_dimension_numbers<[1], [0], [0], [1], [0, 0, 1, 1], [], []>} : vector<80x128xbf16>, vector<128x128xbf16>, vector<80x128xf32> -> vector<80x128xf32>
    %411 = arith.addf %404, %410 : vector<80x128xf32>
    %c0_340 = arith.constant 0 : index
    %c16_341 = arith.constant 16 : index
    %c0_342 = arith.constant 0 : index
    %412 = vector.load %arg21[%c0_340, %c16_341, %c0_342] : memref<1x112x128xf32, #tpu.memory_space<vmem>>, vector<1x80x128xf32>
    %413 = vector.shape_cast %412 : vector<1x80x128xf32> to vector<80x128xf32>
    %414 = arith.truncf %413 : vector<80x128xf32> to vector<80x128xbf16>
    %c4_343 = arith.constant 4 : index
    %c0_344 = arith.constant 0 : index
    %c0_345 = arith.constant 0 : index
    %415 = vector.load %arg11[%c4_343, %c0_344, %c0_345] : memref<9x128x128xbf16, #tpu.memory_space<vmem>>, vector<1x128x128xbf16>
    %416 = vector.shape_cast %415 : vector<1x128x128xbf16> to vector<128x128xbf16>
    %cst_346 = arith.constant dense<0.000000e+00> : vector<80x128xf32>
    %417 = tpu.matmul %414, %416, %cst_346 {dimension_numbers = #tpu.dot_dimension_numbers<[1], [0], [0], [1], [0, 0, 1, 1], [], []>} : vector<80x128xbf16>, vector<128x128xbf16>, vector<80x128xf32> -> vector<80x128xf32>
    %418 = arith.addf %411, %417 : vector<80x128xf32>
    %c0_347 = arith.constant 0 : index
    %c17_348 = arith.constant 17 : index
    %c0_349 = arith.constant 0 : index
    %419 = vector.load %arg21[%c0_347, %c17_348, %c0_349] : memref<1x112x128xf32, #tpu.memory_space<vmem>>, vector<1x80x128xf32>
    %420 = vector.shape_cast %419 : vector<1x80x128xf32> to vector<80x128xf32>
    %421 = arith.truncf %420 : vector<80x128xf32> to vector<80x128xbf16>
    %c5_350 = arith.constant 5 : index
    %c0_351 = arith.constant 0 : index
    %c0_352 = arith.constant 0 : index
    %422 = vector.load %arg11[%c5_350, %c0_351, %c0_352] : memref<9x128x128xbf16, #tpu.memory_space<vmem>>, vector<1x128x128xbf16>
    %423 = vector.shape_cast %422 : vector<1x128x128xbf16> to vector<128x128xbf16>
    %cst_353 = arith.constant dense<0.000000e+00> : vector<80x128xf32>
    %424 = tpu.matmul %421, %423, %cst_353 {dimension_numbers = #tpu.dot_dimension_numbers<[1], [0], [0], [1], [0, 0, 1, 1], [], []>} : vector<80x128xbf16>, vector<128x128xbf16>, vector<80x128xf32> -> vector<80x128xf32>
    %425 = arith.addf %418, %424 : vector<80x128xf32>
    %c0_354 = arith.constant 0 : index
    %c25_355 = arith.constant 25 : index
    %c0_356 = arith.constant 0 : index
    %426 = vector.load %arg21[%c0_354, %c25_355, %c0_356] : memref<1x112x128xf32, #tpu.memory_space<vmem>>, vector<1x80x128xf32>
    %427 = vector.shape_cast %426 : vector<1x80x128xf32> to vector<80x128xf32>
    %428 = arith.truncf %427 : vector<80x128xf32> to vector<80x128xbf16>
    %c6_357 = arith.constant 6 : index
    %c0_358 = arith.constant 0 : index
    %c0_359 = arith.constant 0 : index
    %429 = vector.load %arg11[%c6_357, %c0_358, %c0_359] : memref<9x128x128xbf16, #tpu.memory_space<vmem>>, vector<1x128x128xbf16>
    %430 = vector.shape_cast %429 : vector<1x128x128xbf16> to vector<128x128xbf16>
    %cst_360 = arith.constant dense<0.000000e+00> : vector<80x128xf32>
    %431 = tpu.matmul %428, %430, %cst_360 {dimension_numbers = #tpu.dot_dimension_numbers<[1], [0], [0], [1], [0, 0, 1, 1], [], []>} : vector<80x128xbf16>, vector<128x128xbf16>, vector<80x128xf32> -> vector<80x128xf32>
    %432 = arith.addf %425, %431 : vector<80x128xf32>
    %c0_361 = arith.constant 0 : index
    %c26_362 = arith.constant 26 : index
    %c0_363 = arith.constant 0 : index
    %433 = vector.load %arg21[%c0_361, %c26_362, %c0_363] : memref<1x112x128xf32, #tpu.memory_space<vmem>>, vector<1x80x128xf32>
    %434 = vector.shape_cast %433 : vector<1x80x128xf32> to vector<80x128xf32>
    %435 = arith.truncf %434 : vector<80x128xf32> to vector<80x128xbf16>
    %c7_364 = arith.constant 7 : index
    %c0_365 = arith.constant 0 : index
    %c0_366 = arith.constant 0 : index
    %436 = vector.load %arg11[%c7_364, %c0_365, %c0_366] : memref<9x128x128xbf16, #tpu.memory_space<vmem>>, vector<1x128x128xbf16>
    %437 = vector.shape_cast %436 : vector<1x128x128xbf16> to vector<128x128xbf16>
    %cst_367 = arith.constant dense<0.000000e+00> : vector<80x128xf32>
    %438 = tpu.matmul %435, %437, %cst_367 {dimension_numbers = #tpu.dot_dimension_numbers<[1], [0], [0], [1], [0, 0, 1, 1], [], []>} : vector<80x128xbf16>, vector<128x128xbf16>, vector<80x128xf32> -> vector<80x128xf32>
    %439 = arith.addf %432, %438 : vector<80x128xf32>
    %c0_368 = arith.constant 0 : index
    %c27_369 = arith.constant 27 : index
    %c0_370 = arith.constant 0 : index
    %440 = vector.load %arg21[%c0_368, %c27_369, %c0_370] : memref<1x112x128xf32, #tpu.memory_space<vmem>>, vector<1x80x128xf32>
    %441 = vector.shape_cast %440 : vector<1x80x128xf32> to vector<80x128xf32>
    %442 = arith.truncf %441 : vector<80x128xf32> to vector<80x128xbf16>
    %c8_371 = arith.constant 8 : index
    %c0_372 = arith.constant 0 : index
    %c0_373 = arith.constant 0 : index
    %443 = vector.load %arg11[%c8_371, %c0_372, %c0_373] : memref<9x128x128xbf16, #tpu.memory_space<vmem>>, vector<1x128x128xbf16>
    %444 = vector.shape_cast %443 : vector<1x128x128xbf16> to vector<128x128xbf16>
    %cst_374 = arith.constant dense<0.000000e+00> : vector<80x128xf32>
    %445 = tpu.matmul %442, %444, %cst_374 {dimension_numbers = #tpu.dot_dimension_numbers<[1], [0], [0], [1], [0, 0, 1, 1], [], []>} : vector<80x128xbf16>, vector<128x128xbf16>, vector<80x128xf32> -> vector<80x128xf32>
    %446 = arith.addf %439, %445 : vector<80x128xf32>
    %447 = tpu.iota {dimensions = array<i32: 0>} : vector<80x128xi32>
    %448 = arith.sitofp %447 : vector<80x128xi32> to vector<80x128xf32>
    %cst_375 = arith.constant 1.000000e+01 : f32
    %449 = vector.broadcast %cst_375 : f32 to vector<80x128xf32>
    %450 = arith.divf %448, %449 : vector<80x128xf32>
    %451 = math.floor %450 : vector<80x128xf32>
    %cst_376 = arith.constant 1.000000e+01 : f32
    %452 = vector.broadcast %cst_376 : f32 to vector<80x128xf32>
    %453 = arith.mulf %451, %452 : vector<80x128xf32>
    %454 = arith.subf %448, %453 : vector<80x128xf32>
    %cst_377 = arith.constant 5.000000e-01 : f32
    %455 = vector.broadcast %cst_377 : f32 to vector<80x128xf32>
    %456 = arith.cmpf ogt, %454, %455 : vector<80x128xf32>
    %cst_378 = arith.constant 8.500000e+00 : f32
    %457 = vector.broadcast %cst_378 : f32 to vector<80x128xf32>
    %458 = arith.cmpf olt, %454, %457 : vector<80x128xf32>
    %459 = arith.andi %456, %458 : vector<80x128xi1>
    %460 = vector.broadcast %286 : vector<1x128xf32> to vector<80x128xf32>
    %461 = arith.addf %446, %460 : vector<80x128xf32>
    %cst_379 = arith.constant 0.000000e+00 : f32
    %462 = vector.broadcast %cst_379 : f32 to vector<80x128xf32>
    %463 = arith.maximumf %461, %462 : vector<80x128xf32>
    %cst_380 = arith.constant 0.000000e+00 : f32
    %464 = vector.broadcast %cst_380 : f32 to vector<80x128xf32>
    %465 = arith.select %459, %463, %464 : vector<80x128xi1>, vector<80x128xf32>
    %cst_381 = arith.constant dense<0.000000e+00> : vector<128xf32>
    %466 = vector.multi_reduction <add>, %465, %cst_381 [0] : vector<80x128xf32> to vector<128xf32>
    %467 = vector.shape_cast %466 : vector<128xf32> to vector<1x128xf32>
    %cst_382 = arith.constant 1.562500e-02 : f32
    %468 = vector.broadcast %cst_382 : f32 to vector<1x128xf32>
    %469 = arith.mulf %467, %468 : vector<1x128xf32>
    %c0_383 = arith.constant 0 : index
    %c0_384 = arith.constant 0 : index
    %470 = vector.load %arg14[%c0_383, %c0_384] : memref<128x2xf32, #tpu.memory_space<vmem>>, vector<128x2xf32>
    %cst_385 = arith.constant dense<0.000000e+00> : vector<1x2xf32>
    %471 = tpu.matmul %469, %470, %cst_385 {dimension_numbers = #tpu.dot_dimension_numbers<[1], [0], [0], [1], [0, 0, 1, 1], [], []>} : vector<1x128xf32>, vector<128x2xf32>, vector<1x2xf32> -> vector<1x2xf32>
    %c0_386 = arith.constant 0 : index
    %c0_387 = arith.constant 0 : index
    %472 = vector.load %arg15[%c0_386, %c0_387] : memref<1x2xf32, #tpu.memory_space<vmem>>, vector<1x2xf32>
    %473 = arith.addf %471, %472 : vector<1x2xf32>
    %c0_388 = arith.constant 0 : index
    %c0_389 = arith.constant 0 : index
    %c0_390 = arith.constant 0 : index
    %474 = vector.load %arg16[%c0_388, %c0_389, %c0_390] : memref<1x1x2xf32, #tpu.memory_space<vmem>>, vector<1x1x2xf32>
    %475 = vector.shape_cast %474 : vector<1x1x2xf32> to vector<1x2xf32>
    %476 = vector.shape_cast %473 : vector<1x2xf32> to vector<1x1x2xf32>
    tpu.vector_store %arg16[%c0_388, %c0_389, %c0_390], %476 {strides = array<i32>} : memref<1x1x2xf32, #tpu.memory_space<vmem>>, vector<1x1x2xf32>,
    return
  }
  func.func @transform_0(%arg0: i32) -> (i32, i32, i32) {
    %c0_i32 = arith.constant 0 : i32
    %c0_i32_0 = arith.constant 0 : i32
    %c0_i32_1 = arith.constant 0 : i32
    return %arg0, %c0_i32, %c0_i32_0 : i32, i32, i32
  }
  func.func @transform_1(%arg0: i32) -> (i32, i32) {
    %c0_i32 = arith.constant 0 : i32
    %c0_i32_0 = arith.constant 0 : i32
    %c0_i32_1 = arith.constant 0 : i32
    return %c0_i32, %c0_i32_0 : i32, i32
  }
  func.func @transform_2(%arg0: i32) -> (i32, i32) {
    %c0_i32 = arith.constant 0 : i32
    %c0_i32_0 = arith.constant 0 : i32
    %c0_i32_1 = arith.constant 0 : i32
    return %c0_i32, %c0_i32_0 : i32, i32
  }
  func.func @transform_3(%arg0: i32) -> (i32, i32, i32) {
    %c0_i32 = arith.constant 0 : i32
    %c0_i32_0 = arith.constant 0 : i32
    %c0_i32_1 = arith.constant 0 : i32
    %c0_i32_2 = arith.constant 0 : i32
    return %c0_i32, %c0_i32_0, %c0_i32_1 : i32, i32, i32
  }
  func.func @transform_4(%arg0: i32) -> (i32, i32) {
    %c0_i32 = arith.constant 0 : i32
    %c0_i32_0 = arith.constant 0 : i32
    %c0_i32_1 = arith.constant 0 : i32
    return %c0_i32, %c0_i32_0 : i32, i32
  }
  func.func @transform_5(%arg0: i32) -> (i32, i32, i32) {
    %c0_i32 = arith.constant 0 : i32
    %c0_i32_0 = arith.constant 0 : i32
    %c0_i32_1 = arith.constant 0 : i32
    %c0_i32_2 = arith.constant 0 : i32
    return %c0_i32, %c0_i32_0, %c0_i32_1 : i32, i32, i32
  }
  func.func @transform_6(%arg0: i32) -> (i32, i32) {
    %c0_i32 = arith.constant 0 : i32
    %c0_i32_0 = arith.constant 0 : i32
    %c0_i32_1 = arith.constant 0 : i32
    return %c0_i32, %c0_i32_0 : i32, i32
  }
  func.func @transform_7(%arg0: i32) -> (i32, i32) {
    %c0_i32 = arith.constant 0 : i32
    %c0_i32_0 = arith.constant 0 : i32
    %c0_i32_1 = arith.constant 0 : i32
    return %c0_i32, %c0_i32_0 : i32, i32
  }
  func.func @transform_8(%arg0: i32) -> (i32, i32, i32) {
    %c0_i32 = arith.constant 0 : i32
    %c0_i32_0 = arith.constant 0 : i32
    %c0_i32_1 = arith.constant 0 : i32
    %c0_i32_2 = arith.constant 0 : i32
    return %c0_i32, %c0_i32_0, %c0_i32_1 : i32, i32, i32
  }
  func.func @transform_9(%arg0: i32) -> (i32, i32) {
    %c0_i32 = arith.constant 0 : i32
    %c0_i32_0 = arith.constant 0 : i32
    %c0_i32_1 = arith.constant 0 : i32
    return %c0_i32, %c0_i32_0 : i32, i32
  }
  func.func @transform_10(%arg0: i32) -> (i32, i32, i32) {
    %c0_i32 = arith.constant 0 : i32
    %c0_i32_0 = arith.constant 0 : i32
    %c0_i32_1 = arith.constant 0 : i32
    %c0_i32_2 = arith.constant 0 : i32
    return %c0_i32, %c0_i32_0, %c0_i32_1 : i32, i32, i32
  }
  func.func @transform_11(%arg0: i32) -> (i32, i32) {
    %c0_i32 = arith.constant 0 : i32
    %c0_i32_0 = arith.constant 0 : i32
    %c0_i32_1 = arith.constant 0 : i32
    return %c0_i32, %c0_i32_0 : i32, i32
  }
  func.func @transform_12(%arg0: i32) -> (i32, i32) {
    %c0_i32 = arith.constant 0 : i32
    %c0_i32_0 = arith.constant 0 : i32
    %c0_i32_1 = arith.constant 0 : i32
    return %c0_i32, %c0_i32_0 : i32, i32
  }
  func.func @transform_13(%arg0: i32) -> (i32, i32) {
    %c0_i32 = arith.constant 0 : i32
    %c0_i32_0 = arith.constant 0 : i32
    %c0_i32_1 = arith.constant 0 : i32
    return %c0_i32, %c0_i32_0 : i32, i32
  }
  func.func @transform_14(%arg0: i32) -> (i32, i32) {
    %c0_i32 = arith.constant 0 : i32
    %c0_i32_0 = arith.constant 0 : i32
    %c0_i32_1 = arith.constant 0 : i32
    return %c0_i32, %c0_i32_0 : i32, i32
  }
  func.func @transform_15(%arg0: i32) -> (i32, i32, i32) {
    %c0_i32 = arith.constant 0 : i32
    %c0_i32_0 = arith.constant 0 : i32
    %c0_i32_1 = arith.constant 0 : i32
    return %arg0, %c0_i32, %c0_i32_0 : i32, i32, i32
  }
}

</mosaic_0001>

<bundles_post_ra>
// kernel: lite_resnet_forward.1
= control target key start
LH: loop header
LB: loop body
LE: loop exit
PB: predicated region body
PF: predicated region fallthrough
CT: control target
= control target key end

     0   :  { %s8682_s0 = inlined_call_operand.vmem [shape: bf16[2,256,27], index: 0, kind: input, shape index: {}]   ;;  %s8683_s1 = inlined_call_operand.vmem [shape: bf16[27,32], index: 1, kind: input, shape index: {}]   ;;  %s8684_s2 = inlined_call_operand.vmem [shape: f32[1,32], index: 2, kind: input, shape index: {}]   ;;  %s8685_s3 = inlined_call_operand.vmem [shape: bf16[9,32,64], index: 3, kind: input, shape index: {}]   ;;  %s8686_s4 = inlined_call_operand.vmem [shape: f32[1,64], index: 4, kind: input, shape index: {}]   ;;  %s8687_s5 = inlined_call_operand.vmem [shape: bf16[9,64,64], index: 5, kind: input, shape index: {}]   ;;  %s8688_s6 = inlined_call_operand.vmem [shape: bf16[32,64], index: 6, kind: input, shape index: {}]   ;;  %s8689_s7 = inlined_call_operand.vmem [shape: f32[1,64], index: 7, kind: input, shape index: {}]   ;;  %s8690_s8 = inlined_call_operand.vmem [shape: bf16[9,64,128], index: 8, kind: input, shape index: {}]   ;;  %s8691_s9 = inlined_call_operand.vmem [shape: f32[1,128], index: 9, kind: input, shape index: {}]   ;;  %s8692_s10 = inlined_call_operand.vmem [shape: bf16[9,128,128], index: 10, kind: input, shape index: {}]   ;;  %s8693_s11 = inlined_call_operand.vmem [shape: bf16[64,128], index: 11, kind: input, shape index: {}]   ;;  %s8694_s12 = inlined_call_operand.vmem [shape: f32[1,128], index: 12, kind: input, shape index: {}]   ;;  %s8695_s13 = inlined_call_operand.vmem [shape: f32[128,2], index: 13, kind: input, shape index: {}]   ;;  %s8696_s14 = inlined_call_operand.vmem [shape: f32[1,2], index: 14, kind: input, shape index: {}]   ;;  %s8697_s15 = inlined_call_operand.hbm [shape: f32[2,1,2], index: 15, kind: output, shape index: {}]  }
   0x1   :  { %8699 = sst [smem:[#allocation12_spill]] %s8682_s0 }
   0x2   :  { %8700 = sst [smem:[#allocation13_spill]] %s8683_s1 }
   0x3   :  { %8701 = sst [smem:[#allocation14_spill]] %s8684_s2 }
   0x4   :  { %8702 = sst [smem:[#allocation15_spill]] %s8685_s3 }
   0x5   :  { %20 = vsyncpa [#allocation8], 0 }
   0x6   :  { %22 = vsyncpa [#allocation8 + $0x1], 0  ;;  %s6920_s18 = smov 0   ;;  %s6922_s19 = smov 0  }
   0x7   :  { %s6924_s20 = smov 0   ;;  %s6926_s21 = smov 0  }
   0x8 LB: > { %8703 = sst [smem:[#allocation10_spill]] %s6831_s20  ;;  %s6941_s22 = sadd.s32 4294967295, %s6835_s21   ;;  %s6835_s21 = sphi %s6926_s21, %s8735_s21   ;;  %s6831_s20 = sphi %s6924_s20, %s8732_s20   ;;  %s6827_s19 = sphi %s6922_s19, %s8734_s19   ;;  %s6823_s18 = sphi %s6920_s18, %s8733_s18  }
   0x9   : > { %s5316_s23 = sadd.s32 4294967294, %s6835_s21   ;;  %s6945_s24 = sadd.s32 1, %s6835_s21  }
   0xa   : > { %s355_s25 = sadd.s32 1, %s6831_s20  ;;  %s352_s26 = ssub.s32 %s6835_s21, %s6945_s24 }
   0xb   : > { %p365_p0 = scmp.ne.s32.totalorder %s6831_s20, %s6827_s19  ;;  %p353_p1 = scmp.eq.s32.totalorder %s352_s26, 0 }
   0xc   : > { %p366_p2 = scmp.eq.s32.totalorder %s6941_s22, 1  ;;  %p371_p3 = scmp.ne.s32.totalorder %s6827_s19, %s6823_s18 }
   0xd   : > { %p372_p4 = scmp.eq.s32.totalorder %s5316_s23, 1  ;;  %p5319_p7 = scmp.ge.s32.totalorder %s6835_s21, 1 }
   0xe   : > { %s6956_s27 = scalar_select %p353_p1, %s6831_s20, %s355_s25  }
   0xf   : > { %p6958_p5 = por %p366_p2, %p365_p0  ;;  %p6962_p6 = por %p372_p4, %p371_p3 }
  0x10   : > { %8704 = sst [smem:[#allocation11_spill]] %s6956_s27  ;;  %p440_p8 = scmp.lt.s32.totalorder %s6835_s21, 3 }
  0x12   : > { %p441_p9 = pnand %p5319_p7, %p440_p8 }
  0x13   : > { %s8707_s1 = sld [smem:[#allocation13_spill]] (!%p441_p9)  ;;  %p487_p10 = scmp.lt.s32.totalorder (!%p441_p9), %s6941_s22, 1 }
  0x14   : > { %444 = sbr.rel (%p441_p9) target bundleno = 1865 (0x749), region = 80  ;;  %s8708_s0 = sld [smem:[#allocation12_spill]] (!%p441_p9) }
  0x15   : > { %s8709_s2 = sld [smem:[#allocation14_spill]] (!%p441_p9)  ;;  %s485_s27 = sand.u32 (!%p441_p9), 1, %s6827_s19  }
  0x16   : > { %s8710_s3 = sld [smem:[#allocation15_spill]] (!%p441_p9)  ;;  %s5249_s20 = scalar_lea.sflag (!%p441_p9), [#allocation8], %s485_s27 }
  0x19   : > { %v5392_v0 = vld [vmem:[%s8707_s1 + $0x8] sm:$0xf]  ;;  %v6535_v1 = vld [vmem:[%s8707_s1 + $0x8] sm:$0x30]  ;;  %vm673_vm0 = vcmask 1044480   ;;  %vm674_vm1 = vcmask 1045504  }
  0x1a   : > { %v5393_v2 = vor.u32 %v6535_v1, %v5392_v0  ;;  %v6837_v3 = vmov 65535   ;;  %s488_s25 = scalar_select %p487_p10, %s6941_s22, 1  ;;  %v6534_v7 = vld [vmem:[%s8707_s1] sm:$0xff]  ;;  %vm624_vm2 = vcmask 220160   ;;  %vm801_vm3 = vcmask 261120  }
  0x1b   : > { %v675_v4 = vsel %vm673_vm0, 4294967295, %v6837_v3  ;;  %v7003_v16 = vld [vmem:[%s8709_s2] ss:$0 sm:$0xff]  ;;  %v6838_v22 = vmov 0.0   ;;  %vm1878_vm4 = vcmask 523264  }
  0x1c   : > { %v676_v5 = vsel %vm674_vm1, %v675_v4, 0  ;;  %s6517_s26 = sshll.u32 %s488_s25, 7  ;;  %834 = vst.msk [vmem:[#allocation3] sm:$0xff] %vm801_vm3, %v6838_v22  ;;  %v6541_v24 = vld [vmem:[%s8710_s3 + $0x18] sm:$0xff]  ;;  %v6540_v26 = vld [vmem:[%s8710_s3 + $0x10] sm:$0xff]  ;;  %s5257_s25 = scalar_lea.hbm %s8697_s15, %s6941_s22 }
  0x1d   : > { %v678_v6 = vand.u32 %v5393_v2, %v676_v5  ;;  %s6982_s17 = scalar_lea.vmem %s8708_s0, %s6517_s26  ;;  %835 = vst.msk [vmem:[#allocation3 + $0x8] sm:$0xff] %vm801_vm3, %v6838_v22  ;;  %1021 = vmatpush.bf16.msra.mxu1 %v6541_v24  ;;  %6704 = vmatpush.bf16.msra.mxu2 %v6541_v24  ;;  %s486_s26 = scalar_lea.vmem [#allocation7], %s485_s27 }
  0x1e   : > { %v6518_v8 = vld [vmem:[%s6982_s17] sm:$0xff]  ;;  %v6519_v9 = vld [vmem:[%s6982_s17 + $0x8] sm:$0xff]  ;;  %v6520_v10 = vld [vmem:[%s6982_s17 + $0x10] sm:$0xff]  ;;  %836 = vst.msk [vmem:[#allocation3 + $0x10] sm:$0xff] %vm801_vm3, %v6838_v22  ;;  %6705 = vmatpush.bf16.msra.mxu3 %v6541_v24  ;;  %s5259_s30 = sshll.u32 %s486_s26, 4  ;;  %s5261_s16 = sshll.u32 %s5257_s25, 4  ;;  %s5260_s30 = int_to_ptr.vmem [resolvable:$true] %s5259_s30  ;;  %s5262_s16 = int_to_ptr.hbm [resolvable:$true] %s5261_s16 }
  0x1f   : > { %686 = vmatpush.bf16.msra.mxu0 %v678_v6  ;;  %v6521_v11 = vld [vmem:[%s6982_s17 + $0x18] sm:$0xff]  ;;  %v6522_v12 = vld [vmem:[%s6982_s17 + $0x20] sm:$0xff]  ;;  %v6523_v13 = vld [vmem:[%s6982_s17 + $0x28] sm:$0xff]  ;;  %837 = vst.msk [vmem:[#allocation3 + $0x18] sm:$0xff] %vm801_vm3, %v6838_v22  ;;  %s6787_s2 = sshra.s32 %s5262_s16, 4  ;;  %s6788_s2 = int_to_ptr.hbm [resolvable:$true] %s6787_s2 }
  0x20   : > { %v6524_v14 = vld [vmem:[%s6982_s17 + $0x30] sm:$0xff]  ;;  %v6525_v15 = vld [vmem:[%s6982_s17 + $0x38] sm:$0xff]  ;;  %v6526_v17 = vld [vmem:[%s6982_s17 + $0x40] sm:$0xff]  ;;  %838 = vst.msk [vmem:[#allocation3 + $0x20] sm:$0xff] %vm801_vm3, %v6838_v22  ;;  %p6794_p0 = scmp.lt.s32.totalorder %s6788_s2, %s8697_s15 }
  0x21   : > { %839 = vst.msk [vmem:[#allocation3 + $0x28] sm:$0xff] %vm801_vm3, %v6838_v22  ;;  %v6527_v27 = vld [vmem:[%s6982_s17 + $0x48] sm:$0xff]  ;;  %1022 = vmatpush.bf16.msra.mxu1 %v6540_v26  ;;  %6706 = vmatpush.bf16.msra.mxu2 %v6540_v26  ;;  %v6528_v34 = vld [vmem:[%s6982_s17 + $0x50] sm:$0xff]  ;;  %v6529_v49 = vld [vmem:[%s6982_s17 + $0x58] sm:$0xff] }
  0x22   : > { %840 = vst.msk [vmem:[#allocation3 + $0x30] sm:$0xff] %vm801_vm3, %v6838_v22  ;;  %6707 = vmatpush.bf16.msra.mxu3 %v6540_v26  ;;  %v6530_v58 = vld [vmem:[%s6982_s17 + $0x60] sm:$0xff] }
  0x23   : > { %687 = vmatpush.bf16.msra.mxu0 %v6534_v7  ;;  %841 = vst.msk [vmem:[#allocation3 + $0x38] sm:$0xff] %vm801_vm3, %v6838_v22 }
  0x24   : > { %842 = vst.msk [vmem:[#allocation3 + $0x40] sm:$0xff] %vm801_vm3, %v6838_v22  ;;  %v968_v48 = vld [vmem:[#allocation3 + $0x6] sm:$0xff] }
  0x25   : > { %843 = vst.msk [vmem:[#allocation3 + $0x48] sm:$0xff] %vm801_vm3, %v6838_v22 }
  0x26   : > { %5394 = vmatmul.msk.bf16.vlgmr.msra.gmra.mxu0 %vm624_vm2, %v6518_v8  ;;  %844 = vst.msk [vmem:[#allocation3 + $0x50] sm:$0xff] %vm801_vm3, %v6838_v22  ;;  %v6531_v8 = vld [vmem:[%s6982_s17 + $0x68] sm:$0xff] }
  0x27   : > { %845 = vst.msk [vmem:[#allocation3 + $0x58] sm:$0xff] %vm801_vm3, %v6838_v22 }
  0x28   : > { %846 = vst.msk [vmem:[#allocation3 + $0x60] sm:$0xff] %vm801_vm3, %v6838_v22 }
  0x29   : > { %847 = vst.msk [vmem:[#allocation3 + $0x68] sm:$0xff] %vm801_vm3, %v6838_v22 }
  0x2a   : > { %3953 = vst [vmem:[#allocation6] sm:$0xff] %v6838_v22 }
  0x2b   : > { %3954 = vst [vmem:[#allocation6 + $0x8] sm:$0xff] %v6838_v22 }
  0x2c   : > { %3955 = vst [vmem:[#allocation6 + $0x60] sm:$0xff] %v6838_v22 }
  0x2d   : > { %3956 = vst [vmem:[#allocation6 + $0x68] sm:$0xff] %v6838_v22 }
  0x36   : > { %5395 = vmatmul.msk.bf16.gmra.mxu0 %vm624_vm2, %v6519_v9 }
  0x46   : > { %5396 = vmatmul.msk.bf16.gmra.mxu0 %vm624_vm2, %v6520_v10 }
  0x56   : > { %5397 = vmatmul.msk.bf16.gmra.mxu0 %vm624_vm2, %v6521_v11 }
  0x66   : > { %5398 = vmatmul.msk.bf16.gmra.mxu0 %vm624_vm2, %v6522_v12 }
  0x76   : > { %5399 = vmatmul.msk.bf16.gmra.mxu0 %vm624_vm2, %v6523_v13 }
  0x86   : > { %5400 = vmatmul.msk.bf16.gmra.mxu0 %vm624_vm2, %v6524_v14  ;;  %v6545_v14 = vld [vmem:[%s8710_s3 + $0x38] sm:$0xff] }
  0x87   : > { %1254 = vmatpush.bf16.msrb.mxu1 %v6545_v14 }
  0x96   : > { %5401 = vmatmul.msk.bf16.gmra.mxu0 %vm624_vm2, %v6525_v15 }
  0xa3   : > { %v689_v18 = vpop.f32.mrf.mxu0 }
  0xa4   : > { %v690_v19 = vadd.f32 %v7003_v16, %v689_v18  ;;  %v6532_v18 = vld [vmem:[%s6982_s17 + $0x70] sm:$0xff] }
  0xa6   : > { %v769_v20 = vmax.f32 %v690_v19, 0.0  ;;  %5402 = vmatmul.msk.bf16.gmra.mxu0 %vm624_vm2, %v6526_v17  ;;  %v6544_v17 = vld [vmem:[%s8710_s3 + $0x30] sm:$0xff] }
  0xa7   : > { %1255 = vmatpush.bf16.msrb.mxu1 %v6544_v17 }
  0xa8   : > { %802 = vst.msk [vmem:[#allocation2] sm:$0xff] %vm801_vm3, %v769_v20 }
  0xab   : > { %v691_v21 = vpop.f32.mrf.mxu0 }
  0xac   : > { %v692_v23 = vadd.f32 %v7003_v16, %v691_v21 }
  0xae   : > { %v770_v25 = vmax.f32 %v692_v23, 0.0 }
  0xb0   : > { %803 = vst.msk [vmem:[#allocation2 + $0x8] sm:$0xff] %vm801_vm3, %v770_v25 }
  0xb3   : > { %v694_v28 = vpop.f32.mrf.mxu0 }
  0xb4   : > { %v695_v29 = vadd.f32 %v7003_v16, %v694_v28 }
  0xb6   : > { %v771_v30 = vmax.f32 %v695_v29, 0.0  ;;  %5403 = vmatmul.msk.bf16.gmra.mxu0 %vm624_vm2, %v6527_v27 }
  0xb7   : > { %v848_v37 = vld [vmem:[#allocation2] ss:$2 sm:$0xff]  ;;  %v850_v38 = vld [vmem:[#allocation2 + $0x1] ss:$2 sm:$0xff] }
  0xb8   : > { %804 = vst.msk [vmem:[#allocation2 + $0x10] sm:$0xff] %vm801_vm3, %v771_v30  ;;  %v855_v42 = vmax.f32 %v848_v37, %v850_v38 }
  0xbb   : > { %v696_v31 = vpop.f32.mrf.mxu0 }
  0xbc   : > { %v697_v32 = vadd.f32 %v7003_v16, %v696_v31 }
  0xbe   : > { %v772_v33 = vmax.f32 %v697_v32, 0.0  ;;  %v6533_v32 = vld [vmem:[%s6982_s17 + $0x78] sm:$0xff]  ;;  %s6793_s17 = scalar_lea.hbm %s8697_s15, 2 }
  0xc0   : > { %805 = vst.msk [vmem:[#allocation2 + $0x18] sm:$0xff] %vm801_vm3, %v772_v33 }
  0xc3   : > { %v699_v35 = vpop.f32.mrf.mxu0 }
  0xc4   : > { %v700_v36 = vadd.f32 %v7003_v16, %v699_v35 }
  0xc6   : > { %v773_v39 = vmax.f32 %v700_v36, 0.0  ;;  %5404 = vmatmul.msk.bf16.gmra.mxu0 %vm624_vm2, %v6528_v34 }
  0xc7   : > { %v852_v40 = vld [vmem:[#allocation2 + $0x10] ss:$2 sm:$0xff]  ;;  %v854_v41 = vld [vmem:[#allocation2 + $0x11] ss:$2 sm:$0xff] }
  0xc8   : > { %v856_v43 = vmax.f32 %v852_v40, %v854_v41  ;;  %806 = vst.msk [vmem:[#allocation2 + $0x20] sm:$0xff] %vm801_vm3, %v773_v39 }
  0xca   : > { %v857_v44 = vmax.f32 %v855_v42, %v856_v43 }
  0xcb   : > { %v701_v45 = vpop.f32.mrf.mxu0 }
  0xcc   : > { %v702_v46 = vadd.f32 %v7003_v16, %v701_v45  ;;  %858 = vst.msk [vmem:[#allocation3 + $0x11] sm:$0xff] %vm801_vm3, %v857_v44  ;;  %v6539_v45 = vld [vmem:[%s8710_s3 + $0x8] sm:$0xff] }
  0xcd   : > { %1082 = vmatpush.bf16.msrb.mxu2 %v6539_v45 }
  0xce   : > { %v774_v47 = vmax.f32 %v702_v46, 0.0  ;;  %v6538_v46 = vld [vmem:[%s8710_s3] sm:$0xff] }
  0xd0   : > { %807 = vst.msk [vmem:[#allocation2 + $0x28] sm:$0xff] %vm801_vm3, %v774_v47 }
  0xd1   : > { %1083 = vmatpush.bf16.msrb.mxu2 %v6538_v46 }
  0xd3   : > { %v704_v50 = vpop.f32.mrf.mxu0  ;;  %v969_v51 = vld [vmem:[#allocation3 + $0xe] sm:$0xff] }
  0xd4   : > { %v705_v52 = vadd.f32 %v7003_v16, %v704_v50  ;;  %v978_v53 = vpack.c.bf16 %v969_v51, %v968_v48  ;;  %v7096_v48 = vld [vmem:[#allocation3 + $0xf] sm:$0xff] }
  0xd6   : > { %v775_v54 = vmax.f32 %v705_v52, 0.0  ;;  %5405 = vmatmul.msk.bf16.gmra.mxu0 %vm624_vm2, %v6529_v49  ;;  %5422 = vmatmul.msk.bf16.vlgmr.msra.gmra.mxu1 %vm801_vm3, %v978_v53 }
  0xd7   : > { %v860_v61 = vld [vmem:[#allocation2 + $0x20] ss:$2 sm:$0xff]  ;;  %v862_v62 = vld [vmem:[#allocation2 + $0x21] ss:$2 sm:$0xff] }
  0xd8   : > { %808 = vst.msk [vmem:[#allocation2 + $0x30] sm:$0xff] %vm801_vm3, %v775_v54  ;;  %v867_v2 = vmax.f32 %v860_v61, %v862_v62 }
  0xdb   : > { %v706_v55 = vpop.f32.mrf.mxu0 }
  0xdc   : > { %v707_v56 = vadd.f32 %v7003_v16, %v706_v55 }
  0xde   : > { %v776_v57 = vmax.f32 %v707_v56, 0.0 }
  0xe0   : > { %809 = vst.msk [vmem:[#allocation2 + $0x38] sm:$0xff] %vm801_vm3, %v776_v57 }
  0xe3   : > { %v709_v59 = vpop.f32.mrf.mxu0 }
  0xe4   : > { %v710_v60 = vadd.f32 %v7003_v16, %v709_v59 }
  0xe6   : > { %v777_v63 = vmax.f32 %v710_v60, 0.0  ;;  %5406 = vmatmul.msk.bf16.gmra.mxu0 %vm624_vm2, %v6530_v58 }
  0xe7   : > { %v864_v0 = vld [vmem:[#allocation2 + $0x30] ss:$2 sm:$0xff]  ;;  %v866_v1 = vld [vmem:[#allocation2 + $0x31] ss:$2 sm:$0xff] }
  0xe8   : > { %v868_v3 = vmax.f32 %v864_v0, %v866_v1  ;;  %810 = vst.msk [vmem:[#allocation2 + $0x40] sm:$0xff] %vm801_vm3, %v777_v63 }
  0xea   : > { %v869_v4 = vmax.f32 %v867_v2, %v868_v3 }
  0xeb   : > { %v711_v5 = vpop.f32.mrf.mxu0 }
  0xec   : > { %870 = vst.msk [vmem:[#allocation3 + $0x1b] sm:$0xff] %vm801_vm3, %v869_v4  ;;  %v712_v6 = vadd.f32 %v7003_v16, %v711_v5 }
  0xee   : > { %v778_v7 = vmax.f32 %v712_v6, 0.0 }
  0xf0   : > { %811 = vst.msk [vmem:[#allocation2 + $0x48] sm:$0xff] %vm801_vm3, %v778_v7 }
  0xf3   : > { %v714_v9 = vpop.f32.mrf.mxu0  ;;  %v970_v33 = vld [vmem:[#allocation3 + $0x16] sm:$0xff] }
  0xf4   : > { %v715_v10 = vadd.f32 %v7003_v16, %v714_v9  ;;  %v7078_v36 = vld [vmem:[#allocation3 + $0x17] sm:$0xff] }
  0xf5   : > { %v1211_v50 = vpack.c.bf16 %v7078_v36, %v7096_v48 }
  0xf6   : > { %v779_v11 = vmax.f32 %v715_v10, 0.0  ;;  %5407 = vmatmul.msk.bf16.gmra.mxu0 %vm624_vm2, %v6531_v8 }
  0xf7   : > { %v872_v21 = vld [vmem:[#allocation2 + $0x40] ss:$2 sm:$0xff]  ;;  %v874_v22 = vld [vmem:[#allocation2 + $0x41] ss:$2 sm:$0xff] }
  0xf8   : > { %812 = vst.msk [vmem:[#allocation2 + $0x50] sm:$0xff] %vm801_vm3, %v779_v11  ;;  %v879_v26 = vmax.f32 %v872_v21, %v874_v22  ;;  %v949_v11 = vld [vmem:[#allocation3 + $0x5] sm:$0xff] }
  0xfb   : > { %v716_v12 = vpop.f32.mrf.mxu0 }
  0xfc   : > { %v717_v13 = vadd.f32 %v7003_v16, %v716_v12  ;;  %v950_v12 = vld [vmem:[#allocation3 + $0xd] sm:$0xff] }
  0xfe   : > { %v780_v15 = vmax.f32 %v717_v13, 0.0 }
 0x100   : > { %813 = vst.msk [vmem:[#allocation2 + $0x58] sm:$0xff] %vm801_vm3, %v780_v15  ;;  %v959_v15 = vpack.c.bf16 %v950_v12, %v949_v11  ;;  %v6547_v12 = vld [vmem:[%s8710_s3 + $0x48] sm:$0xff] }
 0x103   : > { %v719_v19 = vpop.f32.mrf.mxu0 }
 0x104   : > { %v720_v20 = vadd.f32 %v7003_v16, %v719_v19 }
 0x106   : > { %v781_v23 = vmax.f32 %v720_v20, 0.0  ;;  %5408 = vmatmul.msk.bf16.gmra.mxu0 %vm624_vm2, %v6532_v18 }
 0x107   : > { %v876_v24 = vld [vmem:[#allocation2 + $0x50] ss:$2 sm:$0xff]  ;;  %v878_v25 = vld [vmem:[#allocation2 + $0x51] ss:$2 sm:$0xff] }
 0x108   : > { %v880_v27 = vmax.f32 %v876_v24, %v878_v25  ;;  %814 = vst.msk [vmem:[#allocation2 + $0x60] sm:$0xff] %vm801_vm3, %v781_v23 }
 0x10a   : > { %v881_v28 = vmax.f32 %v879_v26, %v880_v27 }
 0x10b   : > { %v721_v29 = vpop.f32.mrf.mxu0 }
 0x10c   : > { %882 = vst.msk [vmem:[#allocation3 + $0x25] sm:$0xff] %vm801_vm3, %v881_v28  ;;  %v722_v30 = vadd.f32 %v7003_v16, %v721_v29  ;;  %v951_v28 = vld [vmem:[#allocation3 + $0x15] sm:$0xff]  ;;  %v952_v29 = vld [vmem:[#allocation3 + $0x1d] sm:$0xff] }
 0x10e   : > { %v782_v31 = vmax.f32 %v722_v30, 0.0 }
 0x110   : > { %815 = vst.msk [vmem:[#allocation2 + $0x68] sm:$0xff] %vm801_vm3, %v782_v31 }
 0x113   : > { %v724_v34 = vpop.f32.mrf.mxu0  ;;  %v971_v35 = vld [vmem:[#allocation3 + $0x1e] sm:$0xff]  ;;  %v7106_v62 = vld [vmem:[#allocation3 + $0x27] sm:$0xff] }
 0x114   : > { %v7080_v37 = vld [vmem:[#allocation3 + $0x1f] sm:$0xff]  ;;  %v725_v38 = vadd.f32 %v7003_v16, %v724_v34  ;;  %v979_v39 = vpack.c.bf16 %v971_v35, %v970_v33  ;;  %v960_v33 = vpack.c.bf16 %v952_v29, %v951_v28 }
 0x115   : > { %v1121_v40 = vpack.c.bf16 %v7080_v37, %v7078_v36  ;;  %v972_v0 = vld [vmem:[#allocation3 + $0x26] sm:$0xff]  ;;  %v1212_v5 = vpack.c.bf16 %v7106_v62, %v7080_v37 }
 0x116   : > { %v783_v41 = vmax.f32 %v725_v38, 0.0  ;;  %5409 = vmatmul.msk.bf16.gmra.mxu0 %vm624_vm2, %v6533_v32  ;;  %5423 = vmatmul.msk.bf16.gmra.mxu1 %vm801_vm3, %v979_v39 }
 0x117   : > { %v884_v51 = vld [vmem:[#allocation2 + $0x60] ss:$2 sm:$0xff]  ;;  %v886_v52 = vld [vmem:[#allocation2 + $0x61] ss:$2 sm:$0xff] }
 0x118   : > { %816 = vst.msk [vmem:[#allocation2 + $0x70] sm:$0xff] %vm801_vm3, %v783_v41  ;;  %v891_v56 = vmax.f32 %v884_v51, %v886_v52 }
 0x11b   : > { %v726_v42 = vpop.f32.mrf.mxu0 }
 0x11c   : > { %v727_v43 = vadd.f32 %v7003_v16, %v726_v42 }
 0x11e   : > { %v784_v44 = vmax.f32 %v727_v43, 0.0 }
 0x120   : > { %817 = vst.msk [vmem:[#allocation2 + $0x78] sm:$0xff] %vm801_vm3, %v784_v44  ;;  %v953_v44 = vld [vmem:[#allocation3 + $0x25] sm:$0xff] }
 0x123   : > { %v729_v47 = vpop.f32.mrf.mxu0 }
 0x124   : > { %v730_v49 = vadd.f32 %v7003_v16, %v729_v47 }
 0x126   : > { %v785_v53 = vmax.f32 %v730_v49, 0.0  ;;  %5469 = vmatmul.msk.bf16.vlgmr.msrb.gmra.mxu1 %vm801_vm3, %v1211_v50 }
 0x127   : > { %v888_v54 = vld [vmem:[#allocation2 + $0x70] ss:$2 sm:$0xff]  ;;  %v890_v55 = vld [vmem:[#allocation2 + $0x71] ss:$2 sm:$0xff] }
 0x128   : > { %v892_v57 = vmax.f32 %v888_v54, %v890_v55  ;;  %818 = vst.msk [vmem:[#allocation2 + $0x80] sm:$0xff] %vm801_vm3, %v785_v53 }
 0x12a   : > { %v893_v58 = vmax.f32 %v891_v56, %v892_v57 }
 0x12b   : > { %v731_v59 = vpop.f32.mrf.mxu0 }
 0x12c   : > { %894 = vst.msk [vmem:[#allocation3 + $0x2f] sm:$0xff] %vm801_vm3, %v893_v58  ;;  %v732_v60 = vadd.f32 %v7003_v16, %v731_v59  ;;  %v6543_v58 = vld [vmem:[%s8710_s3 + $0x28] sm:$0xff] }
 0x12d   : > { %1163 = vmatpush.bf16.msrb.mxu3 %v6543_v58 }
 0x12e   : > { %v786_v61 = vmax.f32 %v732_v60, 0.0 }
 0x130   : > { %819 = vst.msk [vmem:[#allocation2 + $0x88] sm:$0xff] %vm801_vm3, %v786_v61 }
 0x133   : > { %v734_v63 = vpop.f32.mrf.mxu0  ;;  %v973_v1 = vld [vmem:[#allocation3 + $0x2e] sm:$0xff] }
 0x134   : > { %v7108_v2 = vld [vmem:[#allocation3 + $0x2f] sm:$0xff]  ;;  %v735_v3 = vadd.f32 %v7003_v16, %v734_v63  ;;  %v980_v4 = vpack.c.bf16 %v973_v1, %v972_v0 }
 0x135   : > { %v1122_v6 = vpack.c.bf16 %v7108_v2, %v7106_v62  ;;  %v954_v42 = vld [vmem:[#allocation3 + $0x2d] sm:$0xff] }
 0x136   : > { %v787_v7 = vmax.f32 %v735_v3, 0.0  ;;  %5424 = vmatmul.msk.bf16.vlgmr.msra.gmra.mxu2 %vm801_vm3, %v980_v4  ;;  %5470 = vmatmul.msk.bf16.gmra.mxu1 %vm801_vm3, %v1212_v5  ;;  %v961_v46 = vpack.c.bf16 %v954_v42, %v953_v44  ;;  %v1476_v62 = vld [vmem:[#allocation3 + $0x29] sm:$0xff] }
 0x137   : > { %v896_v17 = vld [vmem:[#allocation2 + $0x80] ss:$2 sm:$0xff]  ;;  %v898_v18 = vld [vmem:[#allocation2 + $0x81] ss:$2 sm:$0xff]  ;;  %1345 = vmatpush.bf16.msra.mxu2 %v6547_v12  ;;  %v1296_v12 = vld [vmem:[#allocation3 + $0x30] sm:$0xff] }
 0x138   : > { %820 = vst.msk [vmem:[#allocation2 + $0x90] sm:$0xff] %vm801_vm3, %v787_v7  ;;  %v903_v22 = vmax.f32 %v896_v17, %v898_v18 }
 0x13b   : > { %v736_v8 = vpop.f32.mrf.mxu0 }
 0x13c   : > { %v737_v9 = vadd.f32 %v7003_v16, %v736_v8  ;;  %v6542_v8 = vld [vmem:[%s8710_s3 + $0x20] sm:$0xff] }
 0x13d   : > { %1164 = vmatpush.bf16.msrb.mxu3 %v6542_v8 }
 0x13e   : > { %v788_v10 = vmax.f32 %v737_v9, 0.0 }
 0x140   : > { %821 = vst.msk [vmem:[#allocation2 + $0x98] sm:$0xff] %vm801_vm3, %v788_v10 }
 0x143   : > { %v739_v13 = vpop.f32.mrf.mxu0 }
 0x144   : > { %v740_v14 = vadd.f32 %v7003_v16, %v739_v13  ;;  %v6546_v13 = vld [vmem:[%s8710_s3 + $0x40] sm:$0xff] }
 0x145   : > { %1346 = vmatpush.bf16.msra.mxu2 %v6546_v13 }
 0x146   : > { %v789_v19 = vmax.f32 %v740_v14, 0.0  ;;  %5435 = vmatmul.msk.bf16.vlgmr.msrb.gmra.mxu2 %vm801_vm3, %v959_v15 }
 0x147   : > { %v900_v20 = vld [vmem:[#allocation2 + $0x90] ss:$2 sm:$0xff]  ;;  %v902_v21 = vld [vmem:[#allocation2 + $0x91] ss:$2 sm:$0xff] }
 0x148   : > { %v904_v23 = vmax.f32 %v900_v20, %v902_v21  ;;  %822 = vst.msk [vmem:[#allocation2 + $0xa0] sm:$0xff] %vm801_vm3, %v789_v19 }
 0x14a   : > { %v905_v24 = vmax.f32 %v903_v22, %v904_v23 }
 0x14b   : > { %v741_v25 = vpop.f32.mrf.mxu0 }
 0x14c   : > { %906 = vst.msk [vmem:[#allocation3 + $0x39] sm:$0xff] %vm801_vm3, %v905_v24  ;;  %v742_v26 = vadd.f32 %v7003_v16, %v741_v25 }
 0x14e   : > { %v790_v27 = vmax.f32 %v742_v26, 0.0 }
 0x150   : > { %823 = vst.msk [vmem:[#allocation2 + $0xa8] sm:$0xff] %vm801_vm3, %v790_v27  ;;  %v6549_v27 = vld [vmem:[%s8710_s3 + $0x58] sm:$0xff] }
 0x153   : > { %v744_v30 = vpop.f32.mrf.mxu0  ;;  %v7126_v31 = vld [vmem:[#allocation3 + $0x37] sm:$0xff]  ;;  %v7218_v36 = vpop.f32.mrf.mxu1 }
 0x154   : > { %v745_v32 = vadd.f32 %v7003_v16, %v744_v30  ;;  %v1213_v34 = vpack.c.bf16 %v7126_v31, %v7108_v2  ;;  %v974_v60 = vld [vmem:[#allocation3 + $0x36] sm:$0xff] }
 0x155   : > { %v955_v0 = vld [vmem:[#allocation3 + $0x35] sm:$0xff] }
 0x156   : > { %v791_v35 = vmax.f32 %v745_v32, 0.0  ;;  %5436 = vmatmul.msk.bf16.gmra.mxu2 %vm801_vm3, %v960_v33  ;;  %5471 = vmatmul.msk.bf16.gmra.mxu1 %vm801_vm3, %v1213_v34  ;;  %v7231_v2 = vld [vmem:[#allocation3 + $0x31] sm:$0xff] }
 0x157   : > { %v908_v47 = vld [vmem:[#allocation2 + $0xa0] ss:$2 sm:$0xff]  ;;  %v910_v49 = vld [vmem:[#allocation2 + $0xa1] ss:$2 sm:$0xff] }
 0x158   : > { %824 = vst.msk [vmem:[#allocation2 + $0xb0] sm:$0xff] %vm801_vm3, %v791_v35  ;;  %v915_v53 = vmax.f32 %v908_v47, %v910_v49 }
 0x15b   : > { %v746_v38 = vpop.f32.mrf.mxu0 }
 0x15c   : > { %v747_v39 = vadd.f32 %v7003_v16, %v746_v38 }
 0x15e   : > { %v792_v41 = vmax.f32 %v747_v39, 0.0 }
 0x160   : > { %825 = vst.msk [vmem:[#allocation2 + $0xb8] sm:$0xff] %vm801_vm3, %v792_v41 }
 0x163   : > { %v749_v43 = vpop.f32.mrf.mxu0 }
 0x164   : > { %v750_v45 = vadd.f32 %v7003_v16, %v749_v43 }
 0x166   : > { %v793_v50 = vmax.f32 %v750_v45, 0.0  ;;  %5437 = vmatmul.msk.bf16.gmra.mxu2 %vm801_vm3, %v961_v46  ;;  %v6551_v46 = vld [vmem:[%s8710_s3 + $0x68] sm:$0xff] }
 0x167   : > { %v912_v51 = vld [vmem:[#allocation2 + $0xb0] ss:$2 sm:$0xff]  ;;  %v914_v52 = vld [vmem:[#allocation2 + $0xb1] ss:$2 sm:$0xff]  ;;  %1527 = vmatpush.bf16.msra.mxu1 %v6551_v46 }
 0x168   : > { %v916_v54 = vmax.f32 %v912_v51, %v914_v52  ;;  %826 = vst.msk [vmem:[#allocation2 + $0xc0] sm:$0xff] %vm801_vm3, %v793_v50  ;;  %v1110_v50 = vld [vmem:[#allocation3 + $0x7] sm:$0xff]  ;;  %v1293_v51 = vld [vmem:[#allocation3 + $0x18] sm:$0xff] }
 0x169   : > { %v6550_v52 = vld [vmem:[%s8710_s3 + $0x60] sm:$0xff] }
 0x16a   : > { %v917_v55 = vmax.f32 %v915_v53, %v916_v54 }
 0x16b   : > { %v751_v56 = vpop.f32.mrf.mxu0  ;;  %1528 = vmatpush.bf16.msra.mxu1 %v6550_v52 }
 0x16c   : > { %918 = vst.msk [vmem:[#allocation3 + $0x43] sm:$0xff] %vm801_vm3, %v917_v55  ;;  %v752_v57 = vadd.f32 %v7003_v16, %v751_v56  ;;  %v1292_v55 = vld [vmem:[#allocation3 + $0x10] sm:$0xff]  ;;  %v1120_v56 = vpack.c.bf16 %v7096_v48, %v1110_v50  ;;  %v1295_v48 = vld [vmem:[#allocation3 + $0x28] sm:$0xff] }
 0x16e   : > { %v794_v59 = vmax.f32 %v752_v57, 0.0  ;;  %v7188_v57 = vpack.c.bf16 %v1293_v51, %v1292_v55 }
 0x170   : > { %827 = vst.msk [vmem:[#allocation2 + $0xc8] sm:$0xff] %vm801_vm3, %v794_v59 }
 0x173   : > { %v754_v61 = vpop.f32.mrf.mxu0  ;;  %v975_v63 = vld [vmem:[#allocation3 + $0x3e] sm:$0xff] }
 0x174   : > { %v956_v1 = vld [vmem:[#allocation3 + $0x3d] sm:$0xff]  ;;  %v755_v3 = vadd.f32 %v7003_v16, %v754_v61  ;;  %v981_v4 = vpack.c.bf16 %v975_v63, %v974_v60  ;;  %v957_v29 = vld [vmem:[#allocation3 + $0x45] sm:$0xff]  ;;  %v6548_v63 = vld [vmem:[%s8710_s3 + $0x50] sm:$0xff] }
 0x175   : > { %v962_v5 = vpack.c.bf16 %v956_v1, %v955_v0  ;;  %v7169_v41 = vld [vmem:[#allocation3 + $0x3f] sm:$0xff] }
 0x176   : > { %v795_v7 = vmax.f32 %v755_v3, 0.0  ;;  %5425 = vmatmul.msk.bf16.vlgmr.msra.gmra.mxu3 %vm801_vm3, %v981_v4  ;;  %v1294_v4 = vld [vmem:[#allocation3 + $0x20] sm:$0xff] }
 0x177   : > { %5438 = vmatmul.msk.bf16.gmra.mxu2 %vm801_vm3, %v962_v5  ;;  %v920_v17 = vld [vmem:[#allocation2 + $0xc0] ss:$2 sm:$0xff]  ;;  %v922_v18 = vld [vmem:[#allocation2 + $0xc1] ss:$2 sm:$0xff]  ;;  %1436 = vmatpush.bf16.msra.mxu3 %v6549_v27  ;;  %v7197_v5 = vpack.c.bf16 %v1295_v48, %v1294_v4 }
 0x178   : > { %828 = vst.msk [vmem:[#allocation2 + $0xd0] sm:$0xff] %vm801_vm3, %v795_v7  ;;  %v927_v22 = vmax.f32 %v920_v17, %v922_v18  ;;  %v6552_v18 = vld [vmem:[%s8710_s3 + $0x70] sm:$0xff]  ;;  %v7252_v27 = vld [vmem:[#allocation3 + $0x41] sm:$0xff] }
 0x17b   : > { %v756_v9 = vpop.f32.mrf.mxu0  ;;  %1437 = vmatpush.bf16.msra.mxu3 %v6548_v63 }
 0x17c   : > { %v757_v10 = vadd.f32 %v7003_v16, %v756_v9  ;;  %v7208_v9 = vld [vmem:[#allocation3 + $0x21] sm:$0xff] }
 0x17e   : > { %v796_v11 = vmax.f32 %v757_v10, 0.0  ;;  %v1297_v10 = vld [vmem:[#allocation3 + $0x38] sm:$0xff] }
 0x180   : > { %829 = vst.msk [vmem:[#allocation2 + $0xd8] sm:$0xff] %vm801_vm3, %v796_v11  ;;  %v1474_v11 = vld [vmem:[#allocation3 + $0x19] sm:$0xff] }
 0x181   : > { %v1484_v13 = vpack.c.bf16 %v7208_v9, %v1474_v11 }
 0x183   : > { %v759_v14 = vpop.f32.mrf.mxu0 }
 0x184   : > { %v760_v15 = vadd.f32 %v7003_v16, %v759_v14  ;;  %v7211_v14 = vpack.c.bf16 %v1297_v10, %v1296_v12  ;;  %v6537_v12 = vld [vmem:[%s8688_s6 + $0x8] sm:$0xff] }
 0x186   : > { %v797_v19 = vmax.f32 %v760_v15, 0.0  ;;  %v7227_v15 = vpop.f32.mrf.mxu1 }
 0x187   : > { %v924_v20 = vld [vmem:[#allocation2 + $0xd0] ss:$2 sm:$0xff]  ;;  %v926_v21 = vld [vmem:[#allocation2 + $0xd1] ss:$2 sm:$0xff] }
 0x188   : > { %v928_v23 = vmax.f32 %v924_v20, %v926_v21  ;;  %830 = vst.msk [vmem:[#allocation2 + $0xe0] sm:$0xff] %vm801_vm3, %v797_v19  ;;  %v1123_v19 = vpack.c.bf16 %v7169_v41, %v7126_v31  ;;  %v1298_v20 = vld [vmem:[#allocation3 + $0x40] sm:$0xff]  ;;  %v1485_v21 = vpack.c.bf16 %v7231_v2, %v1476_v62 }
 0x18a   : > { %v929_v24 = vmax.f32 %v927_v22, %v928_v23  ;;  %v6555_v23 = vld [vmem:[%s8710_s3 + $0x88] sm:$0xff] }
 0x18b   : > { %v761_v25 = vpop.f32.mrf.mxu0 }
 0x18c   : > { %930 = vst.msk [vmem:[#allocation3 + $0x4d] sm:$0xff] %vm801_vm3, %v929_v24  ;;  %v762_v26 = vadd.f32 %v7003_v16, %v761_v25 }
 0x18e   : > { %v798_v28 = vmax.f32 %v762_v26, 0.0 }
 0x190   : > { %831 = vst.msk [vmem:[#allocation2 + $0xe8] sm:$0xff] %vm801_vm3, %v798_v28 }
 0x193   : > { %v764_v30 = vpop.f32.mrf.mxu0  ;;  %v976_v32 = vld [vmem:[#allocation3 + $0x46] sm:$0xff]  ;;  %v977_v33 = vld [vmem:[#allocation3 + $0x4e] sm:$0xff]  ;;  %v1029_v24 = vpop.f32.mrf.mxu1 }
 0x194   : > { %v958_v34 = vld [vmem:[#allocation3 + $0x4d] sm:$0xff]  ;;  %v765_v35 = vadd.f32 %v7003_v16, %v764_v30  ;;  %v982_v38 = vpack.c.bf16 %v977_v33, %v976_v32  ;;  %v1478_v30 = vld [vmem:[#allocation3 + $0x39] sm:$0xff] }
 0x195   : > { %v963_v39 = vpack.c.bf16 %v958_v34, %v957_v29  ;;  %v7171_v42 = vld [vmem:[#allocation3 + $0x47] sm:$0xff]  ;;  %v1209_v0 = vld [vmem:[#allocation3 + $0x4f] sm:$0xff]  ;;  %v1486_v33 = vpack.c.bf16 %v7252_v27, %v1478_v30 }
 0x196   : > { %v1214_v43 = vpack.c.bf16 %v7171_v42, %v7169_v41  ;;  %v799_v44 = vmax.f32 %v765_v35, 0.0  ;;  %5426 = vmatmul.msk.bf16.gmra.mxu3 %vm801_vm3, %v982_v38  ;;  %v1124_v32 = vpack.c.bf16 %v1209_v0, %v7171_v42  ;;  %v1383_v42 = vld [vmem:[#allocation3 + $0x11] sm:$0xff] }
 0x197   : > { %5439 = vmatmul.msk.bf16.gmra.mxu2 %vm801_vm3, %v963_v39  ;;  %v932_v53 = vld [vmem:[#allocation2 + $0xe0] ss:$2 sm:$0xff]  ;;  %v934_v54 = vld [vmem:[#allocation2 + $0xe1] ss:$2 sm:$0xff] }
 0x198   : > { %5472 = vmatmul.msk.bf16.gmra.mxu1 %vm801_vm3, %v1214_v43  ;;  %832 = vst.msk [vmem:[#allocation2 + $0xf0] sm:$0xff] %vm801_vm3, %v799_v44  ;;  %v939_v58 = vmax.f32 %v932_v53, %v934_v54  ;;  %v1566_v43 = vld [vmem:[#allocation3 + $0x22] sm:$0xff] }
 0x199   : > { %v1480_v44 = vld [vmem:[#allocation3 + $0x49] sm:$0xff]  ;;  %v6554_v53 = vld [vmem:[%s8710_s3 + $0x80] sm:$0xff] }
 0x19a   : > { %v1483_v54 = vld [vmem:[#allocation3 + $0x61] sm:$0xff] }
 0x19b   : > { %v766_v45 = vpop.f32.mrf.mxu0 }
 0x19c   : > { %v767_v47 = vadd.f32 %v7003_v16, %v766_v45  ;;  %v1393_v45 = vpack.c.bf16 %v1474_v11, %v1383_v42 }
 0x19e   : > { %v800_v49 = vmax.f32 %v767_v47, 0.0  ;;  %v1565_v47 = vld [vmem:[#allocation3 + $0x1a] sm:$0xff] }
 0x1a0   : > { %833 = vst.msk [vmem:[#allocation2 + $0xf8] sm:$0xff] %vm801_vm3, %v800_v49  ;;  %v1575_v49 = vpack.c.bf16 %v1566_v43, %v1565_v47 }
 0x1a6   : > { %5452 = vmatmul.msk.bf16.vlgmr.msrb.gmra.mxu3 %vm801_vm3, %v1120_v56  ;;  %v1568_v56 = vld [vmem:[#allocation3 + $0x32] sm:$0xff] }
 0x1a7   : > { %5486 = vmatmul.msk.bf16.vlgmr.msra.gmra.mxu2 %vm801_vm3, %v7188_v57  ;;  %v936_v16 = vld [vmem:[#allocation2 + $0xf0] ss:$2 sm:$0xff]  ;;  %v938_v59 = vld [vmem:[#allocation2 + $0xf1] ss:$2 sm:$0xff]  ;;  %1709 = vmatpush.bf16.msrb.mxu3 %v6555_v23 }
 0x1a8   : > { %v940_v60 = vmax.f32 %v936_v16, %v938_v59  ;;  %v1394_v16 = vpack.c.bf16 %v1476_v62, %v7208_v9  ;;  %v1567_v59 = vld [vmem:[#allocation3 + $0x2a] sm:$0xff] }
 0x1aa   : > { %v941_v61 = vmax.f32 %v939_v58, %v940_v60  ;;  %v1576_v60 = vpack.c.bf16 %v1568_v56, %v1567_v59 }
 0x1ab   : > { %1710 = vmatpush.bf16.msrb.mxu3 %v6554_v53 }
 0x1ac   : > { %942 = vst.msk [vmem:[#allocation3 + $0x57] sm:$0xff] %vm801_vm3, %v941_v61  ;;  %v6567_v61 = vld [vmem:[%s8687_s5 + $0x58] sm:$0xff] }
 0x1ad   : > { %2239 = vmatpush.bf16.msrb.mxu0 %v6567_v61 }
 0x1b3   : > { %v1210_v1 = vld [vmem:[#allocation3 + $0x57] sm:$0xff] }
 0x1b4   : > { %v1215_v3 = vpack.c.bf16 %v1210_v1, %v1209_v0  ;;  %v1300_v28 = vld [vmem:[#allocation3 + $0x50] sm:$0xff]  ;;  %v1301_v29 = vld [vmem:[#allocation3 + $0x58] sm:$0xff]  ;;  %v1570_v0 = vld [vmem:[#allocation3 + $0x42] sm:$0xff]  ;;  %v1395_v1 = vpack.c.bf16 %v1478_v30, %v7231_v2 }
 0x1b5   : > { %v7256_v34 = vpack.c.bf16 %v1301_v29, %v1300_v28  ;;  %v7266_v41 = vld [vmem:[#allocation3 + $0x51] sm:$0xff]  ;;  %v1482_v55 = vld [vmem:[#allocation3 + $0x59] sm:$0xff] }
 0x1b6   : > { %5453 = vmatmul.msk.bf16.gmra.mxu3 %vm801_vm3, %v1121_v40  ;;  %5473 = vmatmul.msk.bf16.gmra.mxu1 %vm801_vm3, %v1215_v3  ;;  %v6553_v40 = vld [vmem:[%s8710_s3 + $0x78] sm:$0xff]  ;;  %v1487_v46 = vpack.c.bf16 %v7266_v41, %v1480_v44  ;;  %v1488_v58 = vpack.c.bf16 %v1483_v54, %v1482_v55  ;;  %s6789_s3 = scalar_lea.hbm %s6788_s2, 1 }
 0x1b7   : > { %5487 = vmatmul.msk.bf16.gmra.mxu2 %vm801_vm3, %v7197_v5  ;;  %v1569_v3 = vld [vmem:[#allocation3 + $0x3a] sm:$0xff]  ;;  %p6790_p11 = scmp.ne.s32.totalorder %s6788_s2, %s6789_s3  ;;  %p6795_p1 = scmp.lt.s32.totalorder %s6793_s17, %s6789_s3 }
 0x1b8   : > { %1618 = vmatpush.bf16.msrb.mxu2 %v6553_v40  ;;  %v1577_v4 = vpack.c.bf16 %v1570_v0, %v1569_v3  ;;  %v1573_v42 = vld [vmem:[#allocation3 + $0x5a] sm:$0xff] }
 0x1b9   : > { %v1034_v7 = vpop.f32.mrf.mxu2  ;;  %p6791_p12 = pnand %p6790_p11, %p6958_p5  ;;  %p6796_p2 = por %p6795_p1, %p6794_p0 }
 0x1bb   : > { %p6792_p13 = pneg %p6791_p12 }
 0x1bc   : > { %1619 = vmatpush.bf16.msrb.mxu2 %v6552_v18  ;;  %v6536_v18 = vld [vmem:[%s8688_s6] sm:$0xff] }
 0x1bd   : > { %p6797_p3 = pnand %p6796_p2, %p6792_p13 }
 0x1c0   : > { %2037 = vmatpush.bf16.msra.mxu2 %v6537_v12 }
 0x1c1   : > { %v7206_v8 = vpop.f32.mrf.mxu2 }
 0x1c4   : > { %2038 = vmatpush.bf16.msra.mxu2 %v6536_v18 }
 0x1c6   : > { %5454 = vmatmul.msk.bf16.gmra.mxu3 %vm801_vm3, %v1122_v6  ;;  %5520 = vmatmul.msk.bf16.vlgmr.msra.gmra.mxu1 %vm801_vm3, %v1484_v13  ;;  %v1299_v6 = vld [vmem:[#allocation3 + $0x48] sm:$0xff] }
 0x1c7   : > { %5488 = vmatmul.msk.bf16.gmra.mxu2 %vm801_vm3, %v7211_v14  ;;  %v7239_v22 = vpack.c.bf16 %v1299_v6, %v1298_v20  ;;  %v1572_v6 = vld [vmem:[#allocation3 + $0x52] sm:$0xff]  ;;  %v1571_v20 = vld [vmem:[#allocation3 + $0x4a] sm:$0xff] }
 0x1c9   : > { %v7222_v37 = vpop.f32.mrf.mxu2 }
 0x1ca   : > { %v1086_v23 = vadd.f32 %v7222_v37, %v7218_v36 }
 0x1d1   : > { %v7229_v17 = vpop.f32.mrf.mxu2 }
 0x1d6   : > { %5455 = vmatmul.msk.bf16.gmra.mxu3 %vm801_vm3, %v1123_v19  ;;  %5521 = vmatmul.msk.bf16.gmra.mxu1 %vm801_vm3, %v1485_v21  ;;  %v1396_v19 = vpack.c.bf16 %v1480_v44, %v7252_v27  ;;  %v1578_v21 = vpack.c.bf16 %v1572_v6, %v1571_v20  ;;  %v1088_v27 = vadd.f32 %v7229_v17, %v7227_v15  ;;  %v1574_v44 = vld [vmem:[#allocation3 + $0x62] sm:$0xff] }
 0x1d7   : > { %5489 = vmatmul.msk.bf16.gmra.mxu2 %vm801_vm3, %v7239_v22  ;;  %v1579_v36 = vpack.c.bf16 %v1574_v44, %v1573_v42  ;;  %v6559_v44 = vld [vmem:[%s8687_s5 + $0x18] sm:$0xff] }
 0x1d8   : > { %1974 = vmatpush.bf16.msrb.mxu1 %v6559_v44 }
 0x1d9   : > { %v1090_v25 = vpop.f32.mrf.mxu2 }
 0x1da   : > { %v7248_v31 = vadd.f32 %v1090_v25, %v1029_v24 }
 0x1e1   : > { %v7250_v26 = vpop.f32.mrf.mxu2 }
 0x1e6   : > { %5456 = vmatmul.msk.bf16.gmra.mxu3 %vm801_vm3, %v1124_v32  ;;  %5522 = vmatmul.msk.bf16.gmra.mxu1 %vm801_vm3, %v1486_v33 }
 0x1e7   : > { %5490 = vmatmul.msk.bf16.gmra.mxu2 %vm801_vm3, %v7256_v34 }
 0x1e9   : > { %v1095_v35 = vpop.f32.mrf.mxu2 }
 0x1ea   : > { %v7262_v38 = vadd.f32 %v1095_v35, %v1034_v7  ;;  %v1031_v7 = vpop.f32.mrf.mxu1 }
 0x1eb   : > { %v1093_v54 = vadd.f32 %v7250_v26, %v1031_v7  ;;  %v6566_v7 = vld [vmem:[%s8687_s5 + $0x50] sm:$0xff] }
 0x1ec   : > { %2240 = vmatpush.bf16.msrb.mxu0 %v6566_v7  ;;  %v1747_v7 = vlaneseq }
 0x1f1   : > { %v7264_v39 = vpop.f32.mrf.mxu2 }
 0x1f2   : > { %v1257_v13 = vpop.f32.mrf.mxu1 }
 0x1f6   : > { %5503 = vmatmul.msk.bf16.vlgmr.msra.gmra.mxu3 %vm801_vm3, %v1393_v45  ;;  %5523 = vmatmul.msk.bf16.gmra.mxu1 %vm801_vm3, %v1487_v46  ;;  %v1397_v46 = vpack.c.bf16 %v1482_v55, %v7266_v41  ;;  %v1657_v41 = vld [vmem:[#allocation3 + $0x23] sm:$0xff] }
 0x1f7   : > { %5537 = vmatmul.msk.bf16.vlgmr.msrb.gmra.mxu2 %vm801_vm3, %v1575_v49 }
 0x1f9   : > { %v1039_v50 = vpop.f32.mrf.mxu3 }
 0x1fa   : > { %v1100_v51 = vpop.f32.mrf.mxu2  ;;  %v1259_v29 = vpop.f32.mrf.mxu1 }
 0x1fb   : > { %v7272_v52 = vadd.f32 %v1100_v51, %v1039_v50 }
 0x201   : > { %v7284_v63 = vpop.f32.mrf.mxu3 }
 0x202   : > { %v7286_v48 = vpop.f32.mrf.mxu2  ;;  %v1262_v47 = vpop.f32.mrf.mxu1 }
 0x206   : > { %5504 = vmatmul.msk.bf16.gmra.mxu3 %vm801_vm3, %v1394_v16  ;;  %5524 = vmatmul.msk.bf16.gmra.mxu1 %vm801_vm3, %v1488_v58  ;;  %v1656_v16 = vld [vmem:[#allocation3 + $0x1b] sm:$0xff] }
 0x207   : > { %5538 = vmatmul.msk.bf16.gmra.mxu2 %vm801_vm3, %v1576_v60  ;;  %v1666_v60 = vpack.c.bf16 %v1657_v41, %v1656_v16  ;;  %v6557_v41 = vld [vmem:[%s8687_s5 + $0x8] sm:$0xff] }
 0x20a   : > { %v1264_v53 = vpop.f32.mrf.mxu1 }
 0x212   : > { %v1267_v0 = vpop.f32.mrf.mxu1 }
 0x216   : > { %5505 = vmatmul.msk.bf16.gmra.mxu3 %vm801_vm3, %v1395_v1 }
 0x217   : > { %5539 = vmatmul.msk.bf16.gmra.mxu2 %vm801_vm3, %v1577_v4 }
 0x219   : > { %v1044_v9 = vpop.f32.mrf.mxu3 }
 0x21a   : > { %v1105_v10 = vpop.f32.mrf.mxu2 }
 0x21b   : > { %v7291_v11 = vadd.f32 %v1105_v10, %v1044_v9  ;;  %v1098_v9 = vadd.f32 %v7264_v39, %v7206_v8  ;;  %v1269_v10 = vpop.f32.mrf.mxu1 }
 0x221   : > { %v1046_v40 = vpop.f32.mrf.mxu3 }
 0x222   : > { %v1107_v62 = vpop.f32.mrf.mxu2 }
 0x223   : > { %v7296_v2 = vadd.f32 %v1107_v62, %v1046_v40 }
 0x226   : > { %5506 = vmatmul.msk.bf16.gmra.mxu3 %vm801_vm3, %v1396_v19  ;;  %v1272_v19 = vpop.f32.mrf.mxu1 }
 0x227   : > { %5540 = vmatmul.msk.bf16.gmra.mxu2 %vm801_vm3, %v1578_v21 }
 0x229   : > { %v1166_v24 = vpop.f32.mrf.mxu3 }
 0x22a   : > { %v1348_v25 = vpop.f32.mrf.mxu2  ;;  %v1191_v28 = vadd.f32 %v1166_v24, %v1086_v23 }
 0x22c   : > { %v1282_v30 = vadd.f32 %v1257_v13, %v1191_v28  ;;  %v1659_v13 = vld [vmem:[#allocation3 + $0x33] sm:$0xff] }
 0x22e   : > { %v7306_v32 = vadd.f32 %v1348_v25, %v1282_v30  ;;  %v1661_v25 = vld [vmem:[#allocation3 + $0x43] sm:$0xff]  ;;  %v7338_v28 = vpop.f32.mrf.mxu1  ;;  %v1660_v30 = vld [vmem:[#allocation3 + $0x3b] sm:$0xff] }
 0x231   : > { %v1168_v33 = vpop.f32.mrf.mxu3 }
 0x232   : > { %v1350_v35 = vpop.f32.mrf.mxu2  ;;  %v1192_v43 = vadd.f32 %v1168_v33, %v1088_v27  ;;  %v1668_v27 = vpack.c.bf16 %v1661_v25, %v1660_v30 }
 0x234   : > { %v1283_v45 = vadd.f32 %v1259_v29, %v1192_v43 }
 0x236   : > { %v7311_v37 = vadd.f32 %v1350_v35, %v1283_v45  ;;  %5507 = vmatmul.msk.bf16.gmra.mxu3 %vm801_vm3, %v1397_v46  ;;  %v1277_v33 = vpop.f32.mrf.mxu1  ;;  %v1663_v46 = vld [vmem:[#allocation3 + $0x53] sm:$0xff] }
 0x237   : > { %5541 = vmatmul.msk.bf16.gmra.mxu2 %vm801_vm3, %v1579_v36 }
 0x239   : > { %v1171_v49 = vpop.f32.mrf.mxu3 }
 0x23a   : > { %v1193_v50 = vadd.f32 %v1171_v49, %v7248_v31  ;;  %v1353_v15 = vpop.f32.mrf.mxu2  ;;  %v6558_v49 = vld [vmem:[%s8687_s5 + $0x10] sm:$0xff] }
 0x23b   : > { %1975 = vmatpush.bf16.msrb.mxu1 %v6558_v49 }
 0x23c   : > { %v1284_v17 = vadd.f32 %v1262_v47, %v1193_v50  ;;  %v1662_v47 = vld [vmem:[#allocation3 + $0x4b] sm:$0xff] }
 0x23d   : > { %v1669_v36 = vpack.c.bf16 %v1663_v46, %v1662_v47 }
 0x23e   : > { %v7316_v51 = vadd.f32 %v1353_v15, %v1284_v17  ;;  %v1664_v15 = vld [vmem:[#allocation3 + $0x5b] sm:$0xff]  ;;  %v1665_v17 = vld [vmem:[#allocation3 + $0x63] sm:$0xff] }
 0x23f   : > { %1976 = vmatpush.bf16.msrb.mxu1 %v6557_v41 }
 0x241   : > { %v1173_v56 = vpop.f32.mrf.mxu3 }
 0x242   : > { %v1194_v55 = vadd.f32 %v1173_v56, %v1093_v54  ;;  %v1355_v58 = vpop.f32.mrf.mxu2 }
 0x244   : > { %v1285_v59 = vadd.f32 %v1264_v53, %v1194_v55  ;;  %v1670_v53 = vpack.c.bf16 %v1665_v17, %v1664_v15 }
 0x246   : > { %v7319_v61 = vadd.f32 %v1355_v58, %v1285_v59  ;;  %5554 = vmatmul.msk.bf16.vlgmr.msrb.gmra.mxu3 %vm801_vm3, %v1666_v60  ;;  %v6556_v59 = vld [vmem:[%s8687_s5] sm:$0xff] }
 0x247   : > { %5588 = vmatmul.msk.bf16.vlgmr.msra.gmra.mxu2 %vm801_vm3, %v7188_v57  ;;  %v1658_v57 = vld [vmem:[#allocation3 + $0x2b] sm:$0xff]  ;;  %1977 = vmatpush.bf16.msrb.mxu1 %v6556_v59 }
 0x248   : > { %v1667_v18 = vpack.c.bf16 %v1659_v13, %v1658_v57  ;;  %v6757_v13 = vld [vmem:[#allocation6] sm:$0xff] }
 0x249   : > { %v1176_v31 = vpop.f32.mrf.mxu3  ;;  %1879 = vst.msk [vmem:[#allocation4] sm:$0xff] %vm1878_vm4, %v6757_v13 }
 0x24a   : > { %v1195_v1 = vadd.f32 %v1176_v31, %v7262_v38  ;;  %v1358_v3 = vpop.f32.mrf.mxu2  ;;  %1880 = vst.msk [vmem:[#allocation4 + $0x8] sm:$0xff] %vm1878_vm4, %v6757_v13 }
 0x24b   : > { %1881 = vst.msk [vmem:[#allocation4 + $0x60] sm:$0xff] %vm1878_vm4, %v6757_v13 }
 0x24c   : > { %v1286_v26 = vadd.f32 %v1267_v0, %v1195_v1  ;;  %v7385_v0 = vpop.f32.mrf.mxu1  ;;  %1882 = vst.msk [vmem:[#allocation4 + $0x68] sm:$0xff] %vm1878_vm4, %v6757_v13 }
 0x24d   : > { %2954 = vst.msk [vmem:[#allocation5] sm:$0xff] %vm1878_vm4, %v6757_v13 }
 0x24e   : > { %v1377_v4 = vadd.f32 %v1358_v3, %v1286_v26  ;;  %2955 = vst.msk [vmem:[#allocation5 + $0x8] sm:$0xff] %vm1878_vm4, %v6757_v13 }
 0x24f   : > { %2956 = vst.msk [vmem:[#allocation5 + $0x60] sm:$0xff] %vm1878_vm4, %v6757_v13 }
 0x250   : > { %2957 = vst.msk [vmem:[#allocation5 + $0x68] sm:$0xff] %vm1878_vm4, %v6757_v13 }
 0x251   : > { %v1178_v12 = vpop.f32.mrf.mxu3 }
 0x252   : > { %v1196_v40 = vadd.f32 %v1178_v12, %v1098_v9  ;;  %v1360_v62 = vpop.f32.mrf.mxu2 }
 0x254   : > { %v1287_v6 = vadd.f32 %v1269_v10, %v1196_v40  ;;  %v6562_v10 = vld [vmem:[%s8687_s5 + $0x30] sm:$0xff]  ;;  %v7400_v40 = vshrl.u32 %v1747_v7, 7 }
 0x256   : > { %v7330_v38 = vadd.f32 %v1360_v62, %v1287_v6  ;;  %5555 = vmatmul.msk.bf16.gmra.mxu3 %vm801_vm3, %v1667_v18  ;;  %v1530_v62 = vpop.f32.mrf.mxu1  ;;  %v6561_v6 = vld [vmem:[%s8687_s5 + $0x28] sm:$0xff]  ;;  %v6575_v18 = vld [vmem:[%s8687_s5 + $0x98] sm:$0xff]  ;;  %v1750_v46 = vadd.s32 16, %v7400_v40 }
 0x257   : > { %5589 = vmatmul.msk.bf16.gmra.mxu2 %vm801_vm3, %v7197_v5 }
 0x258   : > { %2453 = vmatpush.bf16.msrb.mxu2 %v6575_v18  ;;  %v1760_v17 = vcvt.s32.f32 %v1750_v46  ;;  %v2065_v46 = vld [vmem:[#allocation4 + $0x6] sm:$0xff] }
 0x259   : > { %v1181_v20 = vpop.f32.mrf.mxu3 }
 0x25a   : > { %v1197_v8 = vadd.f32 %v1181_v20, %v7272_v52  ;;  %v1363_v39 = vpop.f32.mrf.mxu2  ;;  %v1758_v20 = vcvt.s32.f32 %v7400_v40 }
 0x25c   : > { %v1288_v21 = vadd.f32 %v1272_v19, %v1197_v8 }
 0x25e   : > { %v1379_v23 = vadd.f32 %v1363_v39, %v1288_v21  ;;  %v6560_v39 = vld [vmem:[%s8687_s5 + $0x20] sm:$0xff] }
 0x25f   : > { %v6564_v21 = vld [vmem:[%s8687_s5 + $0x40] sm:$0xff] }
 0x261   : > { %v7336_v24 = vpop.f32.mrf.mxu3 }
 0x262   : > { %v7340_v29 = vpop.f32.mrf.mxu2 }
 0x266   : > { %5556 = vmatmul.msk.bf16.gmra.mxu3 %vm801_vm3, %v1668_v27 }
 0x267   : > { %5590 = vmatmul.msk.bf16.gmra.mxu2 %vm801_vm3, %v7211_v14 }
 0x269   : > { %v1186_v5 = vpop.f32.mrf.mxu3 }
 0x26a   : > { %v1199_v52 = vadd.f32 %v1186_v5, %v7291_v11  ;;  %v1368_v43 = vpop.f32.mrf.mxu2  ;;  %v1749_v5 = vadd.s32 8, %v7400_v40 }
 0x26c   : > { %v1290_v35 = vadd.f32 %v1277_v33, %v1199_v52  ;;  %v6573_v52 = vld [vmem:[%s8687_s5 + $0x88] sm:$0xff]  ;;  %v1532_v33 = vpop.f32.mrf.mxu1 }
 0x26e   : > { %v7346_v42 = vadd.f32 %v1368_v43, %v1290_v35  ;;  %v1759_v43 = vcvt.s32.f32 %v1749_v5 }
 0x271   : > { %v7351_v45 = vpop.f32.mrf.mxu3 }
 0x272   : > { %v7389_v3 = vpop.f32.mrf.mxu2 }
 0x276   : > { %5557 = vmatmul.msk.bf16.gmra.mxu3 %vm801_vm3, %v1669_v36  ;;  %v6571_v36 = vld [vmem:[%s8687_s5 + $0x78] sm:$0xff] }
 0x277   : > { %5591 = vmatmul.msk.bf16.gmra.mxu2 %vm801_vm3, %v7239_v22  ;;  %2346 = vmatpush.bf16.msra.mxu1 %v6571_v36 }
 0x279   : > { %v1439_v14 = vpop.f32.mrf.mxu3 }
 0x27a   : > { %v7357_v11 = vadd.f32 %v1439_v14, %v7306_v32  ;;  %v6565_v32 = vld [vmem:[%s8687_s5 + $0x48] sm:$0xff]  ;;  %v1621_v19 = vpop.f32.mrf.mxu2 }
 0x27b   : > { %2241 = vmatpush.bf16.msrb.mxu0 %v6565_v32  ;;  %v1535_v32 = vpop.f32.mrf.mxu1 }
 0x27c   : > { %v1555_v15 = vadd.f32 %v1530_v62, %v7357_v11 }
 0x27e   : > { %v1646_v41 = vadd.f32 %v1621_v19, %v1555_v15 }
 0x27f   : > { %2242 = vmatpush.bf16.msrb.mxu0 %v6564_v21 }
 0x281   : > { %v7362_v50 = vpop.f32.mrf.mxu3 }
 0x282   : > { %v1623_v44 = vpop.f32.mrf.mxu2 }
 0x283   : > { %v1537_v18 = vpop.f32.mrf.mxu1 }
 0x286   : > { %5558 = vmatmul.msk.bf16.gmra.mxu3 %vm801_vm3, %v1670_v53 }
 0x287   : > { %5592 = vmatmul.msk.bf16.gmra.mxu2 %vm801_vm3, %v7256_v34  ;;  %v6839_v34 = vmov 10.0  }
 0x288   : > { %6755 = vrcp.f32 %v6839_v34  ;;  %v7451_v34 = vld [vmem:[%s8686_s4] ss:$0 sm:$0xff] }
 0x289   : > { %v1444_v22 = vpop.f32.mrf.mxu3 }
 0x28a   : > { %v7368_v54 = vadd.f32 %v1444_v22, %v7316_v51  ;;  %v1626_v59 = vpop.f32.mrf.mxu2 }
 0x28e   : > { %v6756_v51 = vpop.eup %6755 }
 0x28f   : > { %v1769_v60 = vmul.f32 10.0, %v6756_v51  ;;  %vm1773_vm5 = vweird.f32 %v6756_v51 }
 0x291   : > { %v7373_v56 = vpop.f32.mrf.mxu3  ;;  %v1770_v26 = vsub.f32 1.0, %v1769_v60 }
 0x293   : > { %v1771_v9 = vmul.f32 %v6756_v51, %v1770_v26 }
 0x295   : > { %v1772_v57 = vadd.f32 %v6756_v51, %v1771_v9 }
 0x297   : > { %v7414_v8 = vsel %vm1773_vm5, %v6756_v51, %v1772_v57 }
 0x298   : > { %v1775_v27 = vmul.f32 %v7414_v8, %v1758_v20  ;;  %v1776_v49 = vmul.f32 %v7414_v8, %v1759_v43  ;;  %v1777_v51 = vmul.f32 %v7414_v8, %v1760_v17 }
 0x299   : > { %v1449_v55 = vpop.f32.mrf.mxu3 }
 0x29a   : > { %v7378_v58 = vadd.f32 %v1449_v55, %v1377_v4  ;;  %v6563_v4 = vld [vmem:[%s8687_s5 + $0x38] sm:$0xff]  ;;  %v1785_v35 = vfloor.f32 %v1775_v27  ;;  %v1786_v22 = vfloor.f32 %v1776_v49  ;;  %v1465_v55 = vadd.f32 %v7362_v50, %v7311_v37 }
 0x29b   : > { %2132 = vmatpush.bf16.msra.mxu3 %v6563_v4  ;;  %v1787_v9 = vfloor.f32 %v1777_v51  ;;  %v1557_v27 = vadd.f32 %v1535_v32, %v7368_v54  ;;  %v1467_v49 = vadd.f32 %v7373_v56, %v7319_v61  ;;  %v7487_v56 = vadd.s32 40, %v7400_v40 }
 0x29c   : > { %v1795_v14 = vmul.f32 10.0, %v1785_v35  ;;  %v1796_v26 = vmul.f32 10.0, %v1786_v22  ;;  %v1556_v4 = vadd.f32 %v1532_v33, %v1465_v55 }
 0x29e   : > { %v1805_v53 = vsub.f32 %v1758_v20, %v1795_v14  ;;  %v1806_v13 = vsub.f32 %v1759_v43, %v1796_v26  ;;  %v1647_v62 = vadd.f32 %v1623_v44, %v1556_v4  ;;  %v1908_v44 = vld [vmem:[#allocation4 + $0x5] sm:$0xff]  ;;  %v1648_v14 = vadd.f32 %v1626_v59, %v1557_v27 }
 0x29f   : > { %2133 = vmatpush.bf16.msra.mxu3 %v6562_v10 }
 0x2a0   : > { %vm1815_vm6 = vcmp.gt.f32.partialorder %v1805_v53, 0.5  ;;  %vm1825_vm7 = vcmp.lt.f32.partialorder %v1805_v53, 8.5  ;;  %vm1816_vm9 = vcmp.gt.f32.partialorder %v1806_v13, 0.5  ;;  %vm1826_vm10 = vcmp.lt.f32.partialorder %v1806_v13, 8.5 }
 0x2a1   : > { %v7380_v16 = vpop.f32.mrf.mxu3  ;;  %vm7456_vm8 = vmand %vm1815_vm6, %vm1825_vm7  ;;  %v1763_v13 = vcvt.s32.f32 %v7487_v56  ;;  %v7527_v56 = vadd.s32 56, %v7400_v40 }
 0x2a2   : > { %vm7472_vm11 = vmand %vm1816_vm9, %vm1826_vm10 }
 0x2a3   : > { %2134 = vmatpush.bf16.msra.mxu3 %v6561_v6  ;;  %v1797_v6 = vmul.f32 10.0, %v1787_v9 }
 0x2a7   : > { %2135 = vmatpush.bf16.msra.mxu3 %v6560_v39  ;;  %v6570_v39 = vld [vmem:[%s8687_s5 + $0x70] sm:$0xff] }
 0x2a8   : > { %2347 = vmatpush.bf16.msra.mxu1 %v6570_v39 }
 0x2a9   : > { %v1454_v31 = vpop.f32.mrf.mxu3 }
 0x2aa   : > { %v7387_v1 = vadd.f32 %v1454_v31, %v1379_v23  ;;  %v6574_v23 = vld [vmem:[%s8687_s5 + $0x90] sm:$0xff]  ;;  %v1751_v31 = vadd.s32 24, %v7400_v40 }
 0x2ab   : > { %2454 = vmatpush.bf16.msrb.mxu2 %v6574_v23  ;;  %v7468_v23 = vadd.s32 32, %v7400_v40 }
 0x2ac   : > { %v1761_v50 = vcvt.s32.f32 %v1751_v31  ;;  %v1558_v31 = vadd.f32 %v1537_v18, %v1467_v49 }
 0x2ad   : > { %v1762_v36 = vcvt.s32.f32 %v7468_v23  ;;  %v1780_v23 = vmul.f32 %v7414_v8, %v1763_v13 }
 0x2ae   : > { %v1778_v20 = vmul.f32 %v7414_v8, %v1761_v50 }
 0x2af   : > { %2455 = vmatpush.bf16.msrb.mxu2 %v6573_v52  ;;  %v1807_v52 = vsub.f32 %v1760_v17, %v1797_v6  ;;  %v1779_v61 = vmul.f32 %v7414_v8, %v1762_v36 }
 0x2b0   : > { %v1788_v35 = vfloor.f32 %v1778_v20 }
 0x2b1   : > { %v7397_v12 = vpop.f32.mrf.mxu3  ;;  %vm1817_vm12 = vcmp.gt.f32.partialorder %v1807_v52, 0.5  ;;  %vm1827_vm13 = vcmp.lt.f32.partialorder %v1807_v52, 8.5 }
 0x2b2   : > { %v1798_v51 = vmul.f32 10.0, %v1788_v35  ;;  %vm7494_vm14 = vmand %vm1817_vm12, %vm1827_vm13 }
 0x2b9   : > { %v1459_v25 = vpop.f32.mrf.mxu3 }
 0x2ba   : > { %v7428_v30 = vadd.f32 %v1459_v25, %v7346_v42  ;;  %v6572_v42 = vld [vmem:[%s8687_s5 + $0x80] sm:$0xff]  ;;  %v1628_v25 = vpop.f32.mrf.mxu2 }
 0x2bb   : > { %2456 = vmatpush.bf16.msrb.mxu2 %v6572_v42  ;;  %v2172_v42 = vld [vmem:[#allocation4 + $0x7] sm:$0xff] }
 0x2c1   : > { %v7439_v47 = vpop.f32.mrf.mxu3 }
 0x2c2   : > { %v1631_v26 = vpop.f32.mrf.mxu2 }
 0x2c9   : > { %v1712_v60 = vpop.f32.mrf.mxu3 }
 0x2ca   : > { %v1737_v11 = vadd.f32 %v1712_v60, %v1646_v41  ;;  %v1540_v60 = vpop.f32.mrf.mxu1 }
 0x2cc   : > { %v1848_v7 = vadd.f32 %v7451_v34, %v1737_v11 }
 0x2ce   : > { %v1858_v10 = vmax.f32 %v1848_v7, 0.0  ;;  %v1808_v7 = vsub.f32 %v1761_v50, %v1798_v51 }
 0x2d0   : > { %v1868_v57 = vsel %vm7456_vm8, %v1858_v10, 0.0  ;;  %v1789_v10 = vfloor.f32 %v1779_v61  ;;  %vm1818_vm15 = vcmp.gt.f32.partialorder %v1808_v7, 0.5  ;;  %vm1828_vm0 = vcmp.lt.f32.partialorder %v1808_v7, 8.5 }
 0x2d1   : > { %1883 = vst.msk [vmem:[#allocation4 + $0x10] sm:$0xff] %vm1878_vm4, %v1868_v57  ;;  %v1714_v19 = vpop.f32.mrf.mxu3  ;;  %vm7510_vm1 = vmand %vm1818_vm15, %vm1828_vm0 }
 0x2d2   : > { %v1738_v21 = vadd.f32 %v1714_v19, %v1647_v62  ;;  %v1649_v62 = vadd.f32 %v1628_v25, %v1558_v31  ;;  %v7502_v19 = vadd.s32 48, %v7400_v40  ;;  %v1799_v50 = vmul.f32 10.0, %v1789_v10  ;;  %v1542_v52 = vpop.f32.mrf.mxu1 }
 0x2d3   : > { %v1559_v25 = vadd.f32 %v1540_v60, %v7378_v58  ;;  %v1469_v58 = vadd.f32 %v7380_v16, %v7330_v38  ;;  %v6569_v38 = vld [vmem:[%s8687_s5 + $0x68] sm:$0xff]  ;;  %v1103_v31 = vadd.f32 %v7286_v48, %v7284_v63 }
 0x2d4   : > { %v1849_v5 = vadd.f32 %v7451_v34, %v1738_v21  ;;  %2348 = vmatpush.bf16.msra.mxu1 %v6569_v38 }
 0x2d6   : > { %v1859_v43 = vmax.f32 %v1849_v5, 0.0  ;;  %v1764_v5 = vcvt.s32.f32 %v7502_v19 }
 0x2d8   : > { %v1869_v54 = vsel %vm7472_vm11, %v1859_v43, 0.0  ;;  %v1909_v15 = vld [vmem:[#allocation4 + $0xd] sm:$0xff] }
 0x2d9   : > { %v2066_v17 = vld [vmem:[#allocation4 + $0xe] sm:$0xff]  ;;  %1884 = vst.msk [vmem:[#allocation4 + $0x18] sm:$0xff] %vm1878_vm4, %v1869_v54  ;;  %v1717_v22 = vpop.f32.mrf.mxu3  ;;  %v1918_v32 = vpack.c.bf16 %v1909_v15, %v1908_v44  ;;  %v1809_v44 = vsub.f32 %v1762_v36, %v1799_v50  ;;  %v1650_v15 = vadd.f32 %v1631_v26, %v1559_v25 }
 0x2da   : > { %v7481_v53 = vld [vmem:[#allocation4 + $0xf] sm:$0xff]  ;;  %v2075_v41 = vpack.c.bf16 %v2066_v17, %v2065_v46  ;;  %v1739_v59 = vadd.f32 %v1717_v22, %v1648_v14  ;;  %v1790_v46 = vfloor.f32 %v1780_v23 }
 0x2db   : > { %v2182_v55 = vpack.c.bf16 %v7481_v53, %v2172_v42  ;;  %5575 = vmatmul.msk.bf16.vlgmr.msrb.gmra.mxu1 %vm1878_vm4, %v1918_v32  ;;  %v2386_v6 = vld [vmem:[#allocation4 + $0x10] sm:$0xff]  ;;  %v1633_v42 = vpop.f32.mrf.mxu2  ;;  %vm1819_vm2 = vcmp.gt.f32.partialorder %v1809_v44, 0.5  ;;  %vm1829_vm3 = vcmp.lt.f32.partialorder %v1809_v44, 8.5 }
 0x2dc   : > { %5617 = vmatmul.msk.bf16.vlgmr.msra.gmra.mxu3 %vm1878_vm4, %v2075_v41  ;;  %v1850_v11 = vadd.f32 %v7451_v34, %v1739_v59  ;;  %v1800_v60 = vmul.f32 10.0, %v1790_v46  ;;  %vm7539_vm5 = vmand %vm1819_vm2, %vm1829_vm3 }
 0x2dd   : > { %5646 = vmatmul.msk.bf16.vlgmr.msrb.gmra.mxu0 %vm1878_vm4, %v2182_v55  ;;  %v1781_v55 = vmul.f32 %v7414_v8, %v1764_v5 }
 0x2de   : > { %v1860_v9 = vmax.f32 %v1850_v11, 0.0  ;;  %v1560_v11 = vadd.f32 %v1542_v52, %v1469_v58  ;;  %v1810_v48 = vsub.f32 %v1763_v13, %v1800_v60  ;;  %v7550_v13 = vadd.s32 64, %v7400_v40 }
 0x2df   : > { %v1791_v7 = vfloor.f32 %v1781_v55 }
 0x2e0   : > { %v1870_v57 = vsel %vm7494_vm14, %v1860_v9, 0.0  ;;  %v2387_v18 = vld [vmem:[#allocation4 + $0x18] sm:$0xff]  ;;  %v1198_v9 = vadd.f32 %v7336_v24, %v1103_v31  ;;  %vm1820_vm6 = vcmp.gt.f32.partialorder %v1810_v48, 0.5  ;;  %vm1830_vm7 = vcmp.lt.f32.partialorder %v1810_v48, 8.5  ;;  %v5211_v48 = vld [vmem:[%s8695_s13 + $0x10] sm:$0xff] }
 0x2e1   : > { %1885 = vst.msk [vmem:[#allocation4 + $0x20] sm:$0xff] %vm1878_vm4, %v1870_v57  ;;  %v1719_v20 = vpop.f32.mrf.mxu3  ;;  %v2396_v39 = vpack.c.bf16 %v2387_v18, %v2386_v6  ;;  %v1910_v14 = vld [vmem:[#allocation4 + $0x15] sm:$0xff]  ;;  %v1545_v57 = vpop.f32.mrf.mxu1  ;;  %v1651_v6 = vadd.f32 %v1633_v42, %v1560_v11  ;;  %vm7555_vm9 = vmand %vm1820_vm6, %vm1830_vm7  ;;  %v7578_v31 = vadd.s32 72, %v7400_v40  ;;  %v6583_v40 = vld [vmem:[%s8687_s5 + $0xd8] sm:$0xff] }
 0x2e2   : > { %v1740_v21 = vadd.f32 %v1719_v20, %v1649_v62  ;;  %v2067_v49 = vld [vmem:[#allocation4 + $0x16] sm:$0xff]  ;;  %v1765_v62 = vcvt.s32.f32 %v7527_v56  ;;  %v1561_v52 = vadd.f32 %v1545_v57, %v7387_v1  ;;  %2667 = vmatpush.bf16.msra.mxu0 %v6583_v40 }
 0x2e3   : > { %5704 = vmatmul.msk.bf16.vlgmr.msrb.gmra.mxu2 %vm1878_vm4, %v2396_v39  ;;  %v7514_v54 = vld [vmem:[#allocation4 + $0x17] sm:$0xff]  ;;  %v1801_v39 = vmul.f32 10.0, %v1791_v7  ;;  %v1636_v50 = vpop.f32.mrf.mxu2 }
 0x2e4   : > { %v1851_v27 = vadd.f32 %v7451_v34, %v1740_v21  ;;  %v1289_v21 = vadd.f32 %v7338_v28, %v1198_v9  ;;  %v1782_v25 = vmul.f32 %v7414_v8, %v1765_v62  ;;  %v6579_v9 = vld [vmem:[%s8687_s5 + $0xb8] sm:$0xff] }
 0x2e5   : > { %v1811_v28 = vsub.f32 %v1764_v5, %v1801_v39  ;;  %2560 = vmatpush.bf16.msrb.mxu3 %v6579_v9 }
 0x2e6   : > { %v1861_v43 = vmax.f32 %v1851_v27, 0.0  ;;  %v1792_v46 = vfloor.f32 %v1782_v25  ;;  %v1380_v42 = vadd.f32 %v7340_v29, %v1289_v21 }
 0x2e7   : > { %vm1821_vm10 = vcmp.gt.f32.partialorder %v1811_v28, 0.5  ;;  %vm1831_vm12 = vcmp.lt.f32.partialorder %v1811_v28, 8.5  ;;  %v6581_v28 = vld [vmem:[%s8687_s5 + $0xc8] sm:$0xff] }
 0x2e8   : > { %v1871_v17 = vsel %vm7510_vm1, %v1861_v43, 0.0  ;;  %v1911_v22 = vld [vmem:[#allocation4 + $0x1d] sm:$0xff]  ;;  %v1471_v1 = vadd.f32 %v7397_v12, %v1380_v42  ;;  %v1802_v38 = vmul.f32 10.0, %v1792_v46  ;;  %v6568_v12 = vld [vmem:[%s8687_s5 + $0x60] sm:$0xff]  ;;  %vm7593_vm13 = vmand %vm1821_vm10, %vm1831_vm12 }
 0x2e9   : > { %v2068_v32 = vld [vmem:[#allocation4 + $0x1e] sm:$0xff]  ;;  %1886 = vst.msk [vmem:[#allocation4 + $0x28] sm:$0xff] %vm1878_vm4, %v1871_v17  ;;  %v1722_v36 = vpop.f32.mrf.mxu3  ;;  %v1919_v51 = vpack.c.bf16 %v1911_v22, %v1910_v14  ;;  %v1652_v22 = vadd.f32 %v1636_v50, %v1561_v52  ;;  %2349 = vmatpush.bf16.msra.mxu1 %v6568_v12  ;;  %v6591_v46 = vld [vmem:[%s8687_s5 + $0x118] sm:$0xff] }
 0x2ea   : > { %v7520_v41 = vld [vmem:[#allocation4 + $0x1f] sm:$0xff]  ;;  %v2076_v59 = vpack.c.bf16 %v2068_v32, %v2067_v49  ;;  %v1741_v16 = vadd.f32 %v1722_v36, %v1650_v15  ;;  %v1766_v49 = vcvt.s32.f32 %v7550_v13  ;;  %v1812_v57 = vsub.f32 %v1765_v62, %v1802_v38  ;;  %2881 = vmatpush.bf16.msra.mxu2 %v6591_v46 }
 0x2eb   : > { %v2183_v61 = vpack.c.bf16 %v7520_v41, %v7514_v54  ;;  %5576 = vmatmul.msk.bf16.gmra.mxu1 %vm1878_vm4, %v1919_v51  ;;  %v2388_v19 = vld [vmem:[#allocation4 + $0x20] sm:$0xff]  ;;  %v1547_v51 = vpop.f32.mrf.mxu1  ;;  %v1638_v11 = vpop.f32.mrf.mxu2 }
 0x2ec   : > { %5618 = vmatmul.msk.bf16.gmra.mxu3 %vm1878_vm4, %v2076_v59  ;;  %v1852_v26 = vadd.f32 %v7451_v34, %v1741_v16  ;;  %v1783_v60 = vmul.f32 %v7414_v8, %v1766_v49  ;;  %vm1822_vm15 = vcmp.gt.f32.partialorder %v1812_v57, 0.5  ;;  %vm1832_vm0 = vcmp.lt.f32.partialorder %v1812_v57, 8.5  ;;  %v6589_v57 = vld [vmem:[%s8687_s5 + $0x108] sm:$0xff] }
 0x2ed   : > { %5647 = vmatmul.msk.bf16.gmra.mxu0 %vm1878_vm4, %v2183_v61  ;;  %vm7624_vm2 = vmand %vm1822_vm15, %vm1832_vm0 }
 0x2ee   : > { %v1862_v63 = vmax.f32 %v1852_v26, 0.0  ;;  %v1562_v26 = vadd.f32 %v1547_v51, %v1471_v1  ;;  %vm6761_vm0 = vmpackc.low %vm7510_vm1, %vm7494_vm14 }
 0x2f0   : > { %v1872_v18 = vsel %vm7539_vm5, %v1862_v63, 0.0  ;;  %v2389_v20 = vld [vmem:[#allocation4 + $0x28] sm:$0xff]  ;;  %v1200_v63 = vadd.f32 %v7351_v45, %v7296_v2  ;;  %v6582_v2 = vld [vmem:[%s8687_s5 + $0xd0] sm:$0xff]  ;;  %v1653_v45 = vadd.f32 %v1638_v11, %v1562_v26 }
 0x2f1   : > { %1887 = vst.msk [vmem:[#allocation4 + $0x30] sm:$0xff] %vm1878_vm4, %v1872_v18  ;;  %v1724_v24 = vpop.f32.mrf.mxu3  ;;  %v2397_v23 = vpack.c.bf16 %v2389_v20, %v2388_v19  ;;  %v1912_v15 = vld [vmem:[#allocation4 + $0x25] sm:$0xff]  ;;  %v1793_v18 = vfloor.f32 %v1783_v60  ;;  %v1767_v19 = vcvt.s32.f32 %v7578_v31  ;;  %2668 = vmatpush.bf16.msra.mxu0 %v6582_v2  ;;  %v6588_v2 = vld [vmem:[%s8687_s5 + $0x100] sm:$0xff] }
 0x2f2   : > { %v1742_v27 = vadd.f32 %v1724_v24, %v1651_v6  ;;  %v2069_v58 = vld [vmem:[#allocation4 + $0x26] sm:$0xff]  ;;  %v1291_v50 = vadd.f32 %v7385_v0, %v1200_v63  ;;  %v6577_v0 = vld [vmem:[%s8687_s5 + $0xa8] sm:$0xff] }
 0x2f3   : > { %5705 = vmatmul.msk.bf16.gmra.mxu2 %vm1878_vm4, %v2397_v23  ;;  %v7561_v17 = vld [vmem:[#allocation4 + $0x27] sm:$0xff]  ;;  %v1550_v24 = vpop.f32.mrf.mxu1  ;;  %v1803_v52 = vmul.f32 10.0, %v1793_v18 }
 0x2f4   : > { %v1853_v43 = vadd.f32 %v7451_v34, %v1742_v27  ;;  %v6578_v20 = vld [vmem:[%s8687_s5 + $0xb0] sm:$0xff]  ;;  %v1563_v42 = vadd.f32 %v1550_v24, %v7428_v30  ;;  %v6587_v63 = vld [vmem:[%s8687_s5 + $0xf8] sm:$0xff] }
 0x2f5   : > { %2561 = vmatpush.bf16.msrb.mxu3 %v6578_v20  ;;  %2669 = vmatpush.bf16.msra.mxu0 %v6581_v28 }
 0x2f6   : > { %v1863_v14 = vmax.f32 %v1853_v43, 0.0  ;;  %v1784_v43 = vmul.f32 %v7414_v8, %v1767_v19  ;;  %2774 = vmatpush.bf16.msrb.mxu1 %v6587_v63 }
 0x2f8   : > { %v1873_v5 = vsel %vm7555_vm9, %v1863_v14, 0.0  ;;  %v1913_v32 = vld [vmem:[#allocation4 + $0x2d] sm:$0xff]  ;;  %v1641_v14 = vpop.f32.mrf.mxu2  ;;  %v1794_v30 = vfloor.f32 %v1784_v43 }
 0x2f9   : > { %v2070_v55 = vld [vmem:[#allocation4 + $0x2e] sm:$0xff]  ;;  %1888 = vst.msk [vmem:[#allocation4 + $0x38] sm:$0xff] %vm1878_vm4, %v1873_v5  ;;  %v1727_v29 = vpop.f32.mrf.mxu3  ;;  %v1920_v59 = vpack.c.bf16 %v1913_v32, %v1912_v15  ;;  %v1813_v5 = vsub.f32 %v1766_v49, %v1803_v52  ;;  %2562 = vmatpush.bf16.msrb.mxu3 %v6577_v0 }
 0x2fa   : > { %v7566_v36 = vld [vmem:[#allocation4 + $0x2f] sm:$0xff]  ;;  %v2077_v61 = vpack.c.bf16 %v2070_v55, %v2069_v58  ;;  %v1743_v16 = vadd.f32 %v1727_v29, %v1652_v22  ;;  %v6590_v58 = vld [vmem:[%s8687_s5 + $0x110] sm:$0xff]  ;;  %v1382_v22 = vadd.f32 %v7389_v3, %v1291_v50  ;;  %v1654_v3 = vadd.f32 %v1641_v14, %v1563_v42 }
 0x2fb   : > { %v2184_v56 = vpack.c.bf16 %v7566_v36, %v7561_v17  ;;  %5577 = vmatmul.msk.bf16.gmra.mxu1 %vm1878_vm4, %v1920_v59  ;;  %v2390_v21 = vld [vmem:[#allocation4 + $0x30] sm:$0xff]  ;;  %2882 = vmatpush.bf16.msra.mxu2 %v6590_v58  ;;  %vm1823_vm3 = vcmp.gt.f32.partialorder %v1813_v5, 0.5  ;;  %vm1833_vm6 = vcmp.lt.f32.partialorder %v1813_v5, 8.5 }
 0x2fc   : > { %5619 = vmatmul.msk.bf16.gmra.mxu3 %vm1878_vm4, %v2077_v61  ;;  %v1854_v7 = vadd.f32 %v7451_v34, %v1743_v16  ;;  %v6576_v32 = vld [vmem:[%s8687_s5 + $0xa0] sm:$0xff]  ;;  %v1473_v61 = vadd.f32 %v7439_v47, %v1382_v22  ;;  %v1804_v47 = vmul.f32 10.0, %v1794_v30  ;;  %vm7660_vm7 = vmand %vm1823_vm3, %vm1833_vm6  ;;  %v6586_v22 = vld [vmem:[%s8687_s5 + $0xf0] sm:$0xff] }
 0x2fd   : > { %5648 = vmatmul.msk.bf16.gmra.mxu0 %vm1878_vm4, %v2184_v56  ;;  %v6580_v55 = vld [vmem:[%s8687_s5 + $0xc0] sm:$0xff]  ;;  %2563 = vmatpush.bf16.msrb.mxu3 %v6576_v32  ;;  %vm6764_vm3 = vmpackc.low %vm7555_vm9, %vm7539_vm5 }
 0x2fe   : > { %v1864_v6 = vmax.f32 %v1854_v7, 0.0  ;;  %2670 = vmatpush.bf16.msra.mxu0 %v6580_v55  ;;  %v1552_v7 = vpop.f32.mrf.mxu1  ;;  %v1814_v20 = vsub.f32 %v1767_v19, %v1804_v47  ;;  %2775 = vmatpush.bf16.msrb.mxu1 %v6586_v22  ;;  %v2494_v55 = vld [vmem:[#allocation4 + $0x19] sm:$0xff]  ;;  %v2816_v63 = vld [vmem:[#allocation4 + $0x2b] sm:$0xff]  ;;  %vm6767_vm6 = vmpackc.low %vm7624_vm2, %vm7593_vm13 }
 0x2ff   : > { %v1564_v9 = vadd.f32 %v1552_v7, %v1473_v61  ;;  %2883 = vmatpush.bf16.msra.mxu2 %v6589_v57  ;;  %v5225_v19 = vld [vmem:[%s8696_s14] sm:$0x1] }
 0x300   : > { %v1874_v39 = vsel %vm7593_vm13, %v1864_v6, 0.0  ;;  %v2391_v62 = vld [vmem:[#allocation4 + $0x38] sm:$0xff]  ;;  %vm1824_vm10 = vcmp.gt.f32.partialorder %v1814_v20, 0.5  ;;  %vm1834_vm12 = vcmp.lt.f32.partialorder %v1814_v20, 8.5 }
 0x301   : > { %1889 = vst.msk [vmem:[#allocation4 + $0x40] sm:$0xff] %vm1878_vm4, %v1874_v39  ;;  %v1729_v23 = vpop.f32.mrf.mxu3  ;;  %v2398_v25 = vpack.c.bf16 %v2391_v62, %v2390_v21  ;;  %v1914_v51 = vld [vmem:[#allocation4 + $0x35] sm:$0xff]  ;;  %vm7674_vm15 = vmand %vm1824_vm10, %vm1834_vm12 }
 0x302   : > { %v1744_v27 = vadd.f32 %v1729_v23, %v1653_v45  ;;  %v2071_v29 = vld [vmem:[#allocation4 + $0x36] sm:$0xff]  ;;  %v1643_v45 = vpop.f32.mrf.mxu2  ;;  %vm6770_vm10 = vmpackc.low %vm7674_vm15, %vm7660_vm7 }
 0x303   : > { %5706 = vmatmul.msk.bf16.gmra.mxu2 %vm1878_vm4, %v2398_v25  ;;  %v7640_v59 = vld [vmem:[#allocation4 + $0x37] sm:$0xff]  ;;  %v1655_v39 = vadd.f32 %v1643_v45, %v1564_v9 }
 0x304   : > { %v1855_v8 = vadd.f32 %v7451_v34, %v1744_v27  ;;  %2884 = vmatpush.bf16.msra.mxu2 %v6588_v2  ;;  %v2817_v9 = vld [vmem:[#allocation4 + $0x33] sm:$0xff] }
 0x305   : > { %v2825_v57 = vpack.c.bf16 %v2817_v9, %v2816_v63  ;;  %v2708_v63 = vld [vmem:[#allocation4 + $0x22] sm:$0xff] }
 0x306   : > { %v1865_v1 = vmax.f32 %v1855_v8, 0.0 }
 0x308   : > { %v1875_v13 = vsel %vm7624_vm2, %v1865_v1, 0.0  ;;  %v1915_v49 = vld [vmem:[#allocation4 + $0x3d] sm:$0xff] }
 0x309   : > { %v2072_v56 = vld [vmem:[#allocation4 + $0x3e] sm:$0xff]  ;;  %1890 = vst.msk [vmem:[#allocation4 + $0x48] sm:$0xff] %vm1878_vm4, %v1875_v13  ;;  %v1732_v12 = vpop.f32.mrf.mxu3  ;;  %v1921_v16 = vpack.c.bf16 %v1915_v49, %v1914_v51 }
 0x30a   : > { %v7645_v38 = vld [vmem:[#allocation4 + $0x3f] sm:$0xff]  ;;  %v2078_v60 = vpack.c.bf16 %v2072_v56, %v2071_v29  ;;  %v1745_v26 = vadd.f32 %v1732_v12, %v1654_v3  ;;  %v2040_v32 = vpop.f32.mrf.mxu2  ;;  %v2493_v29 = vld [vmem:[#allocation4 + $0x11] sm:$0xff]  ;;  %v2289_v3 = vpack.c.bf16 %v7514_v54, %v7481_v53  ;;  %v2496_v54 = vld [vmem:[#allocation4 + $0x29] sm:$0xff] }
 0x30b   : > { %v2185_v11 = vpack.c.bf16 %v7645_v38, %v7640_v59  ;;  %5578 = vmatmul.msk.bf16.gmra.mxu1 %vm1878_vm4, %v1921_v16  ;;  %v2392_v62 = vld [vmem:[#allocation4 + $0x40] sm:$0xff]  ;;  %v2503_v61 = vpack.c.bf16 %v2494_v55, %v2493_v29  ;;  %v6585_v56 = vld [vmem:[%s8687_s5 + $0xe8] sm:$0xff] }
 0x30c   : > { %5620 = vmatmul.msk.bf16.gmra.mxu3 %vm1878_vm4, %v2078_v60  ;;  %v1856_v40 = vadd.f32 %v7451_v34, %v1745_v26  ;;  %v2601_v51 = vld [vmem:[#allocation4 + $0x21] sm:$0xff]  ;;  %2776 = vmatpush.bf16.msrb.mxu1 %v6585_v56  ;;  %v2290_v26 = vpack.c.bf16 %v7561_v17, %v7520_v41  ;;  %v6584_v41 = vld [vmem:[%s8687_s5 + $0xe0] sm:$0xff]  ;;  %v2291_v17 = vpack.c.bf16 %v7640_v59, %v7566_v36 }
 0x30d   : > { %5649 = vmatmul.msk.bf16.gmra.mxu0 %vm1878_vm4, %v2185_v11  ;;  %v2610_v13 = vpack.c.bf16 %v2601_v51, %v2494_v55  ;;  %v2815_v12 = vld [vmem:[#allocation4 + $0x23] sm:$0xff]  ;;  %v2814_v16 = vld [vmem:[#allocation4 + $0x1b] sm:$0xff]  ;;  %v2603_v11 = vld [vmem:[#allocation4 + $0x31] sm:$0xff]  ;;  %v2504_v47 = vpack.c.bf16 %v2496_v54, %v2601_v51 }
 0x30e   : > { %v1866_v18 = vmax.f32 %v1856_v40, 0.0  ;;  %v2824_v60 = vpack.c.bf16 %v2815_v12, %v2814_v16  ;;  %v2611_v7 = vpack.c.bf16 %v2603_v11, %v2496_v54  ;;  %v2609_v55 = vld [vmem:[#allocation4 + $0x61] sm:$0xff] }
 0x310   : > { %v1876_v21 = vsel %vm7660_vm7, %v1866_v18, 0.0  ;;  %v2393_v50 = vld [vmem:[#allocation4 + $0x48] sm:$0xff]  ;;  %v2498_v18 = vld [vmem:[#allocation4 + $0x39] sm:$0xff]  ;;  %2777 = vmatpush.bf16.msrb.mxu1 %v6584_v41 }
 0x311   : > { %1891 = vst.msk [vmem:[#allocation4 + $0x50] sm:$0xff] %vm1878_vm4, %v1876_v21  ;;  %v1734_v24 = vpop.f32.mrf.mxu3  ;;  %v2399_v23 = vpack.c.bf16 %v2393_v50, %v2392_v62  ;;  %v1916_v52 = vld [vmem:[#allocation4 + $0x45] sm:$0xff]  ;;  %v2505_v2 = vpack.c.bf16 %v2498_v18, %v2603_v11  ;;  %v2818_v62 = vld [vmem:[#allocation4 + $0x3b] sm:$0xff] }
 0x312   : > { %v1746_v25 = vadd.f32 %v1734_v24, %v1655_v39  ;;  %v2073_v43 = vld [vmem:[#allocation4 + $0x46] sm:$0xff]  ;;  %v7698_v49 = vpop.f32.mrf.mxu2 }
 0x313   : > { %5707 = vmatmul.msk.bf16.gmra.mxu2 %vm1878_vm4, %v2399_v23  ;;  %v7678_v0 = vld [vmem:[#allocation4 + $0x47] sm:$0xff] }
 0x314   : > { %v1857_v31 = vadd.f32 %v7451_v34, %v1746_v25  ;;  %v2605_v20 = vld [vmem:[#allocation4 + $0x41] sm:$0xff] }
 0x315   : > { %v2612_v39 = vpack.c.bf16 %v2605_v20, %v2498_v18  ;;  %v2819_v21 = vld [vmem:[#allocation4 + $0x43] sm:$0xff]  ;;  %v2707_v18 = vld [vmem:[#allocation4 + $0x1a] sm:$0xff] }
 0x316   : > { %v1867_v27 = vmax.f32 %v1857_v31, 0.0  ;;  %v2826_v50 = vpack.c.bf16 %v2819_v21, %v2818_v62  ;;  %v2292_v31 = vpack.c.bf16 %v7678_v0, %v7645_v38 }
 0x318   : > { %v1877_v28 = vsel %vm7674_vm15, %v1867_v27, 0.0  ;;  %v1917_v46 = vld [vmem:[#allocation4 + $0x4d] sm:$0xff] }
 0x319   : > { %v2074_v42 = vld [vmem:[#allocation4 + $0x4e] sm:$0xff]  ;;  %1892 = vst.msk [vmem:[#allocation4 + $0x58] sm:$0xff] %vm1878_vm4, %v1877_v28  ;;  %v1922_v14 = vpack.c.bf16 %v1917_v46, %v1916_v52 }
 0x31a   : > { %v7682_v8 = vld [vmem:[#allocation4 + $0x4f] sm:$0xff]  ;;  %v2079_v34 = vpack.c.bf16 %v2074_v42, %v2073_v43  ;;  %v7705_v53 = vpop.f32.mrf.mxu2 }
 0x31b   : > { %v2186_v58 = vpack.c.bf16 %v7682_v8, %v7678_v0  ;;  %5579 = vmatmul.msk.bf16.gmra.mxu1 %vm1878_vm4, %v1922_v14  ;;  %v2394_v1 = vld [vmem:[#allocation4 + $0x50] sm:$0xff] }
 0x31c   : > { %5621 = vmatmul.msk.bf16.gmra.mxu3 %vm1878_vm4, %v2079_v34  ;;  %v2500_v23 = vld [vmem:[#allocation4 + $0x49] sm:$0xff] }
 0x31d   : > { %5650 = vmatmul.msk.bf16.gmra.mxu0 %vm1878_vm4, %v2186_v58  ;;  %v2506_v27 = vpack.c.bf16 %v2500_v23, %v2605_v20  ;;  %v2820_v58 = vld [vmem:[#allocation4 + $0x4b] sm:$0xff]  ;;  %v2717_v20 = vpack.c.bf16 %v2708_v63, %v2707_v18 }
 0x320   : > { %v2395_v5 = vld [vmem:[#allocation4 + $0x58] sm:$0xff] }
 0x321   : > { %v2400_v30 = vpack.c.bf16 %v2395_v5, %v2394_v1  ;;  %v2607_v36 = vld [vmem:[#allocation4 + $0x51] sm:$0xff]  ;;  %v2822_v16 = vld [vmem:[#allocation4 + $0x5b] sm:$0xff] }
 0x322   : > { %v7712_v40 = vpop.f32.mrf.mxu2  ;;  %v2613_v52 = vpack.c.bf16 %v2607_v36, %v2500_v23  ;;  %v2821_v42 = vld [vmem:[#allocation4 + $0x53] sm:$0xff] }
 0x323   : > { %5708 = vmatmul.msk.bf16.gmra.mxu2 %vm1878_vm4, %v2400_v30  ;;  %v2827_v1 = vpack.c.bf16 %v2821_v42, %v2820_v58  ;;  %v2288_v5 = vld [vmem:[#allocation4 + $0x57] sm:$0xff] }
 0x324   : > { %v2502_v30 = vld [vmem:[#allocation4 + $0x59] sm:$0xff] }
 0x32a   : > { %v7720_v45 = vpop.f32.mrf.mxu2 }
 0x32b   : > { %5675 = vmatmul.msk.bf16.vlgmr.msra.gmra.mxu1 %vm1878_vm4, %v2289_v3  ;;  %v2293_v3 = vpack.c.bf16 %v2288_v5, %v7682_v8 }
 0x32c   : > { %5733 = vmatmul.msk.bf16.vlgmr.msrb.gmra.mxu3 %vm1878_vm4, %v2503_v61  ;;  %v2507_v61 = vpack.c.bf16 %v2502_v30, %v2607_v36 }
 0x32d   : > { %5762 = vmatmul.msk.bf16.vlgmr.msra.gmra.mxu0 %vm1878_vm4, %v2610_v13  ;;  %v2614_v13 = vpack.c.bf16 %v2609_v55, %v2502_v30  ;;  %v2712_v30 = vld [vmem:[#allocation4 + $0x42] sm:$0xff] }
 0x332   : > { %v7726_v24 = vpop.f32.mrf.mxu2 }
 0x333   : > { %5820 = vmatmul.msk.bf16.vlgmr.msra.gmra.mxu2 %vm1878_vm4, %v2824_v60  ;;  %v2823_v60 = vld [vmem:[#allocation4 + $0x63] sm:$0xff] }
 0x33a   : > { %v2055_v28 = vpop.f32.mrf.mxu2 }
 0x33b   : > { %5676 = vmatmul.msk.bf16.gmra.mxu1 %vm1878_vm4, %v2290_v26 }
 0x33c   : > { %5734 = vmatmul.msk.bf16.gmra.mxu3 %vm1878_vm4, %v2504_v47  ;;  %v2828_v47 = vpack.c.bf16 %v2823_v60, %v2822_v16 }
 0x33d   : > { %5763 = vmatmul.msk.bf16.gmra.mxu0 %vm1878_vm4, %v2611_v7 }
 0x343   : > { %5821 = vmatmul.msk.bf16.gmra.mxu2 %vm1878_vm4, %v2825_v57 }
 0x34b   : > { %5677 = vmatmul.msk.bf16.gmra.mxu1 %vm1878_vm4, %v2291_v17 }
 0x34c   : > { %5735 = vmatmul.msk.bf16.gmra.mxu3 %vm1878_vm4, %v2505_v2 }
 0x34d   : > { %5764 = vmatmul.msk.bf16.gmra.mxu0 %vm1878_vm4, %v2612_v39 }
 0x353   : > { %5822 = vmatmul.msk.bf16.gmra.mxu2 %vm1878_vm4, %v2826_v50 }
 0x358   : > { %v1979_v59 = vpop.f32.mrf.mxu1 }
 0x359   : > { %v2041_v43 = vadd.f32 %v2040_v32, %v1979_v59  ;;  %v7742_v32 = vpop.f32.mrf.mxu2  ;;  %v2710_v59 = vld [vmem:[#allocation4 + $0x32] sm:$0xff] }
 0x35a   : > { %v2244_v25 = vpop.f32.mrf.mxu0 }
 0x35b   : > { %5678 = vmatmul.msk.bf16.gmra.mxu1 %vm1878_vm4, %v2292_v31  ;;  %v2709_v31 = vld [vmem:[#allocation4 + $0x2a] sm:$0xff] }
 0x35c   : > { %5736 = vmatmul.msk.bf16.gmra.mxu3 %vm1878_vm4, %v2506_v27  ;;  %v2718_v27 = vpack.c.bf16 %v2710_v59, %v2709_v31  ;;  %v2715_v59 = vld [vmem:[#allocation4 + $0x5a] sm:$0xff] }
 0x35d   : > { %5765 = vmatmul.msk.bf16.gmra.mxu0 %vm1878_vm4, %v2613_v52 }
 0x35f   : > { %v2137_v46 = vpop.f32.mrf.mxu3 }
 0x360   : > { %v2162_v14 = vadd.f32 %v2137_v46, %v2041_v43  ;;  %v7733_v34 = vpop.f32.mrf.mxu1 }
 0x361   : > { %v2060_v7 = vpop.f32.mrf.mxu2 }
 0x362   : > { %v7735_v22 = vpop.f32.mrf.mxu0  ;;  %v7737_v38 = vadd.f32 %v2244_v25, %v2162_v14 }
 0x363   : > { %5823 = vmatmul.msk.bf16.gmra.mxu2 %vm1878_vm4, %v2827_v1 }
 0x367   : > { %v7740_v0 = vpop.f32.mrf.mxu3 }
 0x368   : > { %v1984_v51 = vpop.f32.mrf.mxu1 }
 0x369   : > { %v2046_v56 = vadd.f32 %v7705_v53, %v1984_v51  ;;  %v7759_v41 = vpop.f32.mrf.mxu2 }
 0x36a   : > { %v2249_v29 = vpop.f32.mrf.mxu0 }
 0x36b   : > { %5679 = vmatmul.msk.bf16.gmra.mxu1 %vm1878_vm4, %v2293_v3 }
 0x36c   : > { %5737 = vmatmul.msk.bf16.gmra.mxu3 %vm1878_vm4, %v2507_v61 }
 0x36d   : > { %5766 = vmatmul.msk.bf16.gmra.mxu0 %vm1878_vm4, %v2614_v13 }
 0x36f   : > { %v2142_v12 = vpop.f32.mrf.mxu3 }
 0x370   : > { %v2164_v54 = vadd.f32 %v2142_v12, %v2046_v56  ;;  %v7749_v11 = vpop.f32.mrf.mxu1 }
 0x371   : > { %v2458_v23 = vpop.f32.mrf.mxu2 }
 0x372   : > { %v7751_v26 = vpop.f32.mrf.mxu0  ;;  %v7753_v8 = vadd.f32 %v2249_v29, %v2164_v54  ;;  %v2711_v29 = vld [vmem:[#allocation4 + $0x3a] sm:$0xff] }
 0x373   : > { %5824 = vmatmul.msk.bf16.gmra.mxu2 %vm1878_vm4, %v2828_v47  ;;  %v2719_v3 = vpack.c.bf16 %v2712_v30, %v2711_v29  ;;  %v2714_v47 = vld [vmem:[#allocation4 + $0x52] sm:$0xff] }
 0x377   : > { %v7756_v9 = vpop.f32.mrf.mxu3 }
 0x378   : > { %v1989_v57 = vpop.f32.mrf.mxu1 }
 0x379   : > { %v2051_v17 = vadd.f32 %v7720_v45, %v1989_v57  ;;  %v7769_v46 = vpop.f32.mrf.mxu2  ;;  %v2713_v57 = vld [vmem:[#allocation4 + $0x4a] sm:$0xff] }
 0x37a   : > { %v2254_v53 = vpop.f32.mrf.mxu0 }
 0x37b   : > { %5791 = vmatmul.msk.bf16.vlgmr.msrb.gmra.mxu1 %vm1878_vm4, %v2717_v20 }
 0x37f   : > { %v2147_v2 = vpop.f32.mrf.mxu3 }
 0x380   : > { %v2166_v39 = vadd.f32 %v2147_v2, %v2051_v17  ;;  %v7762_v21 = vpop.f32.mrf.mxu1  ;;  %v6602_v2 = vld [vmem:[%s8690_s8 + $0x30] sm:$0xff] }
 0x381   : > { %v2463_v55 = vpop.f32.mrf.mxu2 }
 0x382   : > { %v2273_v62 = vadd.f32 %v2254_v53, %v2166_v39  ;;  %v7764_v50 = vpop.f32.mrf.mxu0  ;;  %v2720_v53 = vpack.c.bf16 %v2714_v47, %v2713_v57  ;;  %v6607_v47 = vld [vmem:[%s8690_s8 + $0x58] sm:$0xff] }
 0x383   : > { %3238 = vmatpush.bf16.msra.mxu1 %v6607_v47 }
 0x387   : > { %v7766_v36 = vpop.f32.mrf.mxu3 }
 0x388   : > { %v1994_v25 = vpop.f32.mrf.mxu1 }
 0x389   : > { %v2056_v43 = vadd.f32 %v2055_v28, %v1994_v25  ;;  %v6603_v28 = vld [vmem:[%s8690_s8 + $0x38] sm:$0xff]  ;;  %v7783_v54 = vpop.f32.mrf.mxu2 }
 0x38a   : > { %v2259_v52 = vpop.f32.mrf.mxu0  ;;  %3068 = vmatpush.bf16.msra.mxu3 %v6603_v28  ;;  %v2716_v25 = vld [vmem:[#allocation4 + $0x62] sm:$0xff] }
 0x38b   : > { %5792 = vmatmul.msk.bf16.gmra.mxu1 %vm1878_vm4, %v2718_v27  ;;  %v2721_v27 = vpack.c.bf16 %v2716_v25, %v2715_v59  ;;  %v6605_v59 = vld [vmem:[%s8690_s8 + $0x48] sm:$0xff]  ;;  %v6611_v25 = vld [vmem:[%s8690_s8 + $0x78] sm:$0xff] }
 0x38c   : > { %3345 = vmatpush.bf16.msrb.mxu2 %v6611_v25 }
 0x38e   : > { %3069 = vmatpush.bf16.msra.mxu3 %v6602_v2  ;;  %v6597_v2 = vld [vmem:[%s8690_s8 + $0x8] sm:$0xff] }
 0x38f   : > { %v2152_v45 = vpop.f32.mrf.mxu3 }
 0x390   : > { %v2168_v42 = vadd.f32 %v2152_v45, %v2056_v43  ;;  %v7771_v14 = vpop.f32.mrf.mxu1  ;;  %v6601_v45 = vld [vmem:[%s8690_s8 + $0x28] sm:$0xff] }
 0x392   : > { %v2275_v58 = vadd.f32 %v2259_v52, %v2168_v42  ;;  %v7773_v1 = vpop.f32.mrf.mxu0  ;;  %3070 = vmatpush.bf16.msra.mxu3 %v6601_v45  ;;  %v6596_v45 = vld [vmem:[%s8690_s8] sm:$0xff] }
 0x397   : > { %v7775_v5 = vpop.f32.mrf.mxu3 }
 0x398   : > { %v1999_v51 = vpop.f32.mrf.mxu1 }
 0x399   : > { %v2061_v61 = vadd.f32 %v2060_v7, %v1999_v51  ;;  %v2468_v7 = vpop.f32.mrf.mxu2 }
 0x39a   : > { %v2264_v12 = vpop.f32.mrf.mxu0 }
 0x39b   : > { %5793 = vmatmul.msk.bf16.gmra.mxu1 %vm1878_vm4, %v2719_v3 }
 0x39f   : > { %v2157_v13 = vpop.f32.mrf.mxu3 }
 0x3a0   : > { %v2170_v56 = vadd.f32 %v2157_v13, %v2061_v61  ;;  %v7781_v16 = vpop.f32.mrf.mxu1 }
 0x3a1   : > { %v7794_v39 = vpop.f32.mrf.mxu2 }
 0x3a2   : > { %v2277_v60 = vadd.f32 %v2264_v12, %v2170_v56  ;;  %v7813_v13 = vpop.f32.mrf.mxu0 }
 0x3a7   : > { %v7811_v3 = vpop.f32.mrf.mxu3 }
 0x3a8   : > { %v2351_v63 = vpop.f32.mrf.mxu1 }
 0x3a9   : > { %v2376_v18 = vadd.f32 %v2351_v63, %v7737_v38  ;;  %v2473_v52 = vpop.f32.mrf.mxu2 }
 0x3ab   : > { %5794 = vmatmul.msk.bf16.gmra.mxu1 %vm1878_vm4, %v2720_v53  ;;  %v7787_v20 = vadd.f32 %v2458_v23, %v2376_v18  ;;  %v6606_v18 = vld [vmem:[%s8690_s8 + $0x50] sm:$0xff]  ;;  %v6600_v53 = vld [vmem:[%s8690_s8 + $0x20] sm:$0xff] }
 0x3ac   : > { %3239 = vmatpush.bf16.msra.mxu1 %v6606_v18  ;;  %3071 = vmatpush.bf16.msra.mxu3 %v6600_v53 }
 0x3af   : > { %v2565_v12 = vpop.f32.mrf.mxu3 }
 0x3b0   : > { %v7789_v17 = vpop.f32.mrf.mxu1  ;;  %3240 = vmatpush.bf16.msra.mxu1 %v6605_v59 }
 0x3b1   : > { %v7805_v51 = vpop.f32.mrf.mxu2 }
 0x3b8   : > { %v2356_v31 = vpop.f32.mrf.mxu1 }
 0x3b9   : > { %v2378_v38 = vadd.f32 %v2356_v31, %v7753_v8  ;;  %v2567_v31 = vpop.f32.mrf.mxu3 }
 0x3bb   : > { %5795 = vmatmul.msk.bf16.gmra.mxu1 %vm1878_vm4, %v2721_v27  ;;  %v7798_v23 = vadd.f32 %v2463_v55, %v2378_v38  ;;  %v2478_v55 = vpop.f32.mrf.mxu2 }
 0x3c0   : > { %v7800_v43 = vpop.f32.mrf.mxu1 }
 0x3c1   : > { %v2570_v18 = vpop.f32.mrf.mxu3 }
 0x3c3   : > { %v7823_v63 = vpop.f32.mrf.mxu2 }
 0x3c8   : > { %v2361_v42 = vpop.f32.mrf.mxu1 }
 0x3c9   : > { %v2380_v30 = vadd.f32 %v2361_v42, %v2273_v62  ;;  %v6599_v62 = vld [vmem:[%s8690_s8 + $0x18] sm:$0xff]  ;;  %v6604_v42 = vld [vmem:[%s8690_s8 + $0x40] sm:$0xff] }
 0x3ca   : > { %3141 = vmatpush.bf16.msrb.mxu0 %v6599_v62  ;;  %3241 = vmatpush.bf16.msra.mxu1 %v6604_v42  ;;  %v7877_v42 = vld [vmem:[%s8689_s7] ss:$0 sm:$0xff] }
 0x3cb   : > { %v7807_v29 = vadd.f32 %v2468_v7, %v2380_v30  ;;  %v2672_v7 = vpop.f32.mrf.mxu0  ;;  %v2886_v38 = vpop.f32.mrf.mxu2  ;;  %v6610_v30 = vld [vmem:[%s8690_s8 + $0x70] sm:$0xff] }
 0x3cc   : > { %3346 = vmatpush.bf16.msrb.mxu2 %v6610_v30 }
 0x3d0   : > { %v7809_v8 = vpop.f32.mrf.mxu1 }
 0x3d3   : > { %v2674_v62 = vpop.f32.mrf.mxu0  ;;  %v2888_v53 = vpop.f32.mrf.mxu2 }
 0x3d8   : > { %v2366_v28 = vpop.f32.mrf.mxu1 }
 0x3d9   : > { %v2382_v61 = vadd.f32 %v2366_v28, %v2275_v58  ;;  %v6598_v58 = vld [vmem:[%s8690_s8 + $0x10] sm:$0xff] }
 0x3da   : > { %3142 = vmatpush.bf16.msrb.mxu0 %v6598_v58 }
 0x3db   : > { %v7815_v56 = vadd.f32 %v2473_v52, %v2382_v61  ;;  %v6609_v61 = vld [vmem:[%s8690_s8 + $0x68] sm:$0xff]  ;;  %v2677_v25 = vpop.f32.mrf.mxu0 }
 0x3dc   : > { %3347 = vmatpush.bf16.msrb.mxu2 %v6609_v61 }
 0x3de   : > { %3143 = vmatpush.bf16.msrb.mxu0 %v6597_v2 }
 0x3e0   : > { %v7825_v57 = vpop.f32.mrf.mxu1 }
 0x3e2   : > { %3144 = vmatpush.bf16.msrb.mxu0 %v6596_v45 }
 0x3e8   : > { %v2371_v27 = vpop.f32.mrf.mxu1 }
 0x3e9   : > { %v2384_v52 = vadd.f32 %v2371_v27, %v2277_v60  ;;  %v2043_v60 = vadd.f32 %v7698_v49, %v7733_v34  ;;  %v6615_v49 = vld [vmem:[%s8690_s8 + $0x98] sm:$0xff]  ;;  %v2590_v34 = vadd.f32 %v2565_v12, %v7787_v20  ;;  %v2891_v12 = vpop.f32.mrf.mxu2 }
 0x3ea   : > { %3452 = vmatpush.bf16.msrb.mxu3 %v6615_v49 }
 0x3eb   : > { %v7854_v28 = vadd.f32 %v2478_v55, %v2384_v52  ;;  %v2163_v47 = vadd.f32 %v7740_v0, %v2043_v60  ;;  %v6608_v55 = vld [vmem:[%s8690_s8 + $0x60] sm:$0xff]  ;;  %v2697_v59 = vadd.f32 %v2672_v7, %v2590_v34  ;;  %v2572_v60 = vpop.f32.mrf.mxu3  ;;  %v2679_v34 = vpop.f32.mrf.mxu0 }
 0x3ec   : > { %3348 = vmatpush.bf16.msrb.mxu2 %v6608_v55 }
 0x3ed   : > { %v2270_v2 = vadd.f32 %v7735_v22, %v2163_v47  ;;  %v2048_v22 = vadd.f32 %v7712_v40, %v7749_v11 }
 0x3ef   : > { %v2377_v0 = vadd.f32 %v7789_v17, %v2270_v2  ;;  %v2165_v7 = vadd.f32 %v7756_v9, %v2048_v22 }
 0x3f0   : > { %v7862_v58 = vpop.f32.mrf.mxu1 }
 0x3f1   : > { %v2484_v52 = vadd.f32 %v7769_v46, %v2377_v0  ;;  %v2893_v0 = vpop.f32.mrf.mxu2 }
 0x3f3   : > { %v2591_v30 = vadd.f32 %v2567_v31, %v2484_v52  ;;  %v2592_v31 = vadd.f32 %v2570_v18, %v7798_v23  ;;  %v2575_v11 = vpop.f32.mrf.mxu3  ;;  %v2978_v52 = vld [vmem:[#allocation5 + $0x5] sm:$0xff] }
 0x3f5   : > { %v2698_v47 = vadd.f32 %v2674_v62, %v2591_v30 }
 0x3f8   : > { %v2779_v27 = vpop.f32.mrf.mxu1 }
 0x3f9   : > { %v2804_v45 = vadd.f32 %v2779_v27, %v2697_v59  ;;  %v2699_v59 = vadd.f32 %v2677_v25, %v2592_v31  ;;  %v3001_v27 = vld [vmem:[#allocation5 + $0x6] sm:$0xff]  ;;  %v6614_v25 = vld [vmem:[%s8690_s8 + $0x90] sm:$0xff] }
 0x3fa   : > { %3453 = vmatpush.bf16.msrb.mxu3 %v6614_v25  ;;  %v6613_v25 = vld [vmem:[%s8690_s8 + $0x88] sm:$0xff] }
 0x3fb   : > { %v2911_v20 = vadd.f32 %v2886_v38, %v2804_v45  ;;  %v2272_v38 = vadd.f32 %v7751_v26, %v2165_v7  ;;  %v3171_v45 = vld [vmem:[#allocation5 + $0x7] sm:$0xff]  ;;  %v2577_v31 = vpop.f32.mrf.mxu3 }
 0x3fd   : > { %v2924_v17 = vadd.f32 %v7877_v42, %v2911_v20  ;;  %v2379_v40 = vadd.f32 %v7800_v43, %v2272_v38 }
 0x3fe   : > { %3454 = vmatpush.bf16.msrb.mxu3 %v6613_v25 }
 0x3ff   : > { %v2934_v61 = vmax.f32 %v2924_v17, 0.0  ;;  %v2486_v20 = vadd.f32 %v7783_v54, %v2379_v40  ;;  %v2053_v54 = vadd.f32 %v7726_v24, %v7762_v21  ;;  %v2594_v21 = vadd.f32 %v2575_v11, %v7807_v29 }
 0x400   : > { %v2781_v46 = vpop.f32.mrf.mxu1 }
 0x401   : > { %v2944_v55 = vsel %vm7456_vm8, %v2934_v61, 0.0  ;;  %v2805_v49 = vadd.f32 %v2781_v46, %v2698_v47  ;;  %v2593_v61 = vadd.f32 %v2572_v60, %v2486_v20  ;;  %v2682_v46 = vpop.f32.mrf.mxu0  ;;  %v2896_v60 = vpop.f32.mrf.mxu2 }
 0x402   : > { %2958 = vst.msk [vmem:[#allocation5 + $0x10] sm:$0xff] %vm1878_vm4, %v2944_v55 }
 0x403   : > { %v2912_v2 = vadd.f32 %v2888_v53, %v2805_v49  ;;  %v2167_v49 = vadd.f32 %v7766_v36, %v2053_v54 }
 0x405   : > { %v2925_v9 = vadd.f32 %v7877_v42, %v2912_v2  ;;  %v2700_v2 = vadd.f32 %v2679_v34, %v2593_v61 }
 0x407   : > { %v2935_v62 = vmax.f32 %v2925_v9, 0.0 }
 0x408   : > { %v2784_v30 = vpop.f32.mrf.mxu1 }
 0x409   : > { %v2945_v23 = vsel %vm7472_vm11, %v2935_v62, 0.0  ;;  %v2806_v18 = vadd.f32 %v2784_v30, %v2699_v59  ;;  %v3002_v26 = vld [vmem:[#allocation5 + $0xe] sm:$0xff]  ;;  %v2274_v59 = vadd.f32 %v7764_v50, %v2167_v49  ;;  %v2701_v30 = vadd.f32 %v2682_v46, %v2594_v21 }
 0x40a   : > { %v2979_v53 = vld [vmem:[#allocation5 + $0xd] sm:$0xff]  ;;  %2959 = vst.msk [vmem:[#allocation5 + $0x18] sm:$0xff] %vm1878_vm4, %v2945_v23  ;;  %v3011_v43 = vpack.c.bf16 %v3002_v26, %v3001_v27 }
 0x40b   : > { %v3172_v22 = vld [vmem:[#allocation5 + $0xf] sm:$0xff]  ;;  %v2988_v17 = vpack.c.bf16 %v2979_v53, %v2978_v52  ;;  %v2913_v47 = vadd.f32 %v2891_v12, %v2806_v18  ;;  %v2381_v36 = vadd.f32 %v7809_v8, %v2274_v59  ;;  %v2684_v52 = vpop.f32.mrf.mxu0  ;;  %v2580_v53 = vpop.f32.mrf.mxu3 }
 0x40c   : > { %v3181_v7 = vpack.c.bf16 %v3172_v22, %v3171_v45  ;;  %5849 = vmatmul.msk.bf16.vlgmr.msra.gmra.mxu3 %vm1878_vm4, %v3011_v43  ;;  %v2898_v43 = vpop.f32.mrf.mxu2 }
 0x40d   : > { %5870 = vmatmul.msk.bf16.vlgmr.msrb.gmra.mxu0 %vm1878_vm4, %v2988_v17  ;;  %v2926_v55 = vadd.f32 %v7877_v42, %v2913_v47  ;;  %v2488_v26 = vadd.f32 %v7794_v39, %v2381_v36  ;;  %v2058_v47 = vadd.f32 %v7742_v32, %v7771_v14  ;;  %v2596_v32 = vadd.f32 %v2580_v53, %v7815_v56 }
 0x40e   : > { %5899 = vmatmul.msk.bf16.vlgmr.msra.gmra.mxu1 %vm1878_vm4, %v3181_v7 }
 0x40f   : > { %v2936_v38 = vmax.f32 %v2926_v55, 0.0  ;;  %v2595_v61 = vadd.f32 %v2577_v31, %v2488_v26  ;;  %v2169_v54 = vadd.f32 %v7775_v5, %v2058_v47 }
 0x410   : > { %v2786_v12 = vpop.f32.mrf.mxu1 }
 0x411   : > { %v2946_v40 = vsel %vm7494_vm14, %v2936_v38, 0.0  ;;  %v2807_v9 = vadd.f32 %v2786_v12, %v2700_v2  ;;  %v3279_v62 = vld [vmem:[#allocation5 + $0x17] sm:$0xff]  ;;  %v2702_v49 = vadd.f32 %v2684_v52, %v2595_v61  ;;  %v2276_v14 = vadd.f32 %v7773_v1, %v2169_v54 }
 0x412   : > { %2960 = vst.msk [vmem:[#allocation5 + $0x20] sm:$0xff] %vm1878_vm4, %v2946_v40  ;;  %v3288_v24 = vpack.c.bf16 %v3279_v62, %v3172_v22  ;;  %v3003_v23 = vld [vmem:[#allocation5 + $0x16] sm:$0xff] }
 0x413   : > { %v2914_v27 = vadd.f32 %v2893_v0, %v2807_v9  ;;  %v2980_v18 = vld [vmem:[#allocation5 + $0x15] sm:$0xff]  ;;  %v2687_v38 = vpop.f32.mrf.mxu0  ;;  %v2582_v9 = vpop.f32.mrf.mxu3  ;;  %v2383_v5 = vadd.f32 %v7825_v57, %v2276_v14 }
 0x414   : > { %5928 = vmatmul.msk.bf16.vlgmr.msrb.gmra.mxu2 %vm1878_vm4, %v3288_v24  ;;  %v2901_v24 = vpop.f32.mrf.mxu2 }
 0x415   : > { %v2927_v34 = vadd.f32 %v7877_v42, %v2914_v27  ;;  %v2703_v27 = vadd.f32 %v2687_v38, %v2596_v32 }
 0x417   : > { %v2937_v45 = vmax.f32 %v2927_v34, 0.0 }
 0x418   : > { %v2789_v20 = vpop.f32.mrf.mxu1 }
 0x419   : > { %v2947_v29 = vsel %vm7510_vm1, %v2937_v45, 0.0  ;;  %v2808_v50 = vadd.f32 %v2789_v20, %v2701_v30  ;;  %v3004_v11 = vld [vmem:[#allocation5 + $0x1e] sm:$0xff]  ;;  %v2490_v45 = vadd.f32 %v7805_v51, %v2383_v5  ;;  %v2063_v51 = vadd.f32 %v7759_v41, %v7781_v16  ;;  %v6618_v41 = vld [vmem:[%s8690_s8 + $0xb0] sm:$0xff] }
 0x41a   : > { %v2981_v0 = vld [vmem:[#allocation5 + $0x1d] sm:$0xff]  ;;  %2961 = vst.msk [vmem:[#allocation5 + $0x28] sm:$0xff] %vm1878_vm4, %v2947_v29  ;;  %v3012_v8 = vpack.c.bf16 %v3004_v11, %v3003_v23  ;;  %v6622_v16 = vld [vmem:[%s8690_s8 + $0xd0] sm:$0xff] }
 0x41b   : > { %v3174_v22 = vld [vmem:[#allocation5 + $0x1f] sm:$0xff]  ;;  %v2989_v17 = vpack.c.bf16 %v2981_v0, %v2980_v18  ;;  %v2915_v39 = vadd.f32 %v2896_v60, %v2808_v50  ;;  %v2689_v18 = vpop.f32.mrf.mxu0  ;;  %v2597_v50 = vadd.f32 %v2582_v9, %v2490_v45  ;;  %v2585_v0 = vpop.f32.mrf.mxu3 }
 0x41c   : > { %v3182_v7 = vpack.c.bf16 %v3174_v22, %v3279_v62  ;;  %5850 = vmatmul.msk.bf16.gmra.mxu3 %vm1878_vm4, %v3012_v8  ;;  %v6612_v29 = vld [vmem:[%s8690_s8 + $0x80] sm:$0xff]  ;;  %v6623_v8 = vld [vmem:[%s8690_s8 + $0xd8] sm:$0xff] }
 0x41d   : > { %5871 = vmatmul.msk.bf16.gmra.mxu0 %vm1878_vm4, %v2989_v17  ;;  %v2928_v46 = vadd.f32 %v7877_v42, %v2915_v39  ;;  %3455 = vmatpush.bf16.msrb.mxu3 %v6612_v29  ;;  %v2903_v17 = vpop.f32.mrf.mxu2  ;;  %v2704_v61 = vadd.f32 %v2689_v18, %v2597_v50 }
 0x41e   : > { %5900 = vmatmul.msk.bf16.gmra.mxu1 %vm1878_vm4, %v3182_v7  ;;  %v2171_v7 = vadd.f32 %v7811_v3, %v2063_v51 }
 0x41f   : > { %v2938_v55 = vmax.f32 %v2928_v46, 0.0  ;;  %3666 = vmatpush.bf16.msrb.mxu1 %v6623_v8 }
 0x420   : > { %v2791_v2 = vpop.f32.mrf.mxu1 }
 0x421   : > { %v2948_v31 = vsel %vm7539_vm5, %v2938_v55, 0.0  ;;  %v2809_v60 = vadd.f32 %v2791_v2, %v2702_v49  ;;  %v3281_v12 = vld [vmem:[#allocation5 + $0x27] sm:$0xff]  ;;  %v2598_v55 = vadd.f32 %v2585_v0, %v7854_v28  ;;  %v2278_v49 = vadd.f32 %v7813_v13, %v2171_v7  ;;  %v6627_v28 = vld [vmem:[%s8690_s8 + $0xf8] sm:$0xff] }
 0x422   : > { %2962 = vst.msk [vmem:[#allocation5 + $0x30] sm:$0xff] %vm1878_vm4, %v2948_v31  ;;  %v3289_v40 = vpack.c.bf16 %v3281_v12, %v3174_v22  ;;  %v3005_v34 = vld [vmem:[#allocation5 + $0x26] sm:$0xff]  ;;  %3773 = vmatpush.bf16.msra.mxu2 %v6627_v28 }
 0x423   : > { %v2916_v62 = vadd.f32 %v2898_v43, %v2809_v60  ;;  %v2982_v52 = vld [vmem:[#allocation5 + $0x25] sm:$0xff]  ;;  %v6619_v43 = vld [vmem:[%s8690_s8 + $0xb8] sm:$0xff]  ;;  %3667 = vmatpush.bf16.msrb.mxu1 %v6622_v16  ;;  %v2692_v2 = vpop.f32.mrf.mxu0  ;;  %v2385_v13 = vadd.f32 %v7862_v58, %v2278_v49  ;;  %v2587_v32 = vpop.f32.mrf.mxu3 }
 0x424   : > { %5929 = vmatmul.msk.bf16.gmra.mxu2 %vm1878_vm4, %v3289_v40  ;;  %3559 = vmatpush.bf16.msra.mxu0 %v6619_v43  ;;  %v6617_v31 = vld [vmem:[%s8690_s8 + $0xa8] sm:$0xff]  ;;  %v6626_v40 = vld [vmem:[%s8690_s8 + $0xf0] sm:$0xff]  ;;  %v2705_v9 = vadd.f32 %v2692_v2, %v2598_v55  ;;  %v6620_v58 = vld [vmem:[%s8690_s8 + $0xc0] sm:$0xff] }
 0x425   : > { %v2929_v21 = vadd.f32 %v7877_v42, %v2916_v62  ;;  %v6621_v60 = vld [vmem:[%s8690_s8 + $0xc8] sm:$0xff]  ;;  %v6616_v62 = vld [vmem:[%s8690_s8 + $0xa0] sm:$0xff] }
 0x426   : > { %3774 = vmatpush.bf16.msra.mxu2 %v6626_v40  ;;  %v3600_v28 = vld [vmem:[#allocation5 + $0x21] sm:$0xff] }
 0x427   : > { %v2939_v59 = vmax.f32 %v2929_v21, 0.0  ;;  %3668 = vmatpush.bf16.msrb.mxu1 %v6621_v60  ;;  %v3493_v60 = vld [vmem:[#allocation5 + $0x19] sm:$0xff] }
 0x428   : > { %v2794_v36 = vpop.f32.mrf.mxu1  ;;  %3560 = vmatpush.bf16.msra.mxu0 %v6618_v41 }
 0x429   : > { %v2949_v56 = vsel %vm7555_vm9, %v2939_v59, 0.0  ;;  %v2810_v1 = vadd.f32 %v2794_v36, %v2703_v27  ;;  %v3006_v30 = vld [vmem:[#allocation5 + $0x2e] sm:$0xff]  ;;  %v2492_v27 = vadd.f32 %v7823_v63, %v2385_v13 }
 0x42a   : > { %v2983_v20 = vld [vmem:[#allocation5 + $0x2d] sm:$0xff]  ;;  %2963 = vst.msk [vmem:[#allocation5 + $0x38] sm:$0xff] %vm1878_vm4, %v2949_v56  ;;  %v3013_v57 = vpack.c.bf16 %v3006_v30, %v3005_v34 }
 0x42b   : > { %v3176_v23 = vld [vmem:[#allocation5 + $0x2f] sm:$0xff]  ;;  %v2990_v26 = vpack.c.bf16 %v2983_v20, %v2982_v52  ;;  %v2917_v11 = vadd.f32 %v2901_v24, %v2810_v1  ;;  %v2906_v24 = vpop.f32.mrf.mxu2  ;;  %3669 = vmatpush.bf16.msrb.mxu1 %v6620_v58 }
 0x42c   : > { %v3183_v53 = vpack.c.bf16 %v3176_v23, %v3281_v12  ;;  %5851 = vmatmul.msk.bf16.gmra.mxu3 %vm1878_vm4, %v3013_v57  ;;  %3561 = vmatpush.bf16.msra.mxu0 %v6617_v31  ;;  %v6631_v57 = vld [vmem:[%s8690_s8 + $0x118] sm:$0xff]  ;;  %v3385_v13 = vld [vmem:[#allocation5 + $0x10] sm:$0xff] }
 0x42d   : > { %5872 = vmatmul.msk.bf16.gmra.mxu0 %vm1878_vm4, %v2990_v26  ;;  %v2930_v22 = vadd.f32 %v7877_v42, %v2917_v11  ;;  %v6625_v26 = vld [vmem:[%s8690_s8 + $0xe8] sm:$0xff]  ;;  %3880 = vmatpush.bf16.msra.mxu3 %v6631_v57  ;;  %v6624_v11 = vld [vmem:[%s8690_s8 + $0xe0] sm:$0xff]  ;;  %v3386_v31 = vld [vmem:[#allocation5 + $0x18] sm:$0xff] }
 0x42e   : > { %5901 = vmatmul.msk.bf16.gmra.mxu1 %vm1878_vm4, %v3183_v53  ;;  %v2694_v53 = vpop.f32.mrf.mxu0  ;;  %3775 = vmatpush.bf16.msra.mxu2 %v6625_v26  ;;  %v8018_v40 = vpack.c.bf16 %v3386_v31, %v3385_v13 }
 0x42f   : > { %v2940_v25 = vmax.f32 %v2930_v22, 0.0 }
 0x430   : > { %v2796_v39 = vpop.f32.mrf.mxu1  ;;  %3562 = vmatpush.bf16.msra.mxu0 %v6616_v62  ;;  %v3706_v62 = vld [vmem:[#allocation5 + $0x1a] sm:$0xff] }
 0x431   : > { %v2950_v47 = vsel %vm7593_vm13, %v2940_v25, 0.0  ;;  %v2811_v46 = vadd.f32 %v2796_v39, %v2704_v61  ;;  %v3283_v54 = vld [vmem:[#allocation5 + $0x37] sm:$0xff] }
 0x432   : > { %2964 = vst.msk [vmem:[#allocation5 + $0x40] sm:$0xff] %vm1878_vm4, %v2950_v47  ;;  %v3290_v3 = vpack.c.bf16 %v3283_v54, %v3176_v23  ;;  %v3007_v21 = vld [vmem:[#allocation5 + $0x36] sm:$0xff]  ;;  %v2599_v23 = vadd.f32 %v2587_v32, %v2492_v27  ;;  %3776 = vmatpush.bf16.msra.mxu2 %v6624_v11  ;;  %v3387_v27 = vld [vmem:[#allocation5 + $0x20] sm:$0xff] }
 0x433   : > { %v2918_v38 = vadd.f32 %v2903_v17, %v2811_v46  ;;  %v2984_v59 = vld [vmem:[#allocation5 + $0x35] sm:$0xff]  ;;  %v2908_v8 = vpop.f32.mrf.mxu2 }
 0x434   : > { %5930 = vmatmul.msk.bf16.gmra.mxu2 %vm1878_vm4, %v3290_v3  ;;  %v2706_v50 = vadd.f32 %v2694_v53, %v2599_v23 }
 0x435   : > { %v2931_v12 = vadd.f32 %v7877_v42, %v2918_v38 }
 0x437   : > { %v2941_v14 = vmax.f32 %v2931_v12, 0.0  ;;  %v3492_v12 = vld [vmem:[#allocation5 + $0x11] sm:$0xff] }
 0x438   : > { %v2799_v5 = vpop.f32.mrf.mxu1  ;;  %v3502_v32 = vpack.c.bf16 %v3493_v60, %v3492_v12 }
 0x439   : > { %v2951_v36 = vsel %vm7624_vm2, %v2941_v14, 0.0  ;;  %v2812_v34 = vadd.f32 %v2799_v5, %v2705_v9  ;;  %v3008_v52 = vld [vmem:[#allocation5 + $0x3e] sm:$0xff]  ;;  %v3609_v14 = vpack.c.bf16 %v3600_v28, %v3493_v60  ;;  %v3388_v5 = vld [vmem:[#allocation5 + $0x28] sm:$0xff] }
 0x43a   : > { %v2985_v45 = vld [vmem:[#allocation5 + $0x3d] sm:$0xff]  ;;  %2965 = vst.msk [vmem:[#allocation5 + $0x48] sm:$0xff] %vm1878_vm4, %v2951_v36  ;;  %v3014_v1 = vpack.c.bf16 %v3008_v52, %v3007_v21  ;;  %v3495_v21 = vld [vmem:[#allocation5 + $0x29] sm:$0xff]  ;;  %v8028_v36 = vpack.c.bf16 %v3388_v5, %v3387_v27 }
 0x43b   : > { %v3178_v56 = vld [vmem:[#allocation5 + $0x3f] sm:$0xff]  ;;  %v2991_v30 = vpack.c.bf16 %v2985_v45, %v2984_v59  ;;  %v2919_v18 = vadd.f32 %v2906_v24, %v2812_v34  ;;  %v6629_v24 = vld [vmem:[%s8690_s8 + $0x108] sm:$0xff]  ;;  %v3602_v59 = vld [vmem:[#allocation5 + $0x31] sm:$0xff]  ;;  %v3503_v34 = vpack.c.bf16 %v3495_v21, %v3600_v28 }
 0x43c   : > { %v3184_v20 = vpack.c.bf16 %v3178_v56, %v3283_v54  ;;  %5852 = vmatmul.msk.bf16.gmra.mxu3 %vm1878_vm4, %v3014_v1  ;;  %v3707_v9 = vld [vmem:[#allocation5 + $0x22] sm:$0xff]  ;;  %v3610_v52 = vpack.c.bf16 %v3602_v59, %v3495_v21  ;;  %v3709_v45 = vld [vmem:[#allocation5 + $0x32] sm:$0xff]  ;;  %v3710_v11 = vld [vmem:[#allocation5 + $0x3a] sm:$0xff] }
 0x43d   : > { %5873 = vmatmul.msk.bf16.gmra.mxu0 %vm1878_vm4, %v2991_v30  ;;  %v2932_v63 = vadd.f32 %v7877_v42, %v2919_v18  ;;  %v3716_v58 = vpack.c.bf16 %v3707_v9, %v3706_v62  ;;  %v3390_v30 = vld [vmem:[#allocation5 + $0x38] sm:$0xff]  ;;  %v6628_v18 = vld [vmem:[%s8690_s8 + $0x100] sm:$0xff] }
 0x43e   : > { %5902 = vmatmul.msk.bf16.gmra.mxu1 %vm1878_vm4, %v3184_v20  ;;  %v3497_v20 = vld [vmem:[#allocation5 + $0x39] sm:$0xff] }
 0x43f   : > { %v2942_v29 = vmax.f32 %v2932_v63, 0.0  ;;  %v3389_v63 = vld [vmem:[#allocation5 + $0x30] sm:$0xff]  ;;  %v3504_v26 = vpack.c.bf16 %v3497_v20, %v3602_v59 }
 0x440   : > { %v2801_v51 = vpop.f32.mrf.mxu1  ;;  %v8038_v57 = vpack.c.bf16 %v3390_v30, %v3389_v63 }
 0x441   : > { %v2952_v0 = vsel %vm7660_vm7, %v2942_v29, 0.0  ;;  %v2813_v22 = vadd.f32 %v2801_v51, %v2706_v50  ;;  %v3285_v43 = vld [vmem:[#allocation5 + $0x47] sm:$0xff]  ;;  %v6595_v29 = vld [vmem:[%s8693_s11 + $0x18] sm:$0xff]  ;;  %v6594_v51 = vld [vmem:[%s8693_s11 + $0x10] sm:$0xff] }
 0x442   : > { %2966 = vst.msk [vmem:[#allocation5 + $0x50] sm:$0xff] %vm1878_vm4, %v2952_v0  ;;  %v3291_v17 = vpack.c.bf16 %v3285_v43, %v3178_v56  ;;  %v3009_v41 = vld [vmem:[#allocation5 + $0x46] sm:$0xff]  ;;  %4138 = vmatpush.bf16.msra.mxu1 %v6595_v29 }
 0x443   : > { %v2920_v7 = vadd.f32 %v2908_v8, %v2813_v22  ;;  %v2986_v16 = vld [vmem:[#allocation5 + $0x45] sm:$0xff] }
 0x444   : > { %5931 = vmatmul.msk.bf16.gmra.mxu2 %vm1878_vm4, %v3291_v17  ;;  %v3708_v56 = vld [vmem:[#allocation5 + $0x2a] sm:$0xff]  ;;  %v3604_v23 = vld [vmem:[#allocation5 + $0x41] sm:$0xff] }
 0x445   : > { %v2933_v25 = vadd.f32 %v7877_v42, %v2920_v7  ;;  %v6630_v42 = vld [vmem:[%s8690_s8 + $0x110] sm:$0xff]  ;;  %v3717_v1 = vpack.c.bf16 %v3709_v45, %v3708_v56  ;;  %v3611_v53 = vpack.c.bf16 %v3604_v23, %v3497_v20  ;;  %v3711_v50 = vld [vmem:[#allocation5 + $0x42] sm:$0xff] }
 0x446   : > { %3881 = vmatpush.bf16.msra.mxu3 %v6630_v42  ;;  %v3718_v0 = vpack.c.bf16 %v3711_v50, %v3710_v11  ;;  %4139 = vmatpush.bf16.msra.mxu1 %v6594_v51  ;;  %v6593_v22 = vld [vmem:[%s8693_s11 + $0x8] sm:$0xff]  ;;  %v3813_v11 = vld [vmem:[#allocation5 + $0x1b] sm:$0xff] }
 0x447   : > { %v2943_v61 = vmax.f32 %v2933_v25, 0.0  ;;  %v3391_v25 = vld [vmem:[#allocation5 + $0x40] sm:$0xff] }
 0x448   : > { %v3715_v45 = vld [vmem:[#allocation5 + $0x62] sm:$0xff] }
 0x449   : > { %v2953_v39 = vsel %vm7674_vm15, %v2943_v61, 0.0  ;;  %v3010_v47 = vld [vmem:[#allocation5 + $0x4e] sm:$0xff]  ;;  %v6592_v61 = vld [vmem:[%s8693_s11] sm:$0xff] }
 0x44a   : > { %v2987_v46 = vld [vmem:[#allocation5 + $0x4d] sm:$0xff]  ;;  %2967 = vst.msk [vmem:[#allocation5 + $0x58] sm:$0xff] %vm1878_vm4, %v2953_v39  ;;  %v3015_v3 = vpack.c.bf16 %v3010_v47, %v3009_v41  ;;  %3882 = vmatpush.bf16.msra.mxu3 %v6629_v24  ;;  %4140 = vmatpush.bf16.msra.mxu1 %v6593_v22 }
 0x44b   : > { %v3180_v54 = vld [vmem:[#allocation5 + $0x4f] sm:$0xff]  ;;  %v2992_v55 = vpack.c.bf16 %v2987_v46, %v2986_v16 }
 0x44c   : > { %v3185_v49 = vpack.c.bf16 %v3180_v54, %v3285_v43  ;;  %5853 = vmatmul.msk.bf16.gmra.mxu3 %vm1878_vm4, %v3015_v3  ;;  %v3392_v43 = vld [vmem:[#allocation5 + $0x48] sm:$0xff]  ;;  %v3393_v62 = vld [vmem:[#allocation5 + $0x50] sm:$0xff] }
 0x44d   : > { %5874 = vmatmul.msk.bf16.gmra.mxu0 %vm1878_vm4, %v2992_v55  ;;  %v3499_v8 = vld [vmem:[#allocation5 + $0x49] sm:$0xff]  ;;  %v8057_v16 = vpack.c.bf16 %v3392_v43, %v3391_v25 }
 0x44e   : > { %5903 = vmatmul.msk.bf16.gmra.mxu1 %vm1878_vm4, %v3185_v49  ;;  %3883 = vmatpush.bf16.msra.mxu3 %v6628_v18  ;;  %v3505_v39 = vpack.c.bf16 %v3499_v8, %v3604_v23  ;;  %v3712_v49 = vld [vmem:[#allocation5 + $0x4a] sm:$0xff] }
 0x44f   : > { %4141 = vmatpush.bf16.msra.mxu1 %v6592_v61 }
 0x451   : > { %v3287_v38 = vld [vmem:[#allocation5 + $0x57] sm:$0xff] }
 0x452   : > { %v3292_v2 = vpack.c.bf16 %v3287_v38, %v3180_v54  ;;  %v3606_v17 = vld [vmem:[#allocation5 + $0x51] sm:$0xff]  ;;  %v3501_v13 = vld [vmem:[#allocation5 + $0x59] sm:$0xff] }
 0x453   : > { %v3612_v47 = vpack.c.bf16 %v3606_v17, %v3499_v8  ;;  %v3713_v54 = vld [vmem:[#allocation5 + $0x52] sm:$0xff]  ;;  %v3506_v5 = vpack.c.bf16 %v3501_v13, %v3606_v17 }
 0x454   : > { %5932 = vmatmul.msk.bf16.gmra.mxu2 %vm1878_vm4, %v3292_v2  ;;  %v3719_v38 = vpack.c.bf16 %v3713_v54, %v3712_v49  ;;  %v3394_v28 = vld [vmem:[#allocation5 + $0x58] sm:$0xff] }
 0x455   : > { %v8066_v24 = vpack.c.bf16 %v3394_v28, %v3393_v62 }
 0x45c   : > { %5957 = vmatmul.msk.bf16.vlgmr.msrb.gmra.mxu3 %vm1878_vm4, %v8018_v40 }
 0x45d   : > { %5986 = vmatmul.msk.bf16.vlgmr.msra.gmra.mxu0 %vm1878_vm4, %v3502_v32 }
 0x45e   : > { %6015 = vmatmul.msk.bf16.vlgmr.msrb.gmra.mxu1 %vm1878_vm4, %v3609_v14  ;;  %v3608_v14 = vld [vmem:[#allocation5 + $0x61] sm:$0xff] }
 0x45f   : > { %v3613_v59 = vpack.c.bf16 %v3608_v14, %v3501_v13 }
 0x464   : > { %6044 = vmatmul.msk.bf16.vlgmr.msra.gmra.mxu2 %vm1878_vm4, %v3716_v58 }
 0x46c   : > { %5958 = vmatmul.msk.bf16.gmra.mxu3 %vm1878_vm4, %v8028_v36 }
 0x46d   : > { %5987 = vmatmul.msk.bf16.gmra.mxu0 %vm1878_vm4, %v3503_v34 }
 0x46e   : > { %6016 = vmatmul.msk.bf16.gmra.mxu1 %vm1878_vm4, %v3610_v52  ;;  %v3714_v52 = vld [vmem:[#allocation5 + $0x5a] sm:$0xff] }
 0x46f   : > { %v3720_v20 = vpack.c.bf16 %v3715_v45, %v3714_v52 }
 0x474   : > { %6045 = vmatmul.msk.bf16.gmra.mxu2 %vm1878_vm4, %v3717_v1 }
 0x47c   : > { %5959 = vmatmul.msk.bf16.gmra.mxu3 %vm1878_vm4, %v8038_v57 }
 0x47d   : > { %5988 = vmatmul.msk.bf16.gmra.mxu0 %vm1878_vm4, %v3504_v26  ;;  %v3814_v26 = vld [vmem:[#allocation5 + $0x23] sm:$0xff] }
 0x47e   : > { %6017 = vmatmul.msk.bf16.gmra.mxu1 %vm1878_vm4, %v3611_v53 }
 0x484   : > { %6046 = vmatmul.msk.bf16.gmra.mxu2 %vm1878_vm4, %v3718_v0  ;;  %v3823_v0 = vpack.c.bf16 %v3814_v26, %v3813_v11  ;;  %v6638_v26 = vld [vmem:[%s8692_s10 + $0x30] sm:$0xff]  ;;  %v6637_v11 = vld [vmem:[%s8692_s10 + $0x28] sm:$0xff] }
 0x48a   : > { %v3146_v7 = vpop.f32.mrf.mxu0 }
 0x48b   : > { %v3243_v41 = vpop.f32.mrf.mxu1 }
 0x48c   : > { %5960 = vmatmul.msk.bf16.gmra.mxu3 %vm1878_vm4, %v8057_v16 }
 0x48d   : > { %5989 = vmatmul.msk.bf16.gmra.mxu0 %vm1878_vm4, %v3505_v39 }
 0x48e   : > { %6018 = vmatmul.msk.bf16.gmra.mxu1 %vm1878_vm4, %v3612_v47  ;;  %v3816_v47 = vld [vmem:[#allocation5 + $0x33] sm:$0xff] }
 0x48f   : > { %v3073_v46 = vpop.f32.mrf.mxu3 }
 0x490   : > { %v3147_v3 = vadd.f32 %v3146_v7, %v3073_v46 }
 0x492   : > { %v3148_v55 = vpop.f32.mrf.mxu0  ;;  %v3268_v2 = vadd.f32 %v3243_v41, %v3147_v3  ;;  %v3815_v3 = vld [vmem:[#allocation5 + $0x2b] sm:$0xff] }
 0x493   : > { %v3245_v42 = vpop.f32.mrf.mxu1  ;;  %v3824_v49 = vpack.c.bf16 %v3816_v47, %v3815_v3  ;;  %v6634_v47 = vld [vmem:[%s8692_s10 + $0x10] sm:$0xff] }
 0x494   : > { %6047 = vmatmul.msk.bf16.gmra.mxu2 %vm1878_vm4, %v3719_v38  ;;  %v6654_v3 = vld [vmem:[%s8692_s10 + $0xb0] sm:$0xff] }
 0x497   : > { %v3075_v31 = vpop.f32.mrf.mxu3  ;;  %v3350_v60 = vpop.f32.mrf.mxu2 }
 0x498   : > { %v3149_v12 = vadd.f32 %v3148_v55, %v3075_v31  ;;  %v8064_v32 = vadd.f32 %v3350_v60, %v3268_v2 }
 0x49a   : > { %v3151_v9 = vpop.f32.mrf.mxu0  ;;  %v8068_v21 = vadd.f32 %v3245_v42, %v3149_v12 }
 0x49b   : > { %v3248_v58 = vpop.f32.mrf.mxu1 }
 0x49c   : > { %5961 = vmatmul.msk.bf16.gmra.mxu3 %vm1878_vm4, %v8066_v24 }
 0x49d   : > { %5990 = vmatmul.msk.bf16.gmra.mxu0 %vm1878_vm4, %v3506_v5 }
 0x49e   : > { %6019 = vmatmul.msk.bf16.gmra.mxu1 %vm1878_vm4, %v3613_v59 }
 0x49f   : > { %v3078_v27 = vpop.f32.mrf.mxu3  ;;  %v8074_v34 = vpop.f32.mrf.mxu2 }
 0x4a0   : > { %v3152_v56 = vadd.f32 %v3151_v9, %v3078_v27  ;;  %v3818_v9 = vld [vmem:[#allocation5 + $0x43] sm:$0xff] }
 0x4a2   : > { %v3153_v1 = vpop.f32.mrf.mxu0  ;;  %v3270_v23 = vadd.f32 %v3248_v58, %v3152_v56  ;;  %v3817_v58 = vld [vmem:[#allocation5 + $0x3b] sm:$0xff] }
 0x4a3   : > { %v3250_v30 = vpop.f32.mrf.mxu1  ;;  %v3825_v5 = vpack.c.bf16 %v3818_v9, %v3817_v58  ;;  %v6644_v9 = vld [vmem:[%s8692_s10 + $0x60] sm:$0xff] }
 0x4a4   : > { %6048 = vmatmul.msk.bf16.gmra.mxu2 %vm1878_vm4, %v3720_v20  ;;  %v6652_v58 = vld [vmem:[%s8692_s10 + $0xa0] sm:$0xff] }
 0x4a7   : > { %v3080_v18 = vpop.f32.mrf.mxu3  ;;  %v3355_v63 = vpop.f32.mrf.mxu2 }
 0x4a8   : > { %v3154_v53 = vadd.f32 %v3153_v1, %v3080_v18  ;;  %v8077_v29 = vadd.f32 %v3355_v63, %v3270_v23  ;;  %v6639_v1 = vld [vmem:[%s8692_s10 + $0x38] sm:$0xff]  ;;  %v3819_v63 = vld [vmem:[#allocation5 + $0x4b] sm:$0xff] }
 0x4a9   : > { %4061 = vmatpush.bf16.msrb.mxu0 %v6639_v1  ;;  %v3820_v23 = vld [vmem:[#allocation5 + $0x53] sm:$0xff] }
 0x4aa   : > { %v3156_v50 = vpop.f32.mrf.mxu0  ;;  %v8079_v22 = vadd.f32 %v3250_v30, %v3154_v53  ;;  %v6651_v1 = vld [vmem:[%s8692_s10 + $0x98] sm:$0xff] }
 0x4ab   : > { %v3253_v51 = vpop.f32.mrf.mxu1 }
 0x4ac   : > { %6073 = vmatmul.msk.bf16.vlgmr.msra.gmra.mxu3 %vm1878_vm4, %v3823_v0  ;;  %v3821_v0 = vld [vmem:[#allocation5 + $0x5b] sm:$0xff] }
 0x4ad   : > { %4062 = vmatpush.bf16.msrb.mxu0 %v6638_v26 }
 0x4ae   : > { %6126 = vmatmul.msk.bf16.vlgmr.msra.gmra.mxu1 %vm1878_vm4, %v8018_v40 }
 0x4af   : > { %v3083_v43 = vpop.f32.mrf.mxu3  ;;  %v8084_v8 = vpop.f32.mrf.mxu2 }
 0x4b0   : > { %v3157_v17 = vadd.f32 %v3156_v50, %v3083_v43  ;;  %v3822_v43 = vld [vmem:[#allocation5 + $0x63] sm:$0xff] }
 0x4b1   : > { %4063 = vmatpush.bf16.msrb.mxu0 %v6637_v11 }
 0x4b2   : > { %v3158_v7 = vpop.f32.mrf.mxu0  ;;  %v3272_v61 = vadd.f32 %v3253_v51, %v3157_v17  ;;  %v3827_v17 = vpack.c.bf16 %v3822_v43, %v3821_v0  ;;  %v6641_v0 = vld [vmem:[%s8692_s10 + $0x48] sm:$0xff] }
 0x4b3   : > { %v3255_v25 = vpop.f32.mrf.mxu1  ;;  %v6649_v43 = vld [vmem:[%s8692_s10 + $0x88] sm:$0xff] }
 0x4b7   : > { %v3085_v41 = vpop.f32.mrf.mxu3  ;;  %v3360_v39 = vpop.f32.mrf.mxu2 }
 0x4b8   : > { %v3159_v46 = vadd.f32 %v3158_v7, %v3085_v41  ;;  %v3379_v54 = vadd.f32 %v3360_v39, %v3272_v61  ;;  %v6635_v61 = vld [vmem:[%s8692_s10 + $0x18] sm:$0xff] }
 0x4ba   : > { %v3161_v55 = vpop.f32.mrf.mxu0  ;;  %v8086_v42 = vadd.f32 %v3255_v25, %v3159_v46  ;;  %v6671_v46 = vld [vmem:[%s8692_s10 + $0x138] sm:$0xff] }
 0x4bb   : > { %v3258_v38 = vpop.f32.mrf.mxu1  ;;  %4620 = vmatpush.bf16.msrb.mxu1 %v6671_v46 }
 0x4bc   : > { %6074 = vmatmul.msk.bf16.gmra.mxu3 %vm1878_vm4, %v3824_v49 }
 0x4be   : > { %6127 = vmatmul.msk.bf16.gmra.mxu1 %vm1878_vm4, %v8028_v36 }
 0x4bf   : > { %v3088_v40 = vpop.f32.mrf.mxu3  ;;  %v8091_v2 = vpop.f32.mrf.mxu2 }
 0x4c0   : > { %v3162_v31 = vadd.f32 %v3161_v55, %v3088_v40  ;;  %v6670_v55 = vld [vmem:[%s8692_s10 + $0x130] sm:$0xff]  ;;  %v6653_v40 = vld [vmem:[%s8692_s10 + $0xa8] sm:$0xff] }
 0x4c1   : > { %4621 = vmatpush.bf16.msrb.mxu1 %v6670_v55  ;;  %v6663_v55 = vld [vmem:[%s8692_s10 + $0xf8] sm:$0xff] }
 0x4c2   : > { %v3274_v60 = vadd.f32 %v3258_v38, %v3162_v31  ;;  %v8093_v28 = vpop.f32.mrf.mxu0  ;;  %v6645_v38 = vld [vmem:[%s8692_s10 + $0x68] sm:$0xff] }
 0x4c3   : > { %v8095_v13 = vpop.f32.mrf.mxu1  ;;  %v6633_v31 = vld [vmem:[%s8692_s10 + $0x8] sm:$0xff] }
 0x4c7   : > { %v8097_v12 = vpop.f32.mrf.mxu3  ;;  %v3365_v14 = vpop.f32.mrf.mxu2 }
 0x4c8   : > { %v8099_v62 = vadd.f32 %v3365_v14, %v3274_v60  ;;  %v6669_v14 = vld [vmem:[%s8692_s10 + $0x128] sm:$0xff] }
 0x4c9   : > { %4622 = vmatpush.bf16.msrb.mxu1 %v6669_v14 }
 0x4ca   : > { %v3166_v36 = vpop.f32.mrf.mxu0 }
 0x4cb   : > { %v3263_v45 = vpop.f32.mrf.mxu1 }
 0x4cc   : > { %6075 = vmatmul.msk.bf16.gmra.mxu3 %vm1878_vm4, %v3825_v5 }
 0x4ce   : > { %6128 = vmatmul.msk.bf16.gmra.mxu1 %vm1878_vm4, %v8038_v57  ;;  %v3826_v57 = vpack.c.bf16 %v3820_v23, %v3819_v63  ;;  %v6650_v63 = vld [vmem:[%s8692_s10 + $0x90] sm:$0xff] }
 0x4cf   : > { %v3093_v59 = vpop.f32.mrf.mxu3  ;;  %v8104_v27 = vpop.f32.mrf.mxu2 }
 0x4d0   : > { %v3167_v52 = vadd.f32 %v3166_v36, %v3093_v59  ;;  %v6668_v36 = vld [vmem:[%s8692_s10 + $0x120] sm:$0xff] }
 0x4d1   : > { %4623 = vmatpush.bf16.msrb.mxu1 %v6668_v36 }
 0x4d2   : > { %v3276_v56 = vadd.f32 %v3263_v45, %v3167_v52  ;;  %v8175_v60 = vpop.f32.mrf.mxu0 }
 0x4d3   : > { %v8186_v5 = vpop.f32.mrf.mxu1 }
 0x4d7   : > { %v8109_v30 = vpop.f32.mrf.mxu3  ;;  %v3370_v20 = vpop.f32.mrf.mxu2 }
 0x4d8   : > { %v8111_v18 = vadd.f32 %v3370_v20, %v3276_v56  ;;  %v6643_v56 = vld [vmem:[%s8692_s10 + $0x58] sm:$0xff] }
 0x4d9   : > { %v6667_v20 = vld [vmem:[%s8692_s10 + $0x118] sm:$0xff] }
 0x4da   : > { %v3564_v23 = vpop.f32.mrf.mxu0  ;;  %4624 = vmatpush.bf16.msrb.mxu1 %v6667_v20 }
 0x4dc   : > { %6076 = vmatmul.msk.bf16.gmra.mxu3 %vm1878_vm4, %v3826_v57  ;;  %v6666_v57 = vld [vmem:[%s8692_s10 + $0x110] sm:$0xff] }
 0x4de   : > { %6129 = vmatmul.msk.bf16.gmra.mxu1 %vm1878_vm4, %v8057_v16 }
 0x4df   : > { %v3457_v53 = vpop.f32.mrf.mxu3  ;;  %v8191_v59 = vpop.f32.mrf.mxu2  ;;  %4625 = vmatpush.bf16.msrb.mxu1 %v6666_v57 }
 0x4e0   : > { %v8120_v50 = vadd.f32 %v3457_v53, %v8064_v32  ;;  %v6636_v32 = vld [vmem:[%s8692_s10 + $0x20] sm:$0xff]  ;;  %v3671_v53 = vpop.f32.mrf.mxu1 }
 0x4e1   : > { %4064 = vmatpush.bf16.msrb.mxu0 %v6636_v32  ;;  %v6640_v32 = vld [vmem:[%s8692_s10 + $0x40] sm:$0xff] }
 0x4e5   : > { %4065 = vmatpush.bf16.msrb.mxu0 %v6635_v61  ;;  %v6648_v61 = vld [vmem:[%s8692_s10 + $0x80] sm:$0xff] }
 0x4e7   : > { %v8125_v51 = vpop.f32.mrf.mxu3  ;;  %v3778_v11 = vpop.f32.mrf.mxu2 }
 0x4e8   : > { %v3673_v46 = vpop.f32.mrf.mxu1 }
 0x4e9   : > { %4066 = vmatpush.bf16.msrb.mxu0 %v6634_v47 }
 0x4ec   : > { %6077 = vmatmul.msk.bf16.gmra.mxu3 %vm1878_vm4, %v3827_v17  ;;  %v6665_v17 = vld [vmem:[%s8692_s10 + $0x108] sm:$0xff] }
 0x4ed   : > { %4067 = vmatpush.bf16.msrb.mxu0 %v6633_v31  ;;  %4626 = vmatpush.bf16.msrb.mxu1 %v6665_v17 }
 0x4ee   : > { %6130 = vmatmul.msk.bf16.gmra.mxu1 %vm1878_vm4, %v8066_v24  ;;  %v6647_v24 = vld [vmem:[%s8692_s10 + $0x78] sm:$0xff]  ;;  %vm6758_vm4 = vmpackc.low %vm7472_vm11, %vm7456_vm8 }
 0x4ef   : > { %v3462_v16 = vpop.f32.mrf.mxu3  ;;  %4248 = vmatpush.bf16.msrb.mxu2 %v6647_v24 }
 0x4f0   : > { %v8131_v7 = vadd.f32 %v3462_v16, %v8077_v29  ;;  %v6655_v29 = vld [vmem:[%s8692_s10 + $0xb8] sm:$0xff]  ;;  %v6632_v16 = vld [vmem:[%s8692_s10] sm:$0xff] }
 0x4f1   : > { %4372 = vmatpush.bf16.msrb.mxu3 %v6655_v29  ;;  %v6664_v29 = vld [vmem:[%s8692_s10 + $0x100] sm:$0xff]  ;;  %4068 = vmatpush.bf16.msrb.mxu0 %v6632_v16  ;;  %v3378_v16 = vadd.f32 %v8084_v8, %v8079_v22 }
 0x4f2   : > { %4627 = vmatpush.bf16.msrb.mxu1 %v6664_v29  ;;  %v3982_v29 = vld [vmem:[#allocation6 + $0x5] sm:$0xff] }
 0x4f5   : > { %4373 = vmatpush.bf16.msrb.mxu3 %v6654_v3  ;;  %4496 = vmatpush.bf16.msra.mxu0 %v6663_v55 }
 0x4f7   : > { %v8136_v25 = vpop.f32.mrf.mxu3 }
 0x4f9   : > { %4374 = vmatpush.bf16.msrb.mxu3 %v6653_v40 }
 0x4fd   : > { %4375 = vmatpush.bf16.msrb.mxu3 %v6652_v58 }
 0x4ff   : > { %v3467_v41 = vpop.f32.mrf.mxu3 }
 0x500   : > { %v8141_v39 = vadd.f32 %v3467_v41, %v3379_v54  ;;  %v6646_v54 = vld [vmem:[%s8692_s10 + $0x70] sm:$0xff]  ;;  %v3566_v41 = vpop.f32.mrf.mxu0 }
 0x501   : > { %4249 = vmatpush.bf16.msrb.mxu2 %v6646_v54  ;;  %4376 = vmatpush.bf16.msrb.mxu3 %v6651_v1  ;;  %v3780_v54 = vpop.f32.mrf.mxu2 }
 0x505   : > { %4250 = vmatpush.bf16.msrb.mxu2 %v6645_v38  ;;  %4377 = vmatpush.bf16.msrb.mxu3 %v6650_v63  ;;  %v3589_v38 = vadd.f32 %v3564_v23, %v8120_v50  ;;  %v6662_v50 = vld [vmem:[%s8692_s10 + $0xf0] sm:$0xff] }
 0x506   : > { %4497 = vmatpush.bf16.msra.mxu0 %v6662_v50 }
 0x507   : > { %v8164_v49 = vpop.f32.mrf.mxu3  ;;  %v3696_v14 = vadd.f32 %v3671_v53, %v3589_v38 }
 0x508   : > { %v3569_v40 = vpop.f32.mrf.mxu0 }
 0x509   : > { %4251 = vmatpush.bf16.msrb.mxu2 %v6644_v9  ;;  %4378 = vmatpush.bf16.msrb.mxu3 %v6649_v43  ;;  %v3676_v9 = vpop.f32.mrf.mxu1  ;;  %v3783_v58 = vpop.f32.mrf.mxu2  ;;  %v3803_v36 = vadd.f32 %v3778_v11, %v3696_v14  ;;  %v3591_v43 = vadd.f32 %v3569_v40, %v8131_v7 }
 0x50d   : > { %4252 = vmatpush.bf16.msrb.mxu2 %v6643_v56  ;;  %4379 = vmatpush.bf16.msrb.mxu3 %v6648_v61  ;;  %v3485_v61 = vadd.f32 %v8136_v25, %v3378_v16 }
 0x50f   : > { %v3472_v52 = vpop.f32.mrf.mxu3 }
 0x510   : > { %v8194_v45 = vadd.f32 %v3472_v52, %v8099_v62  ;;  %v6642_v62 = vld [vmem:[%s8692_s10 + $0x50] sm:$0xff]  ;;  %v8252_v52 = vld [vmem:[%s8691_s9] ss:$0 sm:$0xff] }
 0x511   : > { %4253 = vmatpush.bf16.msrb.mxu2 %v6642_v62  ;;  %v3678_v63 = vpop.f32.mrf.mxu1  ;;  %v3785_v53 = vpop.f32.mrf.mxu2 }
 0x515   : > { %4254 = vmatpush.bf16.msrb.mxu2 %v6641_v0  ;;  %v6661_v0 = vld [vmem:[%s8692_s10 + $0xe8] sm:$0xff] }
 0x516   : > { %4498 = vmatpush.bf16.msra.mxu0 %v6661_v0 }
 0x517   : > { %v8214_v26 = vpop.f32.mrf.mxu3 }
 0x519   : > { %4255 = vmatpush.bf16.msrb.mxu2 %v6640_v32  ;;  %v3788_v50 = vpop.f32.mrf.mxu2 }
 0x51f   : > { %v3477_v24 = vpop.f32.mrf.mxu3 }
 0x520   : > { %v8238_v47 = vadd.f32 %v3477_v24, %v8111_v18  ;;  %v3376_v18 = vadd.f32 %v8074_v34, %v8068_v21  ;;  %v3571_v34 = vpop.f32.mrf.mxu0 }
 0x522   : > { %v3483_v31 = vadd.f32 %v8125_v51, %v3376_v18 }
 0x524   : > { %v3590_v1 = vadd.f32 %v3566_v41, %v3483_v31  ;;  %v3698_v41 = vadd.f32 %v3676_v9, %v3591_v43  ;;  %v3592_v9 = vadd.f32 %v3571_v34, %v3485_v61 }
 0x526   : > { %v3697_v51 = vadd.f32 %v3673_v46, %v3590_v1  ;;  %v4168_v46 = vld [vmem:[#allocation6 + $0x6] sm:$0xff]  ;;  %v3805_v38 = vadd.f32 %v3783_v58, %v3698_v41 }
 0x527   : > { %v8240_v3 = vpop.f32.mrf.mxu3 }
 0x528   : > { %v3804_v62 = vadd.f32 %v3780_v54, %v3697_v51  ;;  %v4292_v54 = vld [vmem:[#allocation6 + $0x7] sm:$0xff]  ;;  %v3574_v55 = vpop.f32.mrf.mxu0 }
 0x529   : > { %v3593_v0 = vadd.f32 %v3574_v55, %v8141_v39 }
 0x52f   : > { %v3885_v56 = vpop.f32.mrf.mxu3 }
 0x530   : > { %v3910_v20 = vadd.f32 %v3885_v56, %v3803_v36  ;;  %v3681_v36 = vpop.f32.mrf.mxu1 }
 0x532   : > { %v3923_v21 = vadd.f32 %v8252_v52, %v3910_v20  ;;  %v3699_v20 = vadd.f32 %v3678_v63, %v3592_v9  ;;  %v6679_v9 = vld [vmem:[%s8692_s10 + $0x178] sm:$0xff] }
 0x533   : > { %4744 = vmatpush.bf16.msra.mxu2 %v6679_v9 }
 0x534   : > { %v3933_v23 = vmax.f32 %v3923_v21, 0.0  ;;  %v3806_v51 = vadd.f32 %v3785_v53, %v3699_v20 }
 0x536   : > { %v3943_v57 = vsel %vm7456_vm8, %v3933_v23, 0.0 }
 0x537   : > { %3957 = vst [vmem:[#allocation6 + $0x10] sm:$0xff] %v3943_v57  ;;  %v3887_v11 = vpop.f32.mrf.mxu3 }
 0x538   : > { %v3911_v17 = vadd.f32 %v3887_v11, %v3804_v62  ;;  %v3576_v62 = vpop.f32.mrf.mxu0  ;;  %v6660_v11 = vld [vmem:[%s8692_s10 + $0xe0] sm:$0xff]  ;;  %v3683_v63 = vpop.f32.mrf.mxu1 }
 0x539   : > { %4499 = vmatpush.bf16.msra.mxu0 %v6660_v11 }
 0x53a   : > { %v3924_v32 = vadd.f32 %v8252_v52, %v3911_v17  ;;  %v3790_v17 = vpop.f32.mrf.mxu2 }
 0x53c   : > { %v3934_v24 = vmax.f32 %v3924_v32, 0.0  ;;  %v3700_v32 = vadd.f32 %v3681_v36, %v3593_v0  ;;  %v6687_v36 = vld [vmem:[%s8692_s10 + $0x1b8] sm:$0xff] }
 0x53d   : > { %4868 = vmatpush.bf16.msra.mxu3 %v6687_v36  ;;  %v6684_v36 = vld [vmem:[%s8692_s10 + $0x1a0] sm:$0xff] }
 0x53e   : > { %v3944_v18 = vsel %vm7472_vm11, %v3934_v24, 0.0  ;;  %v3983_v7 = vld [vmem:[#allocation6 + $0xd] sm:$0xff]  ;;  %v6759_v1 = vpack.c.bf16 %v3934_v24, %v3933_v23  ;;  %v3380_v23 = vadd.f32 %v8091_v2, %v8086_v42 }
 0x53f   : > { %v4169_v40 = vld [vmem:[#allocation6 + $0xe] sm:$0xff]  ;;  %3958 = vst [vmem:[#allocation6 + $0x18] sm:$0xff] %v3944_v18  ;;  %v3890_v22 = vpop.f32.mrf.mxu3  ;;  %v3992_v8 = vpack.c.bf16 %v3983_v7, %v3982_v29 }
 0x540   : > { %v8270_v31 = vld [vmem:[#allocation6 + $0xf] sm:$0xff]  ;;  %v4178_v14 = vpack.c.bf16 %v4169_v40, %v4168_v46  ;;  %v3912_v56 = vadd.f32 %v3890_v22, %v3805_v38  ;;  %6760 = vmatmul.msk.bf16.vlgmr.msrb.gmra.mxu1 %vm6758_vm4, %v6759_v1  ;;  %v3487_v16 = vadd.f32 %v8164_v49, %v3380_v23  ;;  %v3807_v46 = vadd.f32 %v3788_v50, %v3700_v32  ;;  %v6702_v23 = vld [vmem:[%s8692_s10 + $0x230] sm:$0xff] }
 0x541   : > { %v4302_v25 = vpack.c.bf16 %v8270_v31, %v4292_v54  ;;  %4069 = vmatmul.bf16.vlgmr.msrb.gmra.mxu0 %v3992_v8  ;;  %v6659_v7 = vld [vmem:[%s8692_s10 + $0xd8] sm:$0xff]  ;;  %v3579_v8 = vpop.f32.mrf.mxu0  ;;  %v3164_v50 = vadd.f32 %v8093_v28, %v8097_v12  ;;  %v6678_v28 = vld [vmem:[%s8692_s10 + $0x170] sm:$0xff] }
 0x542   : > { %4256 = vmatmul.bf16.vlgmr.msrb.gmra.mxu2 %v4178_v14  ;;  %v3925_v58 = vadd.f32 %v8252_v52, %v3912_v56  ;;  %v3594_v40 = vadd.f32 %v3576_v62, %v3487_v16  ;;  %v6703_v56 = vld [vmem:[%s8692_s10 + $0x238] sm:$0xff]  ;;  %4500 = vmatpush.bf16.msra.mxu0 %v6659_v7  ;;  %v6686_v12 = vld [vmem:[%s8692_s10 + $0x1b0] sm:$0xff]  ;;  %v3595_v0 = vadd.f32 %v3579_v8, %v8194_v45  ;;  %v6701_v45 = vld [vmem:[%s8692_s10 + $0x228] sm:$0xff] }
 0x543   : > { %4380 = vmatmul.bf16.vlgmr.msrb.gmra.mxu3 %v4302_v25  ;;  %5116 = vmatpush.bf16.msra.mxu1 %v6703_v56  ;;  %v3275_v11 = vadd.f32 %v8095_v13, %v3164_v50  ;;  %v6685_v13 = vld [vmem:[%s8692_s10 + $0x1a8] sm:$0xff]  ;;  %v6700_v56 = vld [vmem:[%s8692_s10 + $0x220] sm:$0xff] }
 0x544   : > { %v3935_v21 = vmax.f32 %v3925_v58, 0.0  ;;  %v3686_v58 = vpop.f32.mrf.mxu1  ;;  %v3701_v1 = vadd.f32 %v3683_v63, %v3594_v40  ;;  %4745 = vmatpush.bf16.msra.mxu2 %v6678_v28  ;;  %4869 = vmatpush.bf16.msra.mxu3 %v6686_v12  ;;  %v6657_v8 = vld [vmem:[%s8692_s10 + $0xc8] sm:$0xff] }
 0x545   : > { %v3382_v63 = vadd.f32 %v8104_v27, %v3275_v11  ;;  %v3702_v27 = vadd.f32 %v3686_v58, %v3595_v0 }
 0x546   : > { %v3945_v34 = vsel %vm7494_vm14, %v3935_v21, 0.0  ;;  %v3984_v41 = vld [vmem:[#allocation6 + $0x15] sm:$0xff] }
 0x547   : > { %3959 = vst [vmem:[#allocation6 + $0x20] sm:$0xff] %v3945_v34  ;;  %v3892_v57 = vpop.f32.mrf.mxu3  ;;  %v4170_v24 = vld [vmem:[#allocation6 + $0x16] sm:$0xff]  ;;  %5117 = vmatpush.bf16.msra.mxu1 %v6702_v23  ;;  %v3489_v32 = vadd.f32 %v8214_v26, %v3382_v63  ;;  %v6682_v63 = vld [vmem:[%s8692_s10 + $0x190] sm:$0xff] }
 0x548   : > { %v3913_v43 = vadd.f32 %v3892_v57, %v3806_v51  ;;  %v8288_v29 = vld [vmem:[#allocation6 + $0x17] sm:$0xff]  ;;  %v3808_v51 = vadd.f32 %v3790_v17, %v3701_v1  ;;  %v6658_v57 = vld [vmem:[%s8692_s10 + $0xd0] sm:$0xff]  ;;  %4870 = vmatpush.bf16.msra.mxu3 %v6685_v13  ;;  %v6675_v1 = vld [vmem:[%s8692_s10 + $0x158] sm:$0xff] }
 0x549   : > { %4501 = vmatpush.bf16.msra.mxu0 %v6658_v57  ;;  %v6677_v17 = vld [vmem:[%s8692_s10 + $0x168] sm:$0xff]  ;;  %v3581_v16 = vpop.f32.mrf.mxu0  ;;  %v6699_v57 = vld [vmem:[%s8692_s10 + $0x218] sm:$0xff] }
 0x54a   : > { %v3926_v53 = vadd.f32 %v8252_v52, %v3913_v43  ;;  %4746 = vmatpush.bf16.msra.mxu2 %v6677_v17 }
 0x54b   : > { %5118 = vmatpush.bf16.msra.mxu1 %v6701_v45 }
 0x54c   : > { %v3936_v61 = vmax.f32 %v3926_v53, 0.0  ;;  %4871 = vmatpush.bf16.msra.mxu3 %v6684_v36 }
 0x54d   : > { %4502 = vmatpush.bf16.msra.mxu0 %v6657_v8 }
 0x54e   : > { %v3946_v39 = vsel %vm7510_vm1, %v3936_v61, 0.0  ;;  %v3985_v54 = vld [vmem:[#allocation6 + $0x1d] sm:$0xff]  ;;  %v6762_v25 = vpack.c.bf16 %v3936_v61, %v3935_v21  ;;  %v3793_v21 = vpop.f32.mrf.mxu2 }
 0x54f   : > { %v4171_v55 = vld [vmem:[#allocation6 + $0x1e] sm:$0xff]  ;;  %3960 = vst [vmem:[#allocation6 + $0x28] sm:$0xff] %v3946_v39  ;;  %v3895_v42 = vpop.f32.mrf.mxu3  ;;  %v3993_v2 = vpack.c.bf16 %v3985_v54, %v3984_v41  ;;  %v3688_v39 = vpop.f32.mrf.mxu1  ;;  %v3809_v54 = vadd.f32 %v3793_v21, %v3702_v27  ;;  %v6656_v21 = vld [vmem:[%s8692_s10 + $0xc0] sm:$0xff]  ;;  %5119 = vmatpush.bf16.msra.mxu1 %v6700_v56 }
 0x550   : > { %v8292_v38 = vld [vmem:[#allocation6 + $0x1f] sm:$0xff]  ;;  %v4179_v18 = vpack.c.bf16 %v4171_v55, %v4170_v24  ;;  %v3914_v22 = vadd.f32 %v3895_v42, %v3807_v46  ;;  %6763 = vmatmul.msk.bf16.gmra.mxu1 %vm6761_vm0, %v6762_v25  ;;  %v3596_v25 = vadd.f32 %v3581_v16, %v3489_v32 }
 0x551   : > { %v4303_v49 = vpack.c.bf16 %v8292_v38, %v8288_v29  ;;  %4074 = vmatmul.bf16.gmra.mxu0 %v3993_v2  ;;  %v3584_v28 = vpop.f32.mrf.mxu0  ;;  %v6673_v27 = vld [vmem:[%s8692_s10 + $0x148] sm:$0xff] }
 0x552   : > { %4261 = vmatmul.bf16.gmra.mxu2 %v4179_v18  ;;  %v8300_v14 = vadd.f32 %v8252_v52, %v3914_v22  ;;  %4503 = vmatpush.bf16.msra.mxu0 %v6656_v21  ;;  %v6696_v21 = vld [vmem:[%s8692_s10 + $0x200] sm:$0xff] }
 0x553   : > { %4385 = vmatmul.bf16.gmra.mxu3 %v4303_v49  ;;  %5120 = vmatpush.bf16.msra.mxu1 %v6699_v57 }
 0x554   : > { %v3937_v20 = vmax.f32 %v8300_v14, 0.0  ;;  %v6676_v14 = vld [vmem:[%s8692_s10 + $0x160] sm:$0xff] }
 0x555   : > { %4747 = vmatpush.bf16.msra.mxu2 %v6676_v14 }
 0x556   : > { %v3947_v34 = vsel %vm7539_vm5, %v3937_v20, 0.0  ;;  %v3986_v41 = vld [vmem:[#allocation6 + $0x25] sm:$0xff]  ;;  %v3795_v49 = vpop.f32.mrf.mxu2 }
 0x557   : > { %3961 = vst [vmem:[#allocation6 + $0x30] sm:$0xff] %v3947_v34  ;;  %v3897_v62 = vpop.f32.mrf.mxu3  ;;  %v4172_v24 = vld [vmem:[#allocation6 + $0x26] sm:$0xff]  ;;  %v3703_v34 = vadd.f32 %v3688_v39, %v3596_v25  ;;  %v3691_v17 = vpop.f32.mrf.mxu1  ;;  %v6672_v25 = vld [vmem:[%s8692_s10 + $0x140] sm:$0xff] }
 0x558   : > { %v3915_v43 = vadd.f32 %v3897_v62, %v3808_v51  ;;  %v8346_v46 = vld [vmem:[#allocation6 + $0x27] sm:$0xff]  ;;  %v3169_v51 = vadd.f32 %v8175_v60, %v8109_v30 }
 0x559   : > { %v3810_v12 = vadd.f32 %v3795_v49, %v3703_v34  ;;  %4748 = vmatpush.bf16.msra.mxu2 %v6675_v1  ;;  %v6674_v60 = vld [vmem:[%s8692_s10 + $0x150] sm:$0xff] }
 0x55a   : > { %v3928_v53 = vadd.f32 %v8252_v52, %v3915_v43  ;;  %v3277_v0 = vadd.f32 %v8186_v5, %v3169_v51  ;;  %v3597_v43 = vadd.f32 %v3584_v28, %v8238_v47 }
 0x55c   : > { %v3938_v61 = vmax.f32 %v3928_v53, 0.0  ;;  %v6698_v53 = vld [vmem:[%s8692_s10 + $0x210] sm:$0xff]  ;;  %v3384_v45 = vadd.f32 %v8191_v59, %v3277_v0  ;;  %v3704_v47 = vadd.f32 %v3691_v17, %v3597_v43 }
 0x55d   : > { %4749 = vmatpush.bf16.msra.mxu2 %v6674_v60  ;;  %5121 = vmatpush.bf16.msra.mxu1 %v6698_v53 }
 0x55e   : > { %v3948_v55 = vsel %vm7555_vm9, %v3938_v61, 0.0  ;;  %v3987_v42 = vld [vmem:[#allocation6 + $0x2d] sm:$0xff]  ;;  %v6765_v58 = vpack.c.bf16 %v3938_v61, %v3937_v20  ;;  %v3798_v13 = vpop.f32.mrf.mxu2  ;;  %v3491_v5 = vadd.f32 %v8240_v3, %v3384_v45  ;;  %v6681_v61 = vld [vmem:[%s8692_s10 + $0x188] sm:$0xff] }
 0x55f   : > { %v4173_v2 = vld [vmem:[#allocation6 + $0x2e] sm:$0xff]  ;;  %3962 = vst [vmem:[#allocation6 + $0x38] sm:$0xff] %v3948_v55  ;;  %v3900_v26 = vpop.f32.mrf.mxu3  ;;  %v3994_v7 = vpack.c.bf16 %v3987_v42, %v3986_v41  ;;  %v3811_v39 = vadd.f32 %v3798_v13, %v3704_v47 }
 0x560   : > { %v8350_v18 = vld [vmem:[#allocation6 + $0x2f] sm:$0xff]  ;;  %v4180_v40 = vpack.c.bf16 %v4173_v2, %v4172_v24  ;;  %v3916_v9 = vadd.f32 %v3900_v26, %v3809_v54  ;;  %6766 = vmatmul.msk.bf16.gmra.mxu1 %vm6764_vm3, %v6765_v58  ;;  %v3586_v2 = vpop.f32.mrf.mxu0  ;;  %v3693_v58 = vpop.f32.mrf.mxu1 }
 0x561   : > { %v4304_v22 = vpack.c.bf16 %v8350_v18, %v8346_v46  ;;  %4079 = vmatmul.bf16.gmra.mxu0 %v3994_v7  ;;  %v6683_v20 = vld [vmem:[%s8692_s10 + $0x198] sm:$0xff]  ;;  %v3598_v8 = vadd.f32 %v3586_v2, %v3491_v5  ;;  %4750 = vmatpush.bf16.msra.mxu2 %v6673_v27  ;;  %v6693_v5 = vld [vmem:[%s8692_s10 + $0x1e8] sm:$0xff]  ;;  %v6692_v47 = vld [vmem:[%s8692_s10 + $0x1e0] sm:$0xff] }
 0x562   : > { %4266 = vmatmul.bf16.gmra.mxu2 %v4180_v40  ;;  %v8367_v50 = vadd.f32 %v8252_v52, %v3916_v9  ;;  %4872 = vmatpush.bf16.msra.mxu3 %v6683_v20  ;;  %v6680_v9 = vld [vmem:[%s8692_s10 + $0x180] sm:$0xff]  ;;  %v4665_v27 = vld [vmem:[#allocation6 + $0x19] sm:$0xff] }
 0x563   : > { %4390 = vmatmul.bf16.gmra.mxu3 %v4304_v22  ;;  %v6697_v22 = vld [vmem:[%s8692_s10 + $0x208] sm:$0xff]  ;;  %v3705_v51 = vadd.f32 %v3693_v58, %v3598_v8 }
 0x564   : > { %v3939_v62 = vmax.f32 %v8367_v50, 0.0  ;;  %v6695_v50 = vld [vmem:[%s8692_s10 + $0x1f8] sm:$0xff]  ;;  %5122 = vmatpush.bf16.msra.mxu1 %v6697_v22 }
 0x565   : > { %4751 = vmatpush.bf16.msra.mxu2 %v6672_v25  ;;  %4992 = vmatpush.bf16.msrb.mxu0 %v6695_v50 }
 0x566   : > { %v3949_v11 = vsel %vm7593_vm13, %v3939_v62, 0.0  ;;  %4873 = vmatpush.bf16.msra.mxu3 %v6682_v63  ;;  %v3988_v41 = vld [vmem:[#allocation6 + $0x35] sm:$0xff]  ;;  %v3800_v1 = vpop.f32.mrf.mxu2 }
 0x567   : > { %3963 = vst [vmem:[#allocation6 + $0x40] sm:$0xff] %v3949_v11  ;;  %v3902_v30 = vpop.f32.mrf.mxu3  ;;  %v4174_v24 = vld [vmem:[#allocation6 + $0x36] sm:$0xff]  ;;  %v3812_v20 = vadd.f32 %v3800_v1, %v3705_v51 }
 0x568   : > { %v3917_v23 = vadd.f32 %v3902_v30, %v3810_v12  ;;  %v8410_v59 = vld [vmem:[#allocation6 + $0x37] sm:$0xff]  ;;  %5123 = vmatpush.bf16.msra.mxu1 %v6696_v21 }
 0x569   : > { %v4791_v22 = vld [vmem:[#allocation6 + $0x31] sm:$0xff] }
 0x56a   : > { %v3930_v16 = vadd.f32 %v8252_v52, %v3917_v23  ;;  %4874 = vmatpush.bf16.msra.mxu3 %v6681_v61  ;;  %v4789_v61 = vld [vmem:[#allocation6 + $0x21] sm:$0xff]  ;;  %v5039_v8 = vld [vmem:[#allocation6 + $0x33] sm:$0xff] }
 0x56c   : > { %v3940_v32 = vmax.f32 %v3930_v16, 0.0 }
 0x56e   : > { %v3950_v3 = vsel %vm7624_vm2, %v3940_v32, 0.0  ;;  %v3989_v54 = vld [vmem:[#allocation6 + $0x3d] sm:$0xff]  ;;  %v6768_v56 = vpack.c.bf16 %v3940_v32, %v3939_v62  ;;  %4875 = vmatpush.bf16.msra.mxu3 %v6680_v9  ;;  %v8462_v32 = vpop.f32.mrf.mxu1 }
 0x56f   : > { %v4175_v55 = vld [vmem:[#allocation6 + $0x3e] sm:$0xff]  ;;  %3964 = vst [vmem:[#allocation6 + $0x48] sm:$0xff] %v3950_v3  ;;  %v3905_v49 = vpop.f32.mrf.mxu3  ;;  %v3995_v26 = vpack.c.bf16 %v3989_v54, %v3988_v41 }
 0x570   : > { %v8414_v42 = vld [vmem:[#allocation6 + $0x3f] sm:$0xff]  ;;  %v4181_v7 = vpack.c.bf16 %v4175_v55, %v4174_v24  ;;  %v3918_v14 = vadd.f32 %v3905_v49, %v3811_v39  ;;  %6769 = vmatmul.msk.bf16.gmra.mxu1 %vm6767_vm6, %v6768_v56  ;;  %v4664_v24 = vld [vmem:[#allocation6 + $0x11] sm:$0xff]  ;;  %v4426_v39 = vpack.c.bf16 %v8288_v29, %v8270_v31  ;;  %v4798_v55 = vpack.c.bf16 %v4789_v61, %v4665_v27 }
 0x571   : > { %v4305_v40 = vpack.c.bf16 %v8414_v42, %v8410_v59  ;;  %4084 = vmatmul.bf16.gmra.mxu0 %v3995_v26  ;;  %v6694_v62 = vld [vmem:[%s8692_s10 + $0x1f0] sm:$0xff]  ;;  %v4674_v3 = vpack.c.bf16 %v4665_v27, %v4664_v24  ;;  %v6691_v26 = vld [vmem:[%s8692_s10 + $0x1d8] sm:$0xff]  ;;  %v4427_v31 = vpack.c.bf16 %v8346_v46, %v8292_v38  ;;  %v4428_v38 = vpack.c.bf16 %v8410_v59, %v8350_v18 }
 0x572   : > { %4271 = vmatmul.bf16.gmra.mxu2 %v4181_v7  ;;  %v3931_v36 = vadd.f32 %v8252_v52, %v3918_v14  ;;  %4993 = vmatpush.bf16.msrb.mxu0 %v6694_v62  ;;  %v5037_v41 = vld [vmem:[#allocation6 + $0x23] sm:$0xff]  ;;  %v5036_v54 = vld [vmem:[#allocation6 + $0x1b] sm:$0xff]  ;;  %v5038_v14 = vld [vmem:[#allocation6 + $0x2b] sm:$0xff] }
 0x573   : > { %4395 = vmatmul.bf16.gmra.mxu3 %v4305_v40  ;;  %v5046_v2 = vpack.c.bf16 %v5037_v41, %v5036_v54  ;;  %v4667_v40 = vld [vmem:[#allocation6 + $0x29] sm:$0xff]  ;;  %v5047_v9 = vpack.c.bf16 %v5039_v8, %v5038_v14  ;;  %v4669_v50 = vld [vmem:[#allocation6 + $0x39] sm:$0xff] }
 0x574   : > { %v3941_v34 = vmax.f32 %v3931_v36, 0.0  ;;  %v4675_v29 = vpack.c.bf16 %v4667_v40, %v4789_v61  ;;  %v4799_v25 = vpack.c.bf16 %v4791_v22, %v4667_v40  ;;  %v6690_v36 = vld [vmem:[%s8692_s10 + $0x1d0] sm:$0xff]  ;;  %v4676_v46 = vpack.c.bf16 %v4669_v50, %v4791_v22 }
 0x575   : > { %v5040_v51 = vld [vmem:[#allocation6 + $0x3b] sm:$0xff] }
 0x576   : > { %v3951_v57 = vsel %vm7660_vm7, %v3941_v34, 0.0  ;;  %v3990_v60 = vld [vmem:[#allocation6 + $0x45] sm:$0xff]  ;;  %4994 = vmatpush.bf16.msrb.mxu0 %v6693_v5  ;;  %v4145_v49 = vpop.f32.mrf.mxu1 }
 0x577   : > { %3965 = vst [vmem:[#allocation6 + $0x50] sm:$0xff] %v3951_v57  ;;  %v3907_v28 = vpop.f32.mrf.mxu3  ;;  %v4176_v0 = vld [vmem:[#allocation6 + $0x46] sm:$0xff]  ;;  %v6688_v57 = vld [vmem:[%s8692_s10 + $0x1c0] sm:$0xff] }
 0x578   : > { %v3919_v12 = vadd.f32 %v3907_v28, %v3812_v20  ;;  %v8444_v43 = vld [vmem:[#allocation6 + $0x47] sm:$0xff] }
 0x579   : > { %v4793_v58 = vld [vmem:[#allocation6 + $0x41] sm:$0xff] }
 0x57a   : > { %v3932_v11 = vadd.f32 %v8252_v52, %v3919_v12  ;;  %4995 = vmatpush.bf16.msrb.mxu0 %v6692_v47  ;;  %v5041_v1 = vld [vmem:[#allocation6 + $0x43] sm:$0xff]  ;;  %v4800_v62 = vpack.c.bf16 %v4793_v58, %v4669_v50 }
 0x57b   : > { %v5048_v20 = vpack.c.bf16 %v5041_v1, %v5040_v51  ;;  %v4912_v51 = vld [vmem:[#allocation6 + $0x1a] sm:$0xff] }
 0x57c   : > { %v3942_v30 = vmax.f32 %v3932_v11, 0.0 }
 0x57e   : > { %v3952_v23 = vsel %vm7674_vm15, %v3942_v30, 0.0  ;;  %v3991_v63 = vld [vmem:[#allocation6 + $0x4d] sm:$0xff]  ;;  %v6771_v52 = vpack.c.bf16 %v3942_v30, %v3941_v34  ;;  %4996 = vmatpush.bf16.msrb.mxu0 %v6691_v26  ;;  %v8469_v7 = vpop.f32.mrf.mxu1  ;;  %v6689_v34 = vld [vmem:[%s8692_s10 + $0x1c8] sm:$0xff]  ;;  %v4429_v30 = vpack.c.bf16 %v8444_v43, %v8414_v42 }
 0x57f   : > { %v4177_v53 = vld [vmem:[#allocation6 + $0x4e] sm:$0xff]  ;;  %3966 = vst [vmem:[#allocation6 + $0x58] sm:$0xff] %v3952_v23  ;;  %v3996_v13 = vpack.c.bf16 %v3991_v63, %v3990_v60 }
 0x580   : > { %v8448_v17 = vld [vmem:[#allocation6 + $0x4f] sm:$0xff]  ;;  %v4182_v45 = vpack.c.bf16 %v4177_v53, %v4176_v0  ;;  %6772 = vmatmul.msk.bf16.gmra.mxu1 %vm6770_vm10, %v6771_v52 }
 0x581   : > { %v4306_v16 = vpack.c.bf16 %v8448_v17, %v8444_v43  ;;  %4089 = vmatmul.bf16.gmra.mxu0 %v3996_v13  ;;  %v4671_v18 = vld [vmem:[#allocation6 + $0x49] sm:$0xff] }
 0x582   : > { %4276 = vmatmul.bf16.gmra.mxu2 %v4182_v45  ;;  %4997 = vmatpush.bf16.msrb.mxu0 %v6690_v36  ;;  %v4677_v60 = vpack.c.bf16 %v4671_v18, %v4793_v58  ;;  %v5042_v0 = vld [vmem:[#allocation6 + $0x4b] sm:$0xff] }
 0x583   : > { %4400 = vmatmul.bf16.gmra.mxu3 %v4306_v16 }
 0x586   : > { %v8476_v56 = vpop.f32.mrf.mxu1  ;;  %4998 = vmatpush.bf16.msrb.mxu0 %v6689_v34  ;;  %v4795_v59 = vld [vmem:[#allocation6 + $0x51] sm:$0xff]  ;;  %v4673_v61 = vld [vmem:[#allocation6 + $0x59] sm:$0xff] }
 0x587   : > { %v5043_v12 = vld [vmem:[#allocation6 + $0x53] sm:$0xff]  ;;  %v4801_v23 = vpack.c.bf16 %v4795_v59, %v4671_v18  ;;  %v5044_v54 = vld [vmem:[#allocation6 + $0x5b] sm:$0xff]  ;;  %v4678_v40 = vpack.c.bf16 %v4673_v61, %v4795_v59 }
 0x588   : > { %v5049_v63 = vpack.c.bf16 %v5043_v12, %v5042_v0  ;;  %v4425_v43 = vld [vmem:[#allocation6 + $0x57] sm:$0xff] }
 0x589   : > { %v4915_v0 = vld [vmem:[#allocation6 + $0x32] sm:$0xff] }
 0x58a   : > { %4999 = vmatpush.bf16.msrb.mxu0 %v6688_v57 }
 0x58e   : > { %v8478_v21 = vpop.f32.mrf.mxu1 }
 0x590   : > { %5124 = vmatmul.bf16.vlgmr.msra.gmra.mxu1 %v5046_v2 }
 0x591   : > { %4504 = vmatmul.bf16.vlgmr.msra.gmra.mxu0 %v4426_v39 }
 0x592   : > { %4752 = vmatmul.bf16.vlgmr.msra.gmra.mxu2 %v4674_v3  ;;  %v4797_v3 = vld [vmem:[#allocation6 + $0x61] sm:$0xff] }
 0x593   : > { %4876 = vmatmul.bf16.vlgmr.msra.gmra.mxu3 %v4798_v55  ;;  %v5045_v55 = vld [vmem:[#allocation6 + $0x63] sm:$0xff]  ;;  %v4802_v22 = vpack.c.bf16 %v4797_v3, %v4673_v61 }
 0x594   : > { %v5050_v8 = vpack.c.bf16 %v5045_v55, %v5044_v54  ;;  %v4917_v3 = vld [vmem:[#allocation6 + $0x42] sm:$0xff] }
 0x596   : > { %v8488_v28 = vpop.f32.mrf.mxu1 }
 0x59e   : > { %v8492_v53 = vpop.f32.mrf.mxu1 }
 0x5a0   : > { %5129 = vmatmul.bf16.gmra.mxu1 %v5047_v9 }
 0x5a1   : > { %4509 = vmatmul.bf16.gmra.mxu0 %v4427_v31 }
 0x5a2   : > { %4757 = vmatmul.bf16.gmra.mxu2 %v4675_v29 }
 0x5a3   : > { %4881 = vmatmul.bf16.gmra.mxu3 %v4799_v25 }
 0x5a6   : > { %v4160_v41 = vpop.f32.mrf.mxu1 }
 0x5ae   : > { %v4163_v9 = vpop.f32.mrf.mxu1 }
 0x5b0   : > { %5134 = vmatmul.bf16.gmra.mxu1 %v5048_v20 }
 0x5b1   : > { %4514 = vmatmul.bf16.gmra.mxu0 %v4428_v38 }
 0x5b2   : > { %4762 = vmatmul.bf16.gmra.mxu2 %v4676_v46 }
 0x5b3   : > { %4886 = vmatmul.bf16.gmra.mxu3 %v4800_v62 }
 0x5b6   : > { %v4165_v20 = vpop.f32.mrf.mxu1 }
 0x5be   : > { %v4070_v11 = vpop.f32.mrf.mxu0 }
 0x5bf   : > { %v4144_v13 = vadd.f32 %v8462_v32, %v4070_v11  ;;  %v4430_v32 = vpack.c.bf16 %v4425_v43, %v8448_v17  ;;  %v4913_v17 = vld [vmem:[#allocation6 + $0x22] sm:$0xff] }
 0x5c0   : > { %5139 = vmatmul.bf16.gmra.mxu1 %v5049_v63  ;;  %v4922_v62 = vpack.c.bf16 %v4913_v17, %v4912_v51  ;;  %v4919_v17 = vld [vmem:[#allocation6 + $0x52] sm:$0xff]  ;;  %v4918_v51 = vld [vmem:[#allocation6 + $0x4a] sm:$0xff] }
 0x5c1   : > { %4519 = vmatmul.bf16.gmra.mxu0 %v4429_v30 }
 0x5c2   : > { %4767 = vmatmul.bf16.gmra.mxu2 %v4677_v60 }
 0x5c3   : > { %4891 = vmatmul.bf16.gmra.mxu3 %v4801_v23 }
 0x5c5   : > { %v4257_v45 = vpop.f32.mrf.mxu2 }
 0x5c6   : > { %v4282_v16 = vadd.f32 %v4257_v45, %v4144_v13  ;;  %v4381_v52 = vpop.f32.mrf.mxu3  ;;  %v4072_v5 = vpop.f32.mrf.mxu0  ;;  %v4914_v45 = vld [vmem:[#allocation6 + $0x2a] sm:$0xff] }
 0x5c7   : > { %v4146_v27 = vadd.f32 %v4145_v49, %v4072_v5 }
 0x5c8   : > { %v8495_v47 = vadd.f32 %v4381_v52, %v4282_v16  ;;  %v4923_v52 = vpack.c.bf16 %v4915_v0, %v4914_v45 }
 0x5cd   : > { %v4259_v42 = vpop.f32.mrf.mxu2 }
 0x5ce   : > { %v4283_v24 = vadd.f32 %v4259_v42, %v4146_v27  ;;  %v4383_v39 = vpop.f32.mrf.mxu3  ;;  %v4075_v2 = vpop.f32.mrf.mxu0 }
 0x5cf   : > { %v4149_v49 = vadd.f32 %v8469_v7, %v4075_v2 }
 0x5d0   : > { %v8497_v26 = vadd.f32 %v4383_v39, %v4283_v24  ;;  %5144 = vmatmul.bf16.gmra.mxu1 %v5050_v8 }
 0x5d1   : > { %4524 = vmatmul.bf16.gmra.mxu0 %v4430_v32 }
 0x5d2   : > { %4772 = vmatmul.bf16.gmra.mxu2 %v4678_v40  ;;  %v4916_v40 = vld [vmem:[#allocation6 + $0x3a] sm:$0xff] }
 0x5d3   : > { %4896 = vmatmul.bf16.gmra.mxu3 %v4802_v22  ;;  %v4924_v8 = vpack.c.bf16 %v4917_v3, %v4916_v40 }
 0x5d5   : > { %v4262_v31 = vpop.f32.mrf.mxu2 }
 0x5d6   : > { %v4284_v29 = vadd.f32 %v4262_v31, %v4149_v49  ;;  %v4386_v14 = vpop.f32.mrf.mxu3  ;;  %v4077_v25 = vpop.f32.mrf.mxu0 }
 0x5d7   : > { %v4151_v50 = vadd.f32 %v8476_v56, %v4077_v25  ;;  %v8509_v56 = vpop.f32.mrf.mxu1 }
 0x5d8   : > { %v8501_v36 = vadd.f32 %v4386_v14, %v4284_v29 }
 0x5dd   : > { %v4264_v58 = vpop.f32.mrf.mxu2 }
 0x5de   : > { %v4285_v1 = vadd.f32 %v4264_v58, %v4151_v50  ;;  %v4388_v38 = vpop.f32.mrf.mxu3  ;;  %v4080_v46 = vpop.f32.mrf.mxu0 }
 0x5df   : > { %v4154_v7 = vadd.f32 %v8478_v21, %v4080_v46  ;;  %v8512_v21 = vpop.f32.mrf.mxu1 }
 0x5e0   : > { %v8504_v34 = vadd.f32 %v4388_v38, %v4285_v1 }
 0x5e1   : > { %5000 = vmatmul.bf16.vlgmr.msrb.gmra.mxu0 %v4922_v62 }
 0x5e5   : > { %v4267_v57 = vpop.f32.mrf.mxu2 }
 0x5e6   : > { %v4286_v18 = vadd.f32 %v4267_v57, %v4154_v7  ;;  %v4391_v59 = vpop.f32.mrf.mxu3  ;;  %v4082_v12 = vpop.f32.mrf.mxu0  ;;  %v4925_v57 = vpack.c.bf16 %v4919_v17, %v4918_v51  ;;  %v5222_v17 = vld [vmem:[%s8695_s13 + $0x68] sm:$0xff] }
 0x5e7   : > { %v4156_v30 = vadd.f32 %v8488_v28, %v4082_v12  ;;  %v8515_v54 = vpop.f32.mrf.mxu1 }
 0x5e8   : > { %v8507_v11 = vadd.f32 %v4391_v59, %v4286_v18 }
 0x5ed   : > { %v4269_v60 = vpop.f32.mrf.mxu2 }
 0x5ee   : > { %v4287_v23 = vadd.f32 %v4269_v60, %v4156_v30  ;;  %v4393_v63 = vpop.f32.mrf.mxu3  ;;  %v4085_v13 = vpop.f32.mrf.mxu0  ;;  %v4920_v30 = vld [vmem:[#allocation6 + $0x5a] sm:$0xff] }
 0x5ef   : > { %v4159_v5 = vadd.f32 %v8492_v53, %v4085_v13  ;;  %v8517_v25 = vpop.f32.mrf.mxu1 }
 0x5f0   : > { %v4411_v16 = vadd.f32 %v4393_v63, %v4287_v23 }
 0x5f1   : > { %5005 = vmatmul.bf16.gmra.mxu0 %v4923_v52 }
 0x5f5   : > { %v4272_v27 = vpop.f32.mrf.mxu2 }
 0x5f6   : > { %v4288_v42 = vadd.f32 %v4272_v27, %v4159_v5  ;;  %v4396_v43 = vpop.f32.mrf.mxu3  ;;  %v4087_v61 = vpop.f32.mrf.mxu0 }
 0x5f7   : > { %v4161_v39 = vadd.f32 %v4160_v41, %v4087_v61  ;;  %v8520_v18 = vpop.f32.mrf.mxu1 }
 0x5f8   : > { %v4412_v24 = vadd.f32 %v4396_v43, %v4288_v42 }
 0x5fd   : > { %v4274_v28 = vpop.f32.mrf.mxu2 }
 0x5fe   : > { %v4289_v55 = vadd.f32 %v4274_v28, %v4161_v39  ;;  %v4398_v2 = vpop.f32.mrf.mxu3  ;;  %v4090_v32 = vpop.f32.mrf.mxu0 }
 0x5ff   : > { %v4164_v49 = vadd.f32 %v4163_v9, %v4090_v32  ;;  %v8523_v12 = vpop.f32.mrf.mxu1 }
 0x600   : > { %v4413_v22 = vadd.f32 %v4398_v2, %v4289_v55 }
 0x601   : > { %5010 = vmatmul.bf16.gmra.mxu0 %v4924_v8 }
 0x605   : > { %v4277_v31 = vpop.f32.mrf.mxu2 }
 0x606   : > { %v4290_v53 = vadd.f32 %v4277_v31, %v4164_v49  ;;  %v4401_v29 = vpop.f32.mrf.mxu3  ;;  %v4092_v14 = vpop.f32.mrf.mxu0 }
 0x607   : > { %v4166_v41 = vadd.f32 %v4165_v20, %v4092_v14  ;;  %v4921_v20 = vld [vmem:[#allocation6 + $0x62] sm:$0xff]  ;;  %v8526_v63 = vpop.f32.mrf.mxu1 }
 0x608   : > { %v4414_v50 = vadd.f32 %v4401_v29, %v4290_v53  ;;  %v4926_v23 = vpack.c.bf16 %v4921_v20, %v4920_v30  ;;  %v5224_v53 = vld [vmem:[%s8695_s13 + $0x78] sm:$0xff]  ;;  %v5221_v20 = vld [vmem:[%s8695_s13 + $0x60] sm:$0xff] }
 0x609   : > { %5226 = vmatpush.msrb.mxu2 %v5224_v53 }
 0x60d   : > { %v4279_v58 = vpop.f32.mrf.mxu2 }
 0x60e   : > { %v4291_v1 = vadd.f32 %v4279_v58, %v4166_v41  ;;  %v4403_v38 = vpop.f32.mrf.mxu3  ;;  %v4505_v46 = vpop.f32.mrf.mxu0 }
 0x60f   : > { %v4530_v7 = vadd.f32 %v4505_v46, %v8495_v47  ;;  %v8529_v52 = vpop.f32.mrf.mxu1 }
 0x610   : > { %v4415_v62 = vadd.f32 %v4403_v38, %v4291_v1 }
 0x611   : > { %5015 = vmatmul.bf16.gmra.mxu0 %v4925_v57  ;;  %v4654_v8 = vadd.f32 %v8509_v56, %v4530_v7 }
 0x615   : > { %v4753_v39 = vpop.f32.mrf.mxu2 }
 0x616   : > { %v4507_v9 = vpop.f32.mrf.mxu0  ;;  %v4778_v29 = vadd.f32 %v4753_v39, %v4654_v8 }
 0x617   : > { %v4531_v59 = vadd.f32 %v4507_v9, %v8497_v26  ;;  %v8536_v42 = vpop.f32.mrf.mxu1 }
 0x619   : > { %v4655_v56 = vadd.f32 %v8512_v21, %v4531_v59 }
 0x61d   : > { %v4755_v2 = vpop.f32.mrf.mxu2 }
 0x61e   : > { %v4510_v60 = vpop.f32.mrf.mxu0  ;;  %v4779_v1 = vadd.f32 %v4755_v2, %v4655_v56  ;;  %v5218_v56 = vld [vmem:[%s8695_s13 + $0x48] sm:$0xff] }
 0x61f   : > { %v4532_v0 = vadd.f32 %v4510_v60, %v8501_v36  ;;  %v8540_v61 = vpop.f32.mrf.mxu1  ;;  %v5220_v60 = vld [vmem:[%s8695_s13 + $0x58] sm:$0xff] }
 0x621   : > { %5020 = vmatmul.bf16.gmra.mxu0 %v4926_v23  ;;  %v4656_v9 = vadd.f32 %v8515_v54, %v4532_v0 }
 0x626   : > { %v4512_v13 = vpop.f32.mrf.mxu0 }
 0x627   : > { %v4533_v47 = vadd.f32 %v4512_v13, %v8504_v34  ;;  %v4877_v34 = vpop.f32.mrf.mxu3  ;;  %v5125_v55 = vpop.f32.mrf.mxu1 }
 0x628   : > { %v4902_v14 = vadd.f32 %v4877_v34, %v4778_v29 }
 0x629   : > { %v4657_v34 = vadd.f32 %v8517_v25, %v4533_v47 }
 0x62e   : > { %v4515_v45 = vpop.f32.mrf.mxu0 }
 0x62f   : > { %v8532_v5 = vadd.f32 %v4515_v45, %v8507_v11  ;;  %v4879_v40 = vpop.f32.mrf.mxu3  ;;  %v5127_v49 = vpop.f32.mrf.mxu1 }
 0x630   : > { %v4903_v7 = vadd.f32 %v4879_v40, %v4779_v1 }
 0x631   : > { %v4658_v33 = vadd.f32 %v8520_v18, %v8532_v5 }
 0x636   : > { %v4517_v26 = vpop.f32.mrf.mxu0 }
 0x637   : > { %v8534_v27 = vadd.f32 %v4517_v26, %v4411_v16  ;;  %v5130_v38 = vpop.f32.mrf.mxu1 }
 0x63e   : > { %v4520_v43 = vpop.f32.mrf.mxu0 }
 0x63f   : > { %v8538_v36 = vadd.f32 %v4520_v43, %v4412_v24  ;;  %v4758_v24 = vpop.f32.mrf.mxu2  ;;  %v5132_v45 = vpop.f32.mrf.mxu1 }
 0x640   : > { %v4780_v23 = vadd.f32 %v4758_v24, %v4656_v9 }
 0x646   : > { %v4522_v28 = vpop.f32.mrf.mxu0 }
 0x647   : > { %v8542_v3 = vadd.f32 %v4522_v28, %v4413_v22  ;;  %v5223_v22 = vld [vmem:[%s8695_s13 + $0x70] sm:$0xff]  ;;  %v4760_v46 = vpop.f32.mrf.mxu2  ;;  %v5135_v25 = vpop.f32.mrf.mxu1 }
 0x648   : > { %5227 = vmatpush.msrb.mxu2 %v5223_v22  ;;  %v4781_v8 = vadd.f32 %v4760_v46, %v4657_v34 }
 0x649   : > { %v4661_v10 = vadd.f32 %v8529_v52, %v8542_v3 }
 0x64a   : > { %5228 = vmatpush.msrb.mxu2 %v5222_v17 }
 0x64c   : > { %5229 = vmatpush.msrb.mxu2 %v5221_v20  ;;  %v5215_v20 = vld [vmem:[%s8695_s13 + $0x30] sm:$0xff] }
 0x64e   : > { %v4525_v32 = vpop.f32.mrf.mxu0  ;;  %5230 = vmatpush.msrb.mxu2 %v5220_v60 }
 0x64f   : > { %v8544_v11 = vadd.f32 %v4525_v32, %v4414_v50  ;;  %v4882_v50 = vpop.f32.mrf.mxu3  ;;  %v4763_v54 = vpop.f32.mrf.mxu2 }
 0x650   : > { %v4904_v0 = vadd.f32 %v4882_v50, %v4780_v23  ;;  %v4782_v17 = vadd.f32 %v4763_v54, %v4658_v33 }
 0x656   : > { %v4527_v16 = vpop.f32.mrf.mxu0 }
 0x657   : > { %v8547_v31 = vadd.f32 %v4527_v16, %v4415_v62  ;;  %v8562_v62 = vld [vmem:[%s8694_s12] ss:$0 sm:$0xff]  ;;  %v4884_v30 = vpop.f32.mrf.mxu3  ;;  %v5219_v16 = vld [vmem:[%s8695_s13 + $0x50] sm:$0xff]  ;;  %v4765_v37 = vpop.f32.mrf.mxu2 }
 0x658   : > { %5231 = vmatpush.msrb.mxu2 %v5219_v16  ;;  %v4905_v22 = vadd.f32 %v4884_v30, %v4781_v8  ;;  %v5216_v30 = vld [vmem:[%s8695_s13 + $0x38] sm:$0xff] }
 0x65a   : > { %5232 = vmatpush.msrb.mxu2 %v5218_v56 }
 0x65e   : > { %v5001_v41 = vpop.f32.mrf.mxu0 }
 0x65f   : > { %v5026_v58 = vadd.f32 %v5001_v41, %v4902_v14  ;;  %v4887_v24 = vpop.f32.mrf.mxu3 }
 0x660   : > { %v4906_v5 = vadd.f32 %v4887_v24, %v4782_v17 }
 0x661   : > { %v5150_v51 = vadd.f32 %v5125_v55, %v5026_v58  ;;  %v5217_v58 = vld [vmem:[%s8695_s13 + $0x40] sm:$0xff] }
 0x662   : > { %5233 = vmatpush.msrb.mxu2 %v5217_v58  ;;  %v5213_v58 = vld [vmem:[%s8695_s13 + $0x20] sm:$0xff] }
 0x663   : > { %v5163_v21 = vadd.f32 %v8562_v62, %v5150_v51  ;;  %v4659_v51 = vadd.f32 %v8523_v12, %v8534_v27 }
 0x664   : > { %5234 = vmatpush.msrb.mxu2 %v5216_v30 }
 0x665   : > { %v5173_v26 = vmax.f32 %v5163_v21, 0.0  ;;  %v4768_v21 = vpop.f32.mrf.mxu2  ;;  %v4783_v60 = vadd.f32 %v4765_v37, %v4659_v51  ;;  %v4663_v51 = vadd.f32 %v8540_v61, %v8547_v31 }
 0x666   : > { %v5003_v57 = vpop.f32.mrf.mxu0  ;;  %5235 = vmatpush.msrb.mxu2 %v5215_v20 }
 0x667   : > { %v5027_v59 = vadd.f32 %v5003_v57, %v4903_v7  ;;  %v5183_v55 = vsel %vm7456_vm8, %v5173_v26, 0.0  ;;  %v4889_v18 = vpop.f32.mrf.mxu3  ;;  %v5137_v7 = vpop.f32.mrf.mxu1  ;;  %v4660_v26 = vadd.f32 %v8526_v63, %v8538_v36  ;;  %vm5246_vm8 = vcmask 8192  }
 0x668   : > { %v4907_v27 = vadd.f32 %v4889_v18, %v4783_v60 }
 0x669   : > { %v5151_v13 = vadd.f32 %v5127_v49, %v5027_v59 }
 0x66b   : > { %v5164_v43 = vadd.f32 %v8562_v62, %v5151_v13 }
 0x66d   : > { %v5174_v39 = vmax.f32 %v5164_v43, 0.0 }
 0x66e   : > { %v5006_v28 = vpop.f32.mrf.mxu0 }
 0x66f   : > { %v5184_v2 = vsel %vm7472_vm11, %v5174_v39, 0.0  ;;  %v5028_v32 = vadd.f32 %v5006_v28, %v4904_v0  ;;  %v4892_v13 = vpop.f32.mrf.mxu3  ;;  %v5214_v39 = vld [vmem:[%s8695_s13 + $0x28] sm:$0xff]  ;;  %v4784_v28 = vadd.f32 %v4768_v21, %v4660_v26  ;;  %v5140_v34 = vpop.f32.mrf.mxu1 }
 0x670   : > { %v5193_v40 = vadd.f32 %v5184_v2, %v5183_v55  ;;  %5236 = vmatpush.msrb.mxu2 %v5214_v39  ;;  %v4770_v2 = vpop.f32.mrf.mxu2 }
 0x671   : > { %v5152_v49 = vadd.f32 %v5130_v38, %v5028_v32 }
 0x672   : > { %5237 = vmatpush.msrb.mxu2 %v5213_v58 }
 0x673   : > { %v5165_v53 = vadd.f32 %v8562_v62, %v5152_v49 }
 0x675   : > { %v5175_v47 = vmax.f32 %v5165_v53, 0.0  ;;  %v4785_v53 = vadd.f32 %v4770_v2, %v4661_v10 }
 0x676   : > { %v5008_v29 = vpop.f32.mrf.mxu0 }
 0x677   : > { %v5185_v14 = vsel %vm7494_vm14, %v5175_v47, 0.0  ;;  %v5029_v50 = vadd.f32 %v5008_v29, %v4905_v22  ;;  %v4894_v49 = vpop.f32.mrf.mxu3 }
 0x678   : > { %v5194_v41 = vadd.f32 %v5193_v40, %v5185_v14  ;;  %v4908_v40 = vadd.f32 %v4892_v13, %v4784_v28  ;;  %v4773_v37 = vpop.f32.mrf.mxu2  ;;  %v4909_v29 = vadd.f32 %v4894_v49, %v4785_v53 }
 0x679   : > { %v5153_v1 = vadd.f32 %v5132_v45, %v5029_v50  ;;  %v4662_v50 = vadd.f32 %v8536_v42, %v8544_v11 }
 0x67b   : > { %v5166_v38 = vadd.f32 %v8562_v62, %v5153_v1  ;;  %v5212_v1 = vld [vmem:[%s8695_s13 + $0x18] sm:$0xff] }
 0x67c   : > { %5238 = vmatpush.msrb.mxu2 %v5212_v1 }
 0x67d   : > { %v5176_v4 = vmax.f32 %v5166_v38, 0.0 }
 0x67e   : > { %v5011_v46 = vpop.f32.mrf.mxu0  ;;  %5239 = vmatpush.msrb.mxu2 %v5211_v48 }
 0x67f   : > { %v5186_v57 = vsel %vm7510_vm1, %v5176_v4, 0.0  ;;  %v5030_v9 = vadd.f32 %v5011_v46, %v4906_v5  ;;  %v4897_v17 = vpop.f32.mrf.mxu3  ;;  %v5210_v5 = vld [vmem:[%s8695_s13 + $0x8] sm:$0xff] }
 0x680   : > { %v5195_v59 = vadd.f32 %v5194_v41, %v5186_v57  ;;  %v4786_v41 = vadd.f32 %v4773_v37, %v4662_v50  ;;  %v4775_v4 = vpop.f32.mrf.mxu2  ;;  %5240 = vmatpush.msrb.mxu2 %v5210_v5 }
 0x681   : > { %v5154_v23 = vadd.f32 %v5135_v25, %v5030_v9  ;;  %v5142_v25 = vpop.f32.mrf.mxu1  ;;  %v5209_v9 = vld [vmem:[%s8695_s13] sm:$0xff] }
 0x682   : > { %v4910_v42 = vadd.f32 %v4897_v17, %v4786_v41  ;;  %5241 = vmatpush.msrb.mxu2 %v5209_v9 }
 0x683   : > { %v5167_v12 = vadd.f32 %v8562_v62, %v5154_v23 }
 0x685   : > { %v5177_v35 = vmax.f32 %v5167_v12, 0.0 }
 0x686   : > { %v5013_v45 = vpop.f32.mrf.mxu0 }
 0x687   : > { %v5187_v43 = vsel %vm7539_vm5, %v5177_v35, 0.0  ;;  %v5031_v54 = vadd.f32 %v5013_v45, %v4907_v27  ;;  %v4899_v60 = vpop.f32.mrf.mxu3 }
 0x688   : > { %v5196_v0 = vadd.f32 %v5195_v59, %v5187_v43  ;;  %v4787_v59 = vadd.f32 %v4775_v4, %v4663_v51 }
 0x689   : > { %v5155_v55 = vadd.f32 %v5137_v7, %v5031_v54  ;;  %v5145_v11 = vpop.f32.mrf.mxu1 }
 0x68a   : > { %v4911_v23 = vadd.f32 %v4899_v60, %v4787_v59 }
 0x68b   : > { %v5168_v32 = vadd.f32 %v8562_v62, %v5155_v55 }
 0x68d   : > { %v5178_v16 = vmax.f32 %v5168_v32, 0.0 }
 0x68e   : > { %v5016_v8 = vpop.f32.mrf.mxu0 }
 0x68f   : > { %v5188_v63 = vsel %vm7555_vm9, %v5178_v16, 0.0  ;;  %v5032_v36 = vadd.f32 %v5016_v8, %v4908_v40 }
 0x690   : > { %v5197_v24 = vadd.f32 %v5196_v0, %v5188_v63 }
 0x691   : > { %v5156_v22 = vadd.f32 %v5140_v34, %v5032_v36  ;;  %v5147_v31 = vpop.f32.mrf.mxu1 }
 0x693   : > { %v5169_v47 = vadd.f32 %v8562_v62, %v5156_v22 }
 0x695   : > { %v5179_v33 = vmax.f32 %v5169_v47, 0.0 }
 0x696   : > { %v5018_v14 = vpop.f32.mrf.mxu0 }
 0x697   : > { %v5189_v52 = vsel %vm7593_vm13, %v5179_v33, 0.0  ;;  %v5033_v44 = vadd.f32 %v5018_v14, %v4909_v29 }
 0x698   : > { %v5198_v3 = vadd.f32 %v5197_v24, %v5189_v52 }
 0x699   : > { %v5157_v56 = vadd.f32 %v5142_v25, %v5033_v44 }
 0x69b   : > { %v5170_v38 = vadd.f32 %v8562_v62, %v5157_v56 }
 0x69d   : > { %v5180_v18 = vmax.f32 %v5170_v38, 0.0 }
 0x69e   : > { %v5021_v46 = vpop.f32.mrf.mxu0 }
 0x69f   : > { %v5190_v7 = vsel %vm7624_vm2, %v5180_v18, 0.0  ;;  %v5034_v57 = vadd.f32 %v5021_v46, %v4910_v42 }
 0x6a0   : > { %v5199_v21 = vadd.f32 %v5198_v3, %v5190_v7 }
 0x6a1   : > { %v5158_v30 = vadd.f32 %v5145_v11, %v5034_v57 }
 0x6a3   : > { %v5171_v20 = vadd.f32 %v8562_v62, %v5158_v30 }
 0x6a5   : > { %v5181_v12 = vmax.f32 %v5171_v20, 0.0 }
 0x6a6   : > { %v5023_v27 = vpop.f32.mrf.mxu0 }
 0x6a7   : > { %v5191_v15 = vsel %vm7660_vm7, %v5181_v12, 0.0  ;;  %v5035_v61 = vadd.f32 %v5023_v27, %v4911_v23 }
 0x6a8   : > { %v5200_v35 = vadd.f32 %v5199_v21, %v5191_v15 }
 0x6a9   : > { %v5159_v13 = vadd.f32 %v5147_v31, %v5035_v61 }
 0x6ab   : > { %v5172_v45 = vadd.f32 %v8562_v62, %v5159_v13 }
 0x6ad   : > { %v5182_v26 = vmax.f32 %v5172_v45, 0.0 }
 0x6af   : > { %v5192_v43 = vsel %vm7674_vm15, %v5182_v26, 0.0 }
 0x6b0   : > { %v5201_v54 = vadd.f32 %v5200_v35, %v5192_v43 }
 0x6b2   : > { %v5202_v0 = vrot.slane %v5201_v54, 4 }
 0x6b4   : > { %v5203_v39 = vadd.f32 %v5202_v0, %v5201_v54 }
 0x6b6   : > { %v5204_v28 = vrot.slane %v5203_v39, 2 }
 0x6b8   : > { %v5205_v34 = vadd.f32 %v5204_v28, %v5203_v39 }
 0x6ba   : > { %v5206_v55 = vrot.slane %v5205_v34, 1 }
 0x6bc   : > { %v5207_v6 = vadd.f32 %v5206_v55, %v5205_v34 }
 0x6be   : > { %v5208_v2 = vmul.f32 0.015625, %v5207_v6 }
 0x6c0   : > { %5242 = vmatmul.f32.vlgmr.msrb.gmra.mxu2 %v5208_v2 }
 0x743   : > { %v5243_v62 = vpop.f32.mrf.mxu2 }
 0x744   : > { %v5244_v32 = vadd.f32 %v5243_v62, %v5225_v19 }
 0x746   : > { %5247 = vst.msk [vmem:[%s486_s26] sm:$0x1] %vm5246_vm8, %v5244_v32 }
 0x747   : > { %6800 = shalt.err (!%p6797_p3)
}
 0x748   : > { %6708 = dma.vmem_to_hbm [thread:$0]  (%p6958_p5), %s5260_s30, 16, %s5262_s16, %s5249_s20  }
 0x749 PF: > { %p6714_p4 = scmp.ge.s32.totalorder %s6835_s21, 2  ;;  %s5273_s27 = sand.u32 1, %s6823_s18  }
 0x74a   : > { %s5274_s1 = scalar_lea.sflag [#allocation8], %s5273_s27 }
 0x74b   : > { %p6711_p7 = pnand %p6714_p4, %p6962_p6 }
 0x74d   : > { %p6712_p8 = pneg %p6711_p7 }
 0x74f   : > { %6818 = dma.done.wait (%p6712_p8), %s5274_s1, 16  }
 0x750   : > { %6820 = vsyncadd (%p6712_p8), %s5274_s1, 4294967280  ;;  %s8731_s2 = sld [smem:[#allocation10_spill]]  ;;  %p25_p9 = scmp.ge.s32.totalorder %s6945_s24, 4  }
 0x751   : > { %s8732_s20 = sld [smem:[#allocation11_spill]]  ;;  %s8733_s18 = smov %s6827_s19 }
 0x752   : > { %s8735_s21 = smov %s6945_s24  ;;  %27 = sbr.rel (!%p25_p9) target bundleno = 8 (0x8), region = 178 }
 0x756   : > { %s8734_s19 = smov %s8731_s2 }
 0x757   :  { %5279 = vsyncpa [#allocation8], 1 }
 0x758   :  { %5281 = vsyncpa [#allocation8 + $0x1], 1 }

</bundles_post_ra>
